<compile_context>
chip_gen: v5e
topology: v5e:2x2
jax: 0.10.0
libtpu: 0.0.40
codegen_flags: <defaults>
</compile_context>

<pallas_src>
import math

import jax
import jax.numpy as jnp
from jax import lax
from jax.experimental import pallas as pl
from jax.experimental.pallas import tpu as pltpu


def label_dim_fn(x, default_dim=100):
    return int(max(default_dim, x))


# Architecture constants fixed by the PyTorch module (mlp_fc1 = Linear(400, 800)).
E = 400          # label_embedding_dim
HID = 800        # mlp hidden width
FFN = 64         # ffn hidden width
SLAB_COLS = 896  # lane width of the packed small-vector slab (>= 800, multiple of 128)
_SUBLANE = 16    # bf16 sublane tile; stacked-weight row splits are padded to this

# Row layout of the packed (11, SLAB_COLS) f32 slab of small vectors.
_R_BF, _R_GF, _R_BETAF = 0, 1, 2          # feature_fc bias, feature_norm gamma / beta
_R_BE, _R_GL, _R_BETAL = 3, 4, 5          # label_embedding bias, label_norm gamma / beta
_R_WCA, _R_B1, _R_B23, _R_W4 = 6, 7, 8, 9  # cross-attn weight, mlp bias1, fused b23, w4
_R_SCALARS = 10                           # lane 0: bca, lane 1: b4
_SLAB_ROWS = 11


def _round_up(x, m):
    return (x + m - 1) // m * m


def _vmem_limit_bytes():
    """min(64 MiB, physical VMEM / 2): 64 MiB on v5e/v6e (128 MiB), 32 MiB on v7x."""
    try:
        cap = int(pltpu.get_tpu_info().vmem_capacity_bytes)
    except Exception:
        cap = 128 << 20
    return min(64 << 20, max(cap // 2, 16 << 20))


# ----------------------------------------------------------------------------
# Pallas kernel: the whole forward pass (grid-less; everything fits in VMEM)
# ----------------------------------------------------------------------------
def _ema_rewarder_kernel(features_ref, label_ref, w_in_ref, w1_ref, w23_ref,
                         slab_ref, out_ref):
    eps = jnp.float32(1e-5)
    fpad = features_ref.shape[1]          # padded feature_dim (multiple of 16)
    lpad = label_ref.shape[1]             # padded label_dim   (multiple of 16)

    def layernorm(x, gamma, beta):
        mu = jnp.mean(x, axis=-1, keepdims=True)
        var = jnp.mean((x - mu) * (x - mu), axis=-1, keepdims=True)
        return (x - mu) * lax.rsqrt(var + eps) * gamma + beta

    # Stacked bf16 input-projection weights: rows [0:fpad) = wf, [fpad:fpad+lpad) = we.
    wf = w_in_ref[0:fpad, :]
    we = w_in_ref[fpad:fpad + lpad, :]

    # features = feature_norm(feature_fc(features))                (B_f, E) f32
    feat = jnp.dot(features_ref[...], wf,
                   preferred_element_type=jnp.float32) + slab_ref[_R_BF:_R_BF + 1, :E]
    feat = layernorm(feat,
                     slab_ref[_R_GF:_R_GF + 1, :E],
                     slab_ref[_R_BETAF:_R_BETAF + 1, :E])

    # label_embed = label_norm(label_embedding(label))             (B_l, E) f32
    lab = jnp.dot(label_ref[...], we,
                  preferred_element_type=jnp.float32) + slab_ref[_R_BE:_R_BE + 1, :E]
    lab = layernorm(lab,
                    slab_ref[_R_GL:_R_GL + 1, :E],
                    slab_ref[_R_BETAL:_R_BETAL + 1, :E])

    # Cross attention: softmax over the (B_f + B_l) concatenated rows of the scalar
    # logits x @ wca + bca.  Computed blockwise (no sublane concat) with a shared
    # normalizer -- mathematically identical to softmax(cat([feat, lab]) @ wca, dim=0).
    wca_t = slab_ref[_R_WCA:_R_WCA + 1, :E]                         # (1, E)
    bca = slab_ref[_R_SCALARS:_R_SCALARS + 1, 0:1]                  # (1, 1)
    logit_f = jnp.sum(feat * wca_t, axis=-1, keepdims=True) + bca   # (B_f, 1)  VPU+XLU
    logit_l = jnp.sum(lab * wca_t, axis=-1, keepdims=True) + bca    # (B_l, 1)
    m = jnp.maximum(jnp.max(logit_f, axis=0, keepdims=True),
                    jnp.max(logit_l, axis=0, keepdims=True))        # (1, 1)
    e_f = jnp.exp(logit_f - m)
    e_l = jnp.exp(logit_l - m)
    denom = (jnp.sum(e_f, axis=0, keepdims=True)
             + jnp.sum(e_l, axis=0, keepdims=True))                 # (1, 1)
    ca = (jnp.sum(e_f * feat, axis=0, keepdims=True)
          + jnp.sum(e_l * lab, axis=0, keepdims=True)) / denom      # (1, E)

    # MLP + FFN head (row-wise over label rows); fc2 and ffn_fc1 are fused (w23/b23).
    mlp_in = (ca + lab).astype(jnp.bfloat16)                        # (B_l, E)
    h = jnp.dot(mlp_in, w1_ref[...],
                preferred_element_type=jnp.float32) + slab_ref[_R_B1:_R_B1 + 1, :HID]
    h = jnp.maximum(h, 0.0)
    f = jnp.dot(h.astype(jnp.bfloat16), w23_ref[...],
                preferred_element_type=jnp.float32) + slab_ref[_R_B23:_R_B23 + 1, :FFN]
    f = jnp.maximum(f, 0.0)                                         # (B_l, FFN)

    # Final scalar head, lane-dense: z_row = w4_row @ f^T + b4  -> (1, B_l)
    w4_t = slab_ref[_R_W4:_R_W4 + 1, :FFN]                          # (1, FFN)
    b4 = slab_ref[_R_SCALARS:_R_SCALARS + 1, 1:2]                   # (1, 1)
    z = lax.dot_general(w4_t, f, (((1,), (1,)), ((), ())),
                        preferred_element_type=jnp.float32) + b4    # (1, B_l)
    out_ref[...] = jax.nn.sigmoid(z)


# ----------------------------------------------------------------------------
# Parameter packing (do this ONCE per weight update, not per forward call)
# ----------------------------------------------------------------------------
def pack_params(params):
    """Repack the f32 parameter dict into the kernel-ready arguments:
      * w_in  : stacked [wf ; we] bf16, row-padded to 16-row tiles
      * w1    : bf16 (400, 800)
      * w23   : bf16 (800, 64)  -- fused w2 @ w3 (exact: no nonlinearity between them)
      * slab  : (11, 896) f32 holding every small vector (biases, LN params, wca, w4,
                fused b23, and the two scalars bca / b4)
    """
    def row(v):
        v = jnp.asarray(v, jnp.float32).reshape(1, -1)
        return jnp.pad(v, ((0, 0), (0, SLAB_COLS - v.shape[1])))

    # Fuse mlp_fc2 -> ffn_fc1 in f32 at pack time.
    w2 = jnp.asarray(params["w2"], jnp.float32)            # (HID, E)
    w3 = jnp.asarray(params["w3"], jnp.float32)            # (E, FFN)
    b2 = jnp.asarray(params["b2"], jnp.float32).reshape(1, -1)
    b3 = jnp.asarray(params["b3"], jnp.float32).reshape(1, -1)
    w23 = w2 @ w3                                          # (HID, FFN)
    b23 = b2 @ w3 + b3                                     # (1, FFN)

    slab = jnp.concatenate([
        row(params["bf"]), row(params["gf"]), row(params["betaf"]),
        row(params["be"]), row(params["gl"]), row(params["betal"]),
        row(params["wca"]),                       # (E, 1) column -> (1, E) lane vector
        row(params["b1"]), row(b23),
        row(params["w4"]),                        # (FFN, 1) column -> (1, FFN)
        row(jnp.concatenate([jnp.reshape(params["bca"], (1, 1)),
                             jnp.reshape(params["b4"], (1, 1))], axis=1)),
    ], axis=0)                                    # (11, SLAB_COLS) f32

    # Stack wf / we into one bf16 array (row-pad each block to the 16-row bf16 tile so
    # the in-kernel sublane slices stay tile-aligned; zero rows match zero-padded
    # activation columns, so the matmuls are exact).
    wf = jnp.asarray(params["wf"], jnp.float32)            # (feature_dim, E)
    we = jnp.asarray(params["we"], jnp.float32)            # (label_dim,  E)
    feat_pad = _round_up(wf.shape[0], _SUBLANE)
    lbl_pad = _round_up(we.shape[0], _SUBLANE)
    w_in = jnp.concatenate([
        jnp.pad(wf, ((0, feat_pad - wf.shape[0]), (0, 0))),
        jnp.pad(we, ((0, lbl_pad - we.shape[0]), (0, 0))),
    ], axis=0).astype(jnp.bfloat16)                        # (feat_pad + lbl_pad, E)

    return {
        "w_in": w_in,
        "w1": jnp.asarray(params["w1"], jnp.bfloat16),
        "w23": w23.astype(jnp.bfloat16),
        "slab": slab,
        "feat_pad": feat_pad,
        "lbl_pad": lbl_pad,
    }


# ----------------------------------------------------------------------------
# Forward wrapper
# ----------------------------------------------------------------------------
def ema_rewarder_forward(features, label, packed):
    """EMARewarder forward.  Batch as many reward queries (rows) as possible per
    call: the fixed ~1.1 MB bf16 weight DMA dominates, so throughput scales almost
    linearly with rows until the VMEM cap (64 MiB scoped on v5e/v6e, 32 MiB v7x)."""
    feat_pad, lbl_pad = packed["feat_pad"], packed["lbl_pad"]
    b_l = label.shape[0]
    assert features.shape[1] <= feat_pad and label.shape[1] <= lbl_pad

    # Ship activations as bf16, zero-padded to the stacked-weight row splits.
    features = jnp.pad(features.astype(jnp.bfloat16),
                       ((0, 0), (0, feat_pad - features.shape[1])))
    label = jnp.pad(label.astype(jnp.bfloat16),
                    ((0, 0), (0, lbl_pad - label.shape[1])))

    vmem = pl.BlockSpec(memory_space=pltpu.MemorySpace.VMEM)
    out_row = pl.pallas_call(
        _ema_rewarder_kernel,
        out_shape=jax.ShapeDtypeStruct((1, b_l), jnp.float32),   # lane-dense output
        in_specs=[vmem] * 6,
        out_specs=vmem,
        compiler_params=pltpu.CompilerParams(vmem_limit_bytes=_vmem_limit_bytes()),
    )(features, label, packed["w_in"], packed["w1"], packed["w23"], packed["slab"])
    return out_row.reshape(b_l, 1)


def update_ema(ema_params, params, decay=0.9):
    # Parameter bookkeeping (mirrors EMARewarder.update_ema); plain-JAX glue,
    # does not affect the forward output (forward uses the current params, the EMA
    # dict is only the shadow copy, exactly as in the PyTorch module).
    return jax.tree_util.tree_map(
        lambda e, p: decay * e + (1.0 - decay) * p, ema_params, params)


# ----------------------------------------------------------------------------
# Deterministic parameter initialization (PyTorch nn.Linear-style uniform)
# ----------------------------------------------------------------------------
def _linear_init(key, fan_in, fan_out):
    kw, kb = jax.random.split(key)
    bound = 1.0 / math.sqrt(fan_in)
    w = jax.random.uniform(kw, (fan_in, fan_out), jnp.float32, -bound, bound)
    b = jax.random.uniform(kb, (1, fan_out), jnp.float32, -bound, bound)
    return w, b


def init_params(key, label_dim, label_embedding_dim, feature_dim):
    assert label_embedding_dim == E, "mlp_fc1 = Linear(400, 800) requires E == 400"
    ks = jax.random.split(key, 8)
    p = {}
    p["wf"], p["bf"] = _linear_init(ks[0], feature_dim, label_embedding_dim)
    p["gf"] = jnp.ones((1, label_embedding_dim), jnp.float32)
    p["betaf"] = jnp.zeros((1, label_embedding_dim), jnp.float32)
    p["we"], p["be"] = _linear_init(ks[1], label_dim, label_embedding_dim)
    p["gl"] = jnp.ones((1, label_embedding_dim), jnp.float32)
    p["betal"] = jnp.zeros((1, label_embedding_dim), jnp.float32)
    p["wca"], p["bca"] = _linear_init(ks[2], label_embedding_dim, 1)
    p["w1"], p["b1"] = _linear_init(ks[3], E, HID)
    p["w2"], p["b2"] = _linear_init(ks[4], HID, E)
    p["w3"], p["b3"] = _linear_init(ks[5], E, FFN)
    p["w4"], p["b4"] = _linear_init(ks[6], FFN, 1)
    return p


if __name__ == "__main__":
    key = jax.random.PRNGKey(0)

    num_classes = 10
    LBL = label_dim_fn(num_classes)      # -> 100
    FEAT = 384                           # EMARewarder default feature_dim
    B_F, B_L = 8, 8                      # small batches (fill one 8-sublane tile)

    k_param, k_feat, k_lab = jax.random.split(key, 3)
    params = init_params(k_param, LBL, E, FEAT)
    ema_params = jax.tree_util.tree_map(lambda x: x, params)   # EMA initialized to params
    packed = pack_params(params)         # once per weight update, NOT per forward

    features = jax.random.normal(k_feat, (B_F, FEAT), jnp.float32)
    # Dense one-hot pseudo-label vectors (label_embedding is nn.Linear on dense labels).
    label = jax.nn.one_hot(
        jax.random.randint(k_lab, (B_L,), 0, num_classes), LBL, dtype=jnp.float32)

    reward = ema_rewarder_forward(features, label, packed)
    ema_params = update_ema(ema_params, params, decay=0.9)     # forward's EMA side effect

    jax.block_until_ready(reward)
    jax.block_until_ready(ema_params)

    assert reward.shape == (B_L, 1)
    assert bool(jnp.all((reward >= 0.0) & (reward <= 1.0)))
    print("KERNEL_OK")
</pallas_src>

<mosaic_0001>
module attributes {stable_mosaic.version = 11 : i64} {
  func.func @_ema_rewarder_kernel(%arg0: memref<8x384xbf16, #tpu.memory_space<vmem>>, %arg1: memref<8x112xbf16, #tpu.memory_space<vmem>>, %arg2: memref<496x400xbf16, #tpu.memory_space<vmem>>, %arg3: memref<400x800xbf16, #tpu.memory_space<vmem>>, %arg4: memref<800x64xbf16, #tpu.memory_space<vmem>>, %arg5: memref<11x896xf32, #tpu.memory_space<vmem>>, %arg6: memref<1x8xf32, #tpu.memory_space<vmem>>) attributes {dimension_semantics = [], scalar_prefetch = 0 : i64, scratch_operands = 0 : i64, tpu.core_type = #tpu.core_type<tc>} {
    %c0 = arith.constant 0 : index
    %c0_0 = arith.constant 0 : index
    %0 = vector.load %arg2[%c0, %c0_0] : memref<496x400xbf16, #tpu.memory_space<vmem>>, vector<384x400xbf16>
    %c384 = arith.constant 384 : index
    %c0_1 = arith.constant 0 : index
    %1 = vector.load %arg2[%c384, %c0_1] : memref<496x400xbf16, #tpu.memory_space<vmem>>, vector<112x400xbf16>
    %c0_2 = arith.constant 0 : index
    %c0_3 = arith.constant 0 : index
    %2 = vector.load %arg0[%c0_2, %c0_3] : memref<8x384xbf16, #tpu.memory_space<vmem>>, vector<8x384xbf16>
    %cst = arith.constant dense<0.000000e+00> : vector<8x400xf32>
    %3 = tpu.matmul %2, %0, %cst {dimension_numbers = #tpu.dot_dimension_numbers<[1], [0], [0], [1], [0, 0, 1, 1], [], []>} : vector<8x384xbf16>, vector<384x400xbf16>, vector<8x400xf32> -> vector<8x400xf32>
    %c0_4 = arith.constant 0 : index
    %c0_5 = arith.constant 0 : index
    %4 = vector.load %arg5[%c0_4, %c0_5] : memref<11x896xf32, #tpu.memory_space<vmem>>, vector<1x400xf32>
    %5 = vector.broadcast %4 : vector<1x400xf32> to vector<8x400xf32>
    %6 = arith.addf %3, %5 : vector<8x400xf32>
    %c1 = arith.constant 1 : index
    %c0_6 = arith.constant 0 : index
    %7 = vector.load %arg5[%c1, %c0_6] : memref<11x896xf32, #tpu.memory_space<vmem>>, vector<1x400xf32>
    %c2 = arith.constant 2 : index
    %c0_7 = arith.constant 0 : index
    %8 = vector.load %arg5[%c2, %c0_7] : memref<11x896xf32, #tpu.memory_space<vmem>>, vector<1x400xf32>
    %cst_8 = arith.constant dense<0.000000e+00> : vector<8xf32>
    %9 = vector.multi_reduction <add>, %6, %cst_8 [1] : vector<8x400xf32> to vector<8xf32>
    %10 = vector.shape_cast %9 : vector<8xf32> to vector<8x1xf32>
    %cst_9 = arith.constant 4.000000e+02 : f32
    %11 = vector.broadcast %cst_9 : f32 to vector<8x1xf32>
    %12 = arith.divf %10, %11 : vector<8x1xf32>
    %13 = vector.broadcast %12 : vector<8x1xf32> to vector<8x400xf32>
    %14 = arith.subf %6, %13 : vector<8x400xf32>
    %15 = vector.broadcast %12 : vector<8x1xf32> to vector<8x400xf32>
    %16 = arith.subf %6, %15 : vector<8x400xf32>
    %17 = arith.mulf %14, %16 : vector<8x400xf32>
    %cst_10 = arith.constant dense<0.000000e+00> : vector<8xf32>
    %18 = vector.multi_reduction <add>, %17, %cst_10 [1] : vector<8x400xf32> to vector<8xf32>
    %19 = vector.shape_cast %18 : vector<8xf32> to vector<8x1xf32>
    %cst_11 = arith.constant 4.000000e+02 : f32
    %20 = vector.broadcast %cst_11 : f32 to vector<8x1xf32>
    %21 = arith.divf %19, %20 : vector<8x1xf32>
    %22 = vector.broadcast %12 : vector<8x1xf32> to vector<8x400xf32>
    %23 = arith.subf %6, %22 : vector<8x400xf32>
    %cst_12 = arith.constant 9.99999974E-6 : f32
    %24 = vector.broadcast %cst_12 : f32 to vector<8x1xf32>
    %25 = arith.addf %21, %24 : vector<8x1xf32>
    %26 = math.rsqrt %25 : vector<8x1xf32>
    %27 = vector.broadcast %26 : vector<8x1xf32> to vector<8x400xf32>
    %28 = arith.mulf %23, %27 : vector<8x400xf32>
    %29 = vector.broadcast %7 : vector<1x400xf32> to vector<8x400xf32>
    %30 = arith.mulf %28, %29 : vector<8x400xf32>
    %31 = vector.broadcast %8 : vector<1x400xf32> to vector<8x400xf32>
    %32 = arith.addf %30, %31 : vector<8x400xf32>
    %c0_13 = arith.constant 0 : index
    %c0_14 = arith.constant 0 : index
    %33 = vector.load %arg1[%c0_13, %c0_14] : memref<8x112xbf16, #tpu.memory_space<vmem>>, vector<8x112xbf16>
    %cst_15 = arith.constant dense<0.000000e+00> : vector<8x400xf32>
    %34 = tpu.matmul %33, %1, %cst_15 {dimension_numbers = #tpu.dot_dimension_numbers<[1], [0], [0], [1], [0, 0, 1, 1], [], []>} : vector<8x112xbf16>, vector<112x400xbf16>, vector<8x400xf32> -> vector<8x400xf32>
    %c3 = arith.constant 3 : index
    %c0_16 = arith.constant 0 : index
    %35 = vector.load %arg5[%c3, %c0_16] : memref<11x896xf32, #tpu.memory_space<vmem>>, vector<1x400xf32>
    %36 = vector.broadcast %35 : vector<1x400xf32> to vector<8x400xf32>
    %37 = arith.addf %34, %36 : vector<8x400xf32>
    %c4 = arith.constant 4 : index
    %c0_17 = arith.constant 0 : index
    %38 = vector.load %arg5[%c4, %c0_17] : memref<11x896xf32, #tpu.memory_space<vmem>>, vector<1x400xf32>
    %c5 = arith.constant 5 : index
    %c0_18 = arith.constant 0 : index
    %39 = vector.load %arg5[%c5, %c0_18] : memref<11x896xf32, #tpu.memory_space<vmem>>, vector<1x400xf32>
    %cst_19 = arith.constant dense<0.000000e+00> : vector<8xf32>
    %40 = vector.multi_reduction <add>, %37, %cst_19 [1] : vector<8x400xf32> to vector<8xf32>
    %41 = vector.shape_cast %40 : vector<8xf32> to vector<8x1xf32>
    %cst_20 = arith.constant 4.000000e+02 : f32
    %42 = vector.broadcast %cst_20 : f32 to vector<8x1xf32>
    %43 = arith.divf %41, %42 : vector<8x1xf32>
    %44 = vector.broadcast %43 : vector<8x1xf32> to vector<8x400xf32>
    %45 = arith.subf %37, %44 : vector<8x400xf32>
    %46 = vector.broadcast %43 : vector<8x1xf32> to vector<8x400xf32>
    %47 = arith.subf %37, %46 : vector<8x400xf32>
    %48 = arith.mulf %45, %47 : vector<8x400xf32>
    %cst_21 = arith.constant dense<0.000000e+00> : vector<8xf32>
    %49 = vector.multi_reduction <add>, %48, %cst_21 [1] : vector<8x400xf32> to vector<8xf32>
    %50 = vector.shape_cast %49 : vector<8xf32> to vector<8x1xf32>
    %cst_22 = arith.constant 4.000000e+02 : f32
    %51 = vector.broadcast %cst_22 : f32 to vector<8x1xf32>
    %52 = arith.divf %50, %51 : vector<8x1xf32>
    %53 = vector.broadcast %43 : vector<8x1xf32> to vector<8x400xf32>
    %54 = arith.subf %37, %53 : vector<8x400xf32>
    %cst_23 = arith.constant 9.99999974E-6 : f32
    %55 = vector.broadcast %cst_23 : f32 to vector<8x1xf32>
    %56 = arith.addf %52, %55 : vector<8x1xf32>
    %57 = math.rsqrt %56 : vector<8x1xf32>
    %58 = vector.broadcast %57 : vector<8x1xf32> to vector<8x400xf32>
    %59 = arith.mulf %54, %58 : vector<8x400xf32>
    %60 = vector.broadcast %38 : vector<1x400xf32> to vector<8x400xf32>
    %61 = arith.mulf %59, %60 : vector<8x400xf32>
    %62 = vector.broadcast %39 : vector<1x400xf32> to vector<8x400xf32>
    %63 = arith.addf %61, %62 : vector<8x400xf32>
    %c6 = arith.constant 6 : index
    %c0_24 = arith.constant 0 : index
    %64 = vector.load %arg5[%c6, %c0_24] : memref<11x896xf32, #tpu.memory_space<vmem>>, vector<1x400xf32>
    %c10 = arith.constant 10 : index
    %c0_25 = arith.constant 0 : index
    %65 = vector.load %arg5[%c10, %c0_25] : memref<11x896xf32, #tpu.memory_space<vmem>>, vector<1x1xf32>
    %66 = vector.broadcast %64 : vector<1x400xf32> to vector<8x400xf32>
    %67 = arith.mulf %32, %66 : vector<8x400xf32>
    %cst_26 = arith.constant dense<0.000000e+00> : vector<8xf32>
    %68 = vector.multi_reduction <add>, %67, %cst_26 [1] : vector<8x400xf32> to vector<8xf32>
    %69 = vector.shape_cast %68 : vector<8xf32> to vector<8x1xf32>
    %70 = vector.broadcast %65 : vector<1x1xf32> to vector<8x1xf32>
    %71 = arith.addf %69, %70 : vector<8x1xf32>
    %72 = vector.broadcast %64 : vector<1x400xf32> to vector<8x400xf32>
    %73 = arith.mulf %63, %72 : vector<8x400xf32>
    %cst_27 = arith.constant dense<0.000000e+00> : vector<8xf32>
    %74 = vector.multi_reduction <add>, %73, %cst_27 [1] : vector<8x400xf32> to vector<8xf32>
    %75 = vector.shape_cast %74 : vector<8xf32> to vector<8x1xf32>
    %76 = vector.broadcast %65 : vector<1x1xf32> to vector<8x1xf32>
    %77 = arith.addf %75, %76 : vector<8x1xf32>
    %cst_28 = arith.constant dense<0xFF800000> : vector<1xf32>
    %78 = vector.multi_reduction <maximumf>, %71, %cst_28 [0] : vector<8x1xf32> to vector<1xf32>
    %79 = vector.shape_cast %78 : vector<1xf32> to vector<1x1xf32>
    %cst_29 = arith.constant dense<0xFF800000> : vector<1xf32>
    %80 = vector.multi_reduction <maximumf>, %77, %cst_29 [0] : vector<8x1xf32> to vector<1xf32>
    %81 = vector.shape_cast %80 : vector<1xf32> to vector<1x1xf32>
    %82 = arith.maximumf %79, %81 : vector<1x1xf32>
    %83 = vector.broadcast %82 : vector<1x1xf32> to vector<8x1xf32>
    %84 = arith.subf %71, %83 : vector<8x1xf32>
    %85 = math.exp %84 : vector<8x1xf32>
    %86 = vector.broadcast %82 : vector<1x1xf32> to vector<8x1xf32>
    %87 = arith.subf %77, %86 : vector<8x1xf32>
    %88 = math.exp %87 : vector<8x1xf32>
    %cst_30 = arith.constant dense<0.000000e+00> : vector<1xf32>
    %89 = vector.multi_reduction <add>, %85, %cst_30 [0] : vector<8x1xf32> to vector<1xf32>
    %90 = vector.shape_cast %89 : vector<1xf32> to vector<1x1xf32>
    %cst_31 = arith.constant dense<0.000000e+00> : vector<1xf32>
    %91 = vector.multi_reduction <add>, %88, %cst_31 [0] : vector<8x1xf32> to vector<1xf32>
    %92 = vector.shape_cast %91 : vector<1xf32> to vector<1x1xf32>
    %93 = arith.addf %90, %92 : vector<1x1xf32>
    %94 = vector.broadcast %85 : vector<8x1xf32> to vector<8x400xf32>
    %95 = arith.mulf %94, %32 : vector<8x400xf32>
    %cst_32 = arith.constant dense<0.000000e+00> : vector<400xf32>
    %96 = vector.multi_reduction <add>, %95, %cst_32 [0] : vector<8x400xf32> to vector<400xf32>
    %97 = vector.shape_cast %96 : vector<400xf32> to vector<1x400xf32>
    %98 = vector.broadcast %88 : vector<8x1xf32> to vector<8x400xf32>
    %99 = arith.mulf %98, %63 : vector<8x400xf32>
    %cst_33 = arith.constant dense<0.000000e+00> : vector<400xf32>
    %100 = vector.multi_reduction <add>, %99, %cst_33 [0] : vector<8x400xf32> to vector<400xf32>
    %101 = vector.shape_cast %100 : vector<400xf32> to vector<1x400xf32>
    %102 = arith.addf %97, %101 : vector<1x400xf32>
    %103 = vector.broadcast %93 : vector<1x1xf32> to vector<1x400xf32>
    %104 = arith.divf %102, %103 : vector<1x400xf32>
    %105 = vector.broadcast %104 : vector<1x400xf32> to vector<8x400xf32>
    %106 = arith.addf %105, %63 : vector<8x400xf32>
    %107 = arith.truncf %106 : vector<8x400xf32> to vector<8x400xbf16>
    %c0_34 = arith.constant 0 : index
    %c0_35 = arith.constant 0 : index
    %108 = vector.load %arg3[%c0_34, %c0_35] : memref<400x800xbf16, #tpu.memory_space<vmem>>, vector<400x800xbf16>
    %cst_36 = arith.constant dense<0.000000e+00> : vector<8x800xf32>
    %109 = tpu.matmul %107, %108, %cst_36 {dimension_numbers = #tpu.dot_dimension_numbers<[1], [0], [0], [1], [0, 0, 1, 1], [], []>} : vector<8x400xbf16>, vector<400x800xbf16>, vector<8x800xf32> -> vector<8x800xf32>
    %c7 = arith.constant 7 : index
    %c0_37 = arith.constant 0 : index
    %110 = vector.load %arg5[%c7, %c0_37] : memref<11x896xf32, #tpu.memory_space<vmem>>, vector<1x800xf32>
    %111 = vector.broadcast %110 : vector<1x800xf32> to vector<8x800xf32>
    %112 = arith.addf %109, %111 : vector<8x800xf32>
    %cst_38 = arith.constant 0.000000e+00 : f32
    %113 = vector.broadcast %cst_38 : f32 to vector<8x800xf32>
    %114 = arith.maximumf %112, %113 : vector<8x800xf32>
    %115 = arith.truncf %114 : vector<8x800xf32> to vector<8x800xbf16>
    %c0_39 = arith.constant 0 : index
    %c0_40 = arith.constant 0 : index
    %116 = vector.load %arg4[%c0_39, %c0_40] : memref<800x64xbf16, #tpu.memory_space<vmem>>, vector<800x64xbf16>
    %cst_41 = arith.constant dense<0.000000e+00> : vector<8x64xf32>
    %117 = tpu.matmul %115, %116, %cst_41 {dimension_numbers = #tpu.dot_dimension_numbers<[1], [0], [0], [1], [0, 0, 1, 1], [], []>} : vector<8x800xbf16>, vector<800x64xbf16>, vector<8x64xf32> -> vector<8x64xf32>
    %c8 = arith.constant 8 : index
    %c0_42 = arith.constant 0 : index
    %118 = vector.load %arg5[%c8, %c0_42] : memref<11x896xf32, #tpu.memory_space<vmem>>, vector<1x64xf32>
    %119 = vector.broadcast %118 : vector<1x64xf32> to vector<8x64xf32>
    %120 = arith.addf %117, %119 : vector<8x64xf32>
    %cst_43 = arith.constant 0.000000e+00 : f32
    %121 = vector.broadcast %cst_43 : f32 to vector<8x64xf32>
    %122 = arith.maximumf %120, %121 : vector<8x64xf32>
    %c9 = arith.constant 9 : index
    %c0_44 = arith.constant 0 : index
    %123 = vector.load %arg5[%c9, %c0_44] : memref<11x896xf32, #tpu.memory_space<vmem>>, vector<1x64xf32>
    %c10_45 = arith.constant 10 : index
    %c1_46 = arith.constant 1 : index
    %124 = vector.load %arg5[%c10_45, %c1_46] : memref<11x896xf32, #tpu.memory_space<vmem>>, vector<1x1xf32>
    %cst_47 = arith.constant dense<0.000000e+00> : vector<1x8xf32>
    %125 = tpu.matmul %123, %122, %cst_47 {dimension_numbers = #tpu.dot_dimension_numbers<[1], [1], [0], [0], [0, 0, 1, 0], [], []>} : vector<1x64xf32>, vector<8x64xf32>, vector<1x8xf32> -> vector<1x8xf32>
    %126 = vector.broadcast %124 : vector<1x1xf32> to vector<1x8xf32>
    %127 = arith.addf %125, %126 : vector<1x8xf32>
    %128 = arith.negf %127 : vector<1x8xf32>
    %129 = math.exp %128 : vector<1x8xf32>
    %cst_48 = arith.constant 1.000000e+00 : f32
    %130 = vector.broadcast %cst_48 : f32 to vector<1x8xf32>
    %131 = arith.addf %130, %129 : vector<1x8xf32>
    %132 = arith.divf %130, %131 : vector<1x8xf32>
    %c0_49 = arith.constant 0 : index
    %c0_50 = arith.constant 0 : index
    %133 = vector.load %arg6[%c0_49, %c0_50] : memref<1x8xf32, #tpu.memory_space<vmem>>, vector<1x8xf32>
    tpu.vector_store %arg6[%c0_49, %c0_50], %132 {strides = array<i32>} : memref<1x8xf32, #tpu.memory_space<vmem>>, vector<1x8xf32>,
    return
  }
}

</mosaic_0001>

<bundles_post_ra>
// kernel: tpu_custom_call.1
= control target key start
LH: loop header
LB: loop body
LE: loop exit
PB: predicated region body
PF: predicated region fallthrough
CT: control target
= control target key end

     0   :  { %s7403_s0 = inlined_call_operand.vmem [shape: bf16[8,384], index: 0, kind: input, shape index: {}]   ;;  %s7404_s1 = inlined_call_operand.vmem [shape: bf16[8,112], index: 1, kind: input, shape index: {}]   ;;  %s7405_s2 = inlined_call_operand.vmem [shape: bf16[496,400], index: 2, kind: input, shape index: {}]   ;;  %s7406_s3 = inlined_call_operand.vmem [shape: bf16[400,800], index: 3, kind: input, shape index: {}]   ;;  %s7407_s4 = inlined_call_operand.vmem [shape: bf16[800,64], index: 4, kind: input, shape index: {}]   ;;  %s7408_s5 = inlined_call_operand.vmem [shape: f32[11,896], index: 5, kind: input, shape index: {}]   ;;  %s7409_s6 = inlined_call_operand.hbm [shape: f32[1,8], index: 6, kind: output, shape index: {}]  }
   0x1   :  { %v3513_v0 = vld [vmem:[%s7405_s2 + $0xe0] sm:$0xf]  ;;  %v4848_v1 = vld [vmem:[%s7405_s2 + $0xec] sm:$0xf0]  ;;  %v4846_v9 = vld [vmem:[%s7405_s2 + $0xe4] sm:$0xf] }
   0x2   :  { %v3641_v2 = vld [vmem:[%s7405_s2 + $0x1e0] sm:$0xf]  ;;  %v3514_v3 = vor.u32 %v4848_v1, %v3513_v0  ;;  %v4880_v4 = vld [vmem:[%s7405_s2 + $0x1ec] sm:$0xf0]  ;;  %v3515_v10 = vld [vmem:[%s7405_s2 + $0xf0] sm:$0xf0] }
   0x3   :  { %v3769_v5 = vld [vmem:[%s7405_s2 + $0x2e0] sm:$0xf]  ;;  %v4912_v6 = vld [vmem:[%s7405_s2 + $0x2ec] sm:$0xf0]  ;;  %v3642_v7 = vor.u32 %v4880_v4, %v3641_v2  ;;  %v3518_v12 = vor.u32 %v4846_v9, %v3515_v10  ;;  %v4842_v20 = vld [vmem:[%s7405_s2 + $0xc4] sm:$0xf] }
   0x4   :  { %v3770_v8 = vor.u32 %v4912_v6, %v3769_v5  ;;  %v3497_v11 = vld [vmem:[%s7405_s2 + $0xc0] sm:$0xf]  ;;  %652 = vmatpush.bf16.msra.mxu0 %v3514_v3  ;;  %v4844_v13 = vld [vmem:[%s7405_s2 + $0xcc] sm:$0xf0]  ;;  %v3499_v22 = vld [vmem:[%s7405_s2 + $0xd0] sm:$0xf0] }
   0x5   :  { %v3625_v14 = vld [vmem:[%s7405_s2 + $0x1c0] sm:$0xf]  ;;  %v4876_v15 = vld [vmem:[%s7405_s2 + $0x1cc] sm:$0xf0]  ;;  %665 = vmatpush.bf16.msra.mxu1 %v3642_v7  ;;  %v3498_v16 = vor.u32 %v4844_v13, %v3497_v11  ;;  %691 = vmatpush.bf16.msra.mxu3 %v3518_v12  ;;  %v3502_v25 = vor.u32 %v4842_v20, %v3499_v22  ;;  %v4838_v31 = vld [vmem:[%s7405_s2 + $0xa4] sm:$0xf] }
   0x6   :  { %678 = vmatpush.bf16.msra.mxu2 %v3770_v8  ;;  %v3626_v17 = vor.u32 %v4876_v15, %v3625_v14  ;;  %v3753_v18 = vld [vmem:[%s7405_s2 + $0x2c0] sm:$0xf]  ;;  %v4908_v19 = vld [vmem:[%s7405_s2 + $0x2cc] sm:$0xf0]  ;;  %v3483_v32 = vld [vmem:[%s7405_s2 + $0xb0] sm:$0xf0] }
   0x7   :  { %v3754_v21 = vor.u32 %v4908_v19, %v3753_v18  ;;  %v3481_v23 = vld [vmem:[%s7405_s2 + $0xa0] sm:$0xf]  ;;  %v4840_v24 = vld [vmem:[%s7405_s2 + $0xac] sm:$0xf0]  ;;  %v3486_v38 = vor.u32 %v4838_v31, %v3483_v32  ;;  %v4834_v42 = vld [vmem:[%s7405_s2 + $0x84] sm:$0xf] }
   0x8   :  { %v3609_v26 = vld [vmem:[%s7405_s2 + $0x1a0] sm:$0xf]  ;;  %v4872_v27 = vld [vmem:[%s7405_s2 + $0x1ac] sm:$0xf0]  ;;  %653 = vmatpush.bf16.msra.mxu0 %v3498_v16  ;;  %v3482_v29 = vor.u32 %v4840_v24, %v3481_v23  ;;  %v3467_v43 = vld [vmem:[%s7405_s2 + $0x90] sm:$0xf0] }
   0x9   :  { %v3737_v28 = vld [vmem:[%s7405_s2 + $0x2a0] sm:$0xf]  ;;  %v4904_v30 = vld [vmem:[%s7405_s2 + $0x2ac] sm:$0xf0]  ;;  %666 = vmatpush.bf16.msra.mxu1 %v3626_v17  ;;  %v3610_v33 = vor.u32 %v4872_v27, %v3609_v26  ;;  %692 = vmatpush.bf16.msra.mxu3 %v3502_v25  ;;  %v3470_v50 = vor.u32 %v4834_v42, %v3467_v43  ;;  %v4830_v54 = vld [vmem:[%s7405_s2 + $0x64] sm:$0xf] }
   0xa   :  { %679 = vmatpush.bf16.msra.mxu2 %v3754_v21  ;;  %v3738_v34 = vor.u32 %v4904_v30, %v3737_v28  ;;  %v3465_v35 = vld [vmem:[%s7405_s2 + $0x80] sm:$0xf]  ;;  %v4836_v36 = vld [vmem:[%s7405_s2 + $0x8c] sm:$0xf0]  ;;  %v3451_v55 = vld [vmem:[%s7405_s2 + $0x70] sm:$0xf0] }
   0xb   :  { %v3593_v37 = vld [vmem:[%s7405_s2 + $0x180] sm:$0xf]  ;;  %v4868_v39 = vld [vmem:[%s7405_s2 + $0x18c] sm:$0xf0]  ;;  %v3466_v44 = vor.u32 %v4836_v36, %v3465_v35  ;;  %v3454_v62 = vor.u32 %v4830_v54, %v3451_v55  ;;  %v4826_v2 = vld [vmem:[%s7405_s2 + $0x44] sm:$0xf] }
   0xc   :  { %v3721_v40 = vld [vmem:[%s7405_s2 + $0x280] sm:$0xf]  ;;  %v4900_v41 = vld [vmem:[%s7405_s2 + $0x28c] sm:$0xf0]  ;;  %654 = vmatpush.bf16.msra.mxu0 %v3482_v29  ;;  %v3594_v45 = vor.u32 %v4868_v39, %v3593_v37  ;;  %v3435_v3 = vld [vmem:[%s7405_s2 + $0x50] sm:$0xf0] }
   0xd   :  { %667 = vmatpush.bf16.msra.mxu1 %v3610_v33  ;;  %v3722_v46 = vor.u32 %v4900_v41, %v3721_v40  ;;  %v3449_v47 = vld [vmem:[%s7405_s2 + $0x60] sm:$0xf]  ;;  %v4832_v48 = vld [vmem:[%s7405_s2 + $0x6c] sm:$0xf0]  ;;  %693 = vmatpush.bf16.msra.mxu3 %v3486_v38  ;;  %v3438_v10 = vor.u32 %v4826_v2, %v3435_v3  ;;  %v4822_v14 = vld [vmem:[%s7405_s2 + $0x24] sm:$0xf] }
   0xe   :  { %680 = vmatpush.bf16.msra.mxu2 %v3738_v34  ;;  %v3577_v49 = vld [vmem:[%s7405_s2 + $0x160] sm:$0xf]  ;;  %v4864_v51 = vld [vmem:[%s7405_s2 + $0x16c] sm:$0xf0]  ;;  %v3450_v56 = vor.u32 %v4832_v48, %v3449_v47  ;;  %v3419_v15 = vld [vmem:[%s7405_s2 + $0x30] sm:$0xf0] }
   0xf   :  { %v3705_v52 = vld [vmem:[%s7405_s2 + $0x260] sm:$0xf]  ;;  %v4896_v53 = vld [vmem:[%s7405_s2 + $0x26c] sm:$0xf0]  ;;  %v3578_v57 = vor.u32 %v4864_v51, %v3577_v49  ;;  %v3422_v24 = vor.u32 %v4822_v14, %v3419_v15  ;;  %v4818_v26 = vld [vmem:[%s7405_s2 + $0x4] sm:$0xf] }
  0x10   :  { %655 = vmatpush.bf16.msra.mxu0 %v3466_v44  ;;  %v3706_v58 = vor.u32 %v4896_v53, %v3705_v52  ;;  %v3433_v59 = vld [vmem:[%s7405_s2 + $0x40] sm:$0xf]  ;;  %v4828_v60 = vld [vmem:[%s7405_s2 + $0x4c] sm:$0xf0]  ;;  %v3403_v27 = vld [vmem:[%s7405_s2 + $0x10] sm:$0xf0] }
  0x11   :  { %668 = vmatpush.bf16.msra.mxu1 %v3594_v45  ;;  %v3561_v61 = vld [vmem:[%s7405_s2 + $0x140] sm:$0xf]  ;;  %694 = vmatpush.bf16.msra.mxu3 %v3470_v50  ;;  %v4860_v63 = vld [vmem:[%s7405_s2 + $0x14c] sm:$0xf0]  ;;  %v3434_v4 = vor.u32 %v4828_v60, %v3433_v59  ;;  %v4878_v28 = vld [vmem:[%s7405_s2 + $0x1e4] sm:$0xf]  ;;  %v3406_v39 = vor.u32 %v4818_v26, %v3403_v27 }
  0x12   :  { %681 = vmatpush.bf16.msra.mxu2 %v3722_v46  ;;  %v3689_v0 = vld [vmem:[%s7405_s2 + $0x240] sm:$0xf]  ;;  %v4892_v1 = vld [vmem:[%s7405_s2 + $0x24c] sm:$0xf0]  ;;  %v3562_v5 = vor.u32 %v4860_v63, %v3561_v61  ;;  %v3643_v29 = vld [vmem:[%s7405_s2 + $0x1f0] sm:$0xf0] }
  0x13   :  { %v3690_v6 = vor.u32 %v4892_v1, %v3689_v0  ;;  %v3417_v7 = vld [vmem:[%s7405_s2 + $0x20] sm:$0xf]  ;;  %v4824_v8 = vld [vmem:[%s7405_s2 + $0x2c] sm:$0xf0]  ;;  %v4910_v30 = vld [vmem:[%s7405_s2 + $0x2e4] sm:$0xf]  ;;  %v3646_v40 = vor.u32 %v4878_v28, %v3643_v29 }
  0x14   :  { %656 = vmatpush.bf16.msra.mxu0 %v3450_v56  ;;  %v3545_v9 = vld [vmem:[%s7405_s2 + $0x120] sm:$0xf]  ;;  %v4856_v11 = vld [vmem:[%s7405_s2 + $0x12c] sm:$0xf0]  ;;  %v3418_v16 = vor.u32 %v4824_v8, %v3417_v7  ;;  %v3771_v32 = vld [vmem:[%s7405_s2 + $0x2f0] sm:$0xf0] }
  0x15   :  { %669 = vmatpush.bf16.msra.mxu1 %v3578_v57  ;;  %695 = vmatpush.bf16.msra.mxu3 %v3454_v62  ;;  %v3673_v12 = vld [vmem:[%s7405_s2 + $0x220] sm:$0xf]  ;;  %v4888_v13 = vld [vmem:[%s7405_s2 + $0x22c] sm:$0xf0]  ;;  %v3546_v19 = vor.u32 %v4856_v11, %v3545_v9  ;;  %v3521_v33 = vld [vmem:[%s7405_s2 + $0xe8] sm:$0xf]  ;;  %v3774_v41 = vor.u32 %v4910_v30, %v3771_v32 }
  0x16   :  { %682 = vmatpush.bf16.msra.mxu2 %v3706_v58  ;;  %v3401_v17 = vld [vmem:[%s7405_s2] sm:$0xf]  ;;  %v4820_v18 = vld [vmem:[%s7405_s2 + $0xc] sm:$0xf0]  ;;  %v3674_v20 = vor.u32 %v4888_v13, %v3673_v12  ;;  %v4849_v34 = vld [vmem:[%s7405_s2 + $0xf4] sm:$0xf0] }
  0x17   :  { %v3529_v21 = vld [vmem:[%s7405_s2 + $0x100] sm:$0xf]  ;;  %v4852_v22 = vld [vmem:[%s7405_s2 + $0x10c] sm:$0xf0]  ;;  %v3402_v31 = vor.u32 %v4820_v18, %v3401_v17  ;;  %v3649_v37 = vld [vmem:[%s7405_s2 + $0x1e8] sm:$0xf]  ;;  %v3522_v42 = vor.u32 %v4849_v34, %v3521_v33 }
  0x18   :  { %657 = vmatpush.bf16.msra.mxu0 %v3434_v4  ;;  %v3657_v23 = vld [vmem:[%s7405_s2 + $0x200] sm:$0xf]  ;;  %v4884_v25 = vld [vmem:[%s7405_s2 + $0x20c] sm:$0xf0]  ;;  %v3530_v35 = vor.u32 %v4852_v22, %v3529_v21  ;;  %v4881_v38 = vld [vmem:[%s7405_s2 + $0x1f4] sm:$0xf0] }
  0x19   :  { %670 = vmatpush.bf16.msra.mxu1 %v3562_v5  ;;  %696 = vmatpush.bf16.msra.mxu3 %v3438_v10  ;;  %v3658_v36 = vor.u32 %v4884_v25, %v3657_v23  ;;  %v4874_v43 = vld [vmem:[%s7405_s2 + $0x1c4] sm:$0xf]  ;;  %v3627_v44 = vld [vmem:[%s7405_s2 + $0x1d0] sm:$0xf0]  ;;  %v3650_v46 = vor.u32 %v4881_v38, %v3649_v37  ;;  %v3505_v48 = vld [vmem:[%s7405_s2 + $0xc8] sm:$0xf] }
  0x1a   :  { %683 = vmatpush.bf16.msra.mxu2 %v3690_v6  ;;  %v4906_v45 = vld [vmem:[%s7405_s2 + $0x2c4] sm:$0xf]  ;;  %v3755_v47 = vld [vmem:[%s7405_s2 + $0x2d0] sm:$0xf0]  ;;  %v4845_v49 = vld [vmem:[%s7405_s2 + $0xd4] sm:$0xf0]  ;;  %v3630_v52 = vor.u32 %v4874_v43, %v3627_v44 }
  0x1b   :  { %v3633_v50 = vld [vmem:[%s7405_s2 + $0x1c8] sm:$0xf]  ;;  %v4877_v51 = vld [vmem:[%s7405_s2 + $0x1d4] sm:$0xf0]  ;;  %v4870_v53 = vld [vmem:[%s7405_s2 + $0x1a4] sm:$0xf]  ;;  %v3758_v54 = vor.u32 %v4906_v45, %v3755_v47  ;;  %v3506_v55 = vor.u32 %v4845_v49, %v3505_v48 }
  0x1c   :  { %658 = vmatpush.bf16.msra.mxu0 %v3418_v16  ;;  %v3611_v56 = vld [vmem:[%s7405_s2 + $0x1b0] sm:$0xf0]  ;;  %v4902_v57 = vld [vmem:[%s7405_s2 + $0x2a4] sm:$0xf]  ;;  %v3634_v59 = vor.u32 %v4877_v51, %v3633_v50  ;;  %v3489_v61 = vld [vmem:[%s7405_s2 + $0xa8] sm:$0xf] }
  0x1d   :  { %671 = vmatpush.bf16.msra.mxu1 %v3546_v19  ;;  %697 = vmatpush.bf16.msra.mxu3 %v3422_v24  ;;  %v149_v58 = vld [vmem:[%s7403_s0] sm:$0xff]  ;;  %v3739_v60 = vld [vmem:[%s7405_s2 + $0x2b0] sm:$0xf0]  ;;  %v4841_v62 = vld [vmem:[%s7405_s2 + $0xb4] sm:$0xf0]  ;;  %v3614_v3 = vor.u32 %v4870_v53, %v3611_v56 }
  0x1e   :  { %684 = vmatpush.bf16.msra.mxu2 %v3674_v20  ;;  %v163_v63 = vunpack.c.l.b16 %v149_v58  ;;  %v164_v0 = vunpack.c.h.b16 %v149_v58  ;;  %v3617_v1 = vld [vmem:[%s7405_s2 + $0x1a8] sm:$0xf]  ;;  %v4873_v2 = vld [vmem:[%s7405_s2 + $0x1b4] sm:$0xf0]  ;;  %v3742_v7 = vor.u32 %v4902_v57, %v3739_v60  ;;  %v3490_v8 = vor.u32 %v4841_v62, %v3489_v61  ;;  %v4866_v9 = vld [vmem:[%s7405_s2 + $0x184] sm:$0xf] }
  0x1f   :  { %v150_v6 = vld [vmem:[%s7403_s0 + $0x8] sm:$0xf]  ;;  %v3595_v10 = vld [vmem:[%s7405_s2 + $0x190] sm:$0xf0]  ;;  %v4898_v11 = vld [vmem:[%s7405_s2 + $0x284] sm:$0xf]  ;;  %v3618_v13 = vor.u32 %v4873_v2, %v3617_v1 }
  0x20   :  { %659 = vmatpush.bf16.msra.mxu0 %v3402_v31  ;;  %v5525_v4 = vpack.c.b16 %v163_v63, %v163_v63  ;;  %v5527_v5 = vpack.c.b16 %v164_v0, %v164_v0  ;;  %v165_v12 = vunpack.c.l.b16 %v150_v6  ;;  %v3723_v14 = vld [vmem:[%s7405_s2 + $0x290] sm:$0xf0]  ;;  %v3473_v15 = vld [vmem:[%s7405_s2 + $0x88] sm:$0xf]  ;;  %v4837_v16 = vld [vmem:[%s7405_s2 + $0x94] sm:$0xf0]  ;;  %v3598_v20 = vor.u32 %v4866_v9, %v3595_v10 }
  0x21   :  { %672 = vmatpush.bf16.msra.mxu1 %v3530_v35  ;;  %698 = vmatpush.bf16.msra.mxu3 %v3406_v39  ;;  %v3601_v17 = vld [vmem:[%s7405_s2 + $0x188] sm:$0xf]  ;;  %v4869_v18 = vld [vmem:[%s7405_s2 + $0x194] sm:$0xf0]  ;;  %v3726_v21 = vor.u32 %v4898_v11, %v3723_v14  ;;  %v3474_v22 = vor.u32 %v4837_v16, %v3473_v15  ;;  %v4862_v23 = vld [vmem:[%s7405_s2 + $0x164] sm:$0xf] }
  0x22   :  { %685 = vmatpush.bf16.msra.mxu2 %v3658_v36  ;;  %v5558_v19 = vpack.c.b16 %v165_v12, %v165_v12  ;;  %v3579_v24 = vld [vmem:[%s7405_s2 + $0x170] sm:$0xf0]  ;;  %v4894_v25 = vld [vmem:[%s7405_s2 + $0x264] sm:$0xf]  ;;  %v3602_v26 = vor.u32 %v4869_v18, %v3601_v17  ;;  %v3457_v28 = vld [vmem:[%s7405_s2 + $0x68] sm:$0xf] }
  0x23   :  { %660 = vmatmul.bf16.vlgmr.msra.gmra.mxu0 %v5525_v4  ;;  %v3707_v27 = vld [vmem:[%s7405_s2 + $0x270] sm:$0xf0]  ;;  %v4833_v29 = vld [vmem:[%s7405_s2 + $0x74] sm:$0xf0]  ;;  %v3585_v30 = vld [vmem:[%s7405_s2 + $0x168] sm:$0xf]  ;;  %v3582_v32 = vor.u32 %v4862_v23, %v3579_v24 }
  0x24   :  { %704 = vmatpush.bf16.msrb.mxu0 %v3646_v40  ;;  %673 = vmatmul.bf16.vlgmr.msra.gmra.mxu1 %v5527_v5  ;;  %v4865_v31 = vld [vmem:[%s7405_s2 + $0x174] sm:$0xf0]  ;;  %v3710_v33 = vor.u32 %v4894_v25, %v3707_v27  ;;  %v3458_v34 = vor.u32 %v4833_v29, %v3457_v28  ;;  %v4858_v35 = vld [vmem:[%s7405_s2 + $0x144] sm:$0xf]  ;;  %v3563_v36 = vld [vmem:[%s7405_s2 + $0x150] sm:$0xf0] }
  0x25   :  { %717 = vmatpush.bf16.msrb.mxu1 %v3774_v41  ;;  %743 = vmatpush.bf16.msrb.mxu3 %v3650_v46  ;;  %v4890_v37 = vld [vmem:[%s7405_s2 + $0x244] sm:$0xf]  ;;  %v3586_v38 = vor.u32 %v4865_v31, %v3585_v30  ;;  %v3691_v39 = vld [vmem:[%s7405_s2 + $0x250] sm:$0xf0]  ;;  %v3441_v40 = vld [vmem:[%s7405_s2 + $0x48] sm:$0xf]  ;;  %v3566_v44 = vor.u32 %v4858_v35, %v3563_v36 }
  0x26   :  { %730 = vmatpush.bf16.msrb.mxu2 %v3522_v42  ;;  %699 = vmatmul.bf16.vlgmr.msra.gmra.mxu3 %v5525_v4  ;;  %v4829_v41 = vld [vmem:[%s7405_s2 + $0x54] sm:$0xf0]  ;;  %v3569_v42 = vld [vmem:[%s7405_s2 + $0x148] sm:$0xf]  ;;  %v3694_v45 = vor.u32 %v4890_v37, %v3691_v39  ;;  %v4854_v47 = vld [vmem:[%s7405_s2 + $0x124] sm:$0xf] }
  0x27   :  { %686 = vmatmul.bf16.vlgmr.msra.gmra.mxu2 %v5558_v19  ;;  %v4861_v43 = vld [vmem:[%s7405_s2 + $0x154] sm:$0xf0]  ;;  %v3442_v46 = vor.u32 %v4829_v41, %v3441_v40  ;;  %v3547_v48 = vld [vmem:[%s7405_s2 + $0x130] sm:$0xf0]  ;;  %v4886_v49 = vld [vmem:[%s7405_s2 + $0x224] sm:$0xf] }
  0x28   :  { %705 = vmatpush.bf16.msrb.mxu0 %v3630_v52  ;;  %v3570_v50 = vor.u32 %v4861_v43, %v3569_v42  ;;  %v3675_v51 = vld [vmem:[%s7405_s2 + $0x230] sm:$0xf0]  ;;  %v3425_v52 = vld [vmem:[%s7405_s2 + $0x28] sm:$0xf]  ;;  %v4825_v53 = vld [vmem:[%s7405_s2 + $0x34] sm:$0xf0]  ;;  %v3550_v56 = vor.u32 %v4854_v47, %v3547_v48 }
  0x29   :  { %718 = vmatpush.bf16.msrb.mxu1 %v3758_v54  ;;  %744 = vmatpush.bf16.msrb.mxu3 %v3634_v59  ;;  %v3553_v54 = vld [vmem:[%s7405_s2 + $0x128] sm:$0xf]  ;;  %v4850_v57 = vld [vmem:[%s7405_s2 + $0x104] sm:$0xf]  ;;  %v3531_v58 = vld [vmem:[%s7405_s2 + $0x110] sm:$0xf0]  ;;  %v3678_v59 = vor.u32 %v4886_v49, %v3675_v51  ;;  %v3426_v60 = vor.u32 %v4825_v53, %v3425_v52 }
  0x2a   :  { %731 = vmatpush.bf16.msrb.mxu2 %v3506_v55  ;;  %v4857_v55 = vld [vmem:[%s7405_s2 + $0x134] sm:$0xf0]  ;;  %v4882_v61 = vld [vmem:[%s7405_s2 + $0x204] sm:$0xf]  ;;  %v3659_v62 = vld [vmem:[%s7405_s2 + $0x210] sm:$0xf0]  ;;  %v3534_v9 = vor.u32 %v4850_v57, %v3531_v58 }
  0x2b   :  { %v3409_v63 = vld [vmem:[%s7405_s2 + $0x8] sm:$0xf]  ;;  %v3554_v0 = vor.u32 %v4857_v55, %v3553_v54  ;;  %v4821_v1 = vld [vmem:[%s7405_s2 + $0x14] sm:$0xf0]  ;;  %v3523_v10 = vld [vmem:[%s7405_s2 + $0xf8] sm:$0xf0] }
  0x2c   :  { %706 = vmatpush.bf16.msrb.mxu0 %v3614_v3  ;;  %v3537_v2 = vld [vmem:[%s7405_s2 + $0x108] sm:$0xf]  ;;  %v4853_v3 = vld [vmem:[%s7405_s2 + $0x114] sm:$0xf0]  ;;  %v4879_v11 = vld [vmem:[%s7405_s2 + $0x1ec] sm:$0xf]  ;;  %v3410_v14 = vor.u32 %v4821_v1, %v3409_v63 }
  0x2d   :  { %719 = vmatpush.bf16.msrb.mxu1 %v3742_v7  ;;  %745 = vmatpush.bf16.msrb.mxu3 %v3618_v13  ;;  %v3777_v6 = vld [vmem:[%s7405_s2 + $0x2e8] sm:$0xf]  ;;  %v4913_v7 = vld [vmem:[%s7405_s2 + $0x2f4] sm:$0xf0]  ;;  %v3651_v12 = vld [vmem:[%s7405_s2 + $0x1f8] sm:$0xf0]  ;;  %v3662_v13 = vor.u32 %v4882_v61, %v3659_v62  ;;  %v3538_v17 = vor.u32 %v4853_v3, %v3537_v2 }
  0x2e   :  { %732 = vmatpush.bf16.msrb.mxu2 %v3490_v8  ;;  %v4847_v8 = vld [vmem:[%s7405_s2 + $0xec] sm:$0xf]  ;;  %v3779_v16 = vld [vmem:[%s7405_s2 + $0x2f8] sm:$0xf0]  ;;  %v3778_v18 = vor.u32 %v4913_v7, %v3777_v6  ;;  %v4909_v23 = vld [vmem:[%s7405_s2 + $0x2d4] sm:$0xf0] }
  0x2f   :  { %v4911_v15 = vld [vmem:[%s7405_s2 + $0x2ec] sm:$0xf]  ;;  %v3635_v28 = vld [vmem:[%s7405_s2 + $0x1d8] sm:$0xf0]  ;;  %v4905_v35 = vld [vmem:[%s7405_s2 + $0x2b4] sm:$0xf0] }
  0x30   :  { %707 = vmatpush.bf16.msrb.mxu0 %v3598_v20  ;;  %v3526_v20 = vor.u32 %v4847_v8, %v3523_v10  ;;  %v4843_v24 = vld [vmem:[%s7405_s2 + $0xcc] sm:$0xf]  ;;  %v3782_v25 = vor.u32 %v4911_v15, %v3779_v16  ;;  %v3763_v30 = vld [vmem:[%s7405_s2 + $0x2d8] sm:$0xf0]  ;;  %v4901_v47 = vld [vmem:[%s7405_s2 + $0x294] sm:$0xf0] }
  0x31   :  { %720 = vmatpush.bf16.msrb.mxu1 %v3726_v21  ;;  %746 = vmatpush.bf16.msrb.mxu3 %v3602_v26  ;;  %v3654_v21 = vor.u32 %v4879_v11, %v3651_v12  ;;  %v3507_v26 = vld [vmem:[%s7405_s2 + $0xd8] sm:$0xf0]  ;;  %v4875_v27 = vld [vmem:[%s7405_s2 + $0x1cc] sm:$0xf]  ;;  %v3713_v58 = vld [vmem:[%s7405_s2 + $0x268] sm:$0xf] }
  0x32   :  { %733 = vmatpush.bf16.msrb.mxu2 %v3474_v22  ;;  %v3761_v22 = vld [vmem:[%s7405_s2 + $0x2c8] sm:$0xf]  ;;  %v4907_v29 = vld [vmem:[%s7405_s2 + $0x2cc] sm:$0xf]  ;;  %v3619_v40 = vld [vmem:[%s7405_s2 + $0x1b8] sm:$0xf0] }
  0x33   :  { %v3762_v31 = vor.u32 %v4909_v23, %v3761_v22  ;;  %v4839_v36 = vld [vmem:[%s7405_s2 + $0xac] sm:$0xf]  ;;  %v3766_v37 = vor.u32 %v4907_v29, %v3763_v30  ;;  %v3747_v42 = vld [vmem:[%s7405_s2 + $0x2b8] sm:$0xf0]  ;;  %v3697_v8 = vld [vmem:[%s7405_s2 + $0x248] sm:$0xf] }
  0x34   :  { %708 = vmatpush.bf16.msrb.mxu0 %v3582_v32  ;;  %v3510_v32 = vor.u32 %v4843_v24, %v3507_v26  ;;  %v4871_v39 = vld [vmem:[%s7405_s2 + $0x1ac] sm:$0xf]  ;;  %v3603_v52 = vld [vmem:[%s7405_s2 + $0x198] sm:$0xf0] }
  0x35   :  { %721 = vmatpush.bf16.msrb.mxu1 %v3710_v33  ;;  %747 = vmatpush.bf16.msrb.mxu3 %v3586_v38  ;;  %v3638_v33 = vor.u32 %v4875_v27, %v3635_v28  ;;  %v3491_v38 = vld [vmem:[%s7405_s2 + $0xb8] sm:$0xf0]  ;;  %v4903_v41 = vld [vmem:[%s7405_s2 + $0x2ac] sm:$0xf] }
  0x36   :  { %734 = vmatpush.bf16.msrb.mxu2 %v3458_v34  ;;  %v3745_v34 = vld [vmem:[%s7405_s2 + $0x2a8] sm:$0xf]  ;;  %v4835_v48 = vld [vmem:[%s7405_s2 + $0x8c] sm:$0xf]  ;;  %v3750_v49 = vor.u32 %v4903_v41, %v3747_v42  ;;  %v3731_v54 = vld [vmem:[%s7405_s2 + $0x298] sm:$0xf0] }
  0x37   :  { %v3746_v43 = vor.u32 %v4905_v35, %v3745_v34  ;;  %v4867_v51 = vld [vmem:[%s7405_s2 + $0x18c] sm:$0xf]  ;;  %v3459_v62 = vld [vmem:[%s7405_s2 + $0x78] sm:$0xf0] }
  0x38   :  { %709 = vmatpush.bf16.msrb.mxu0 %v3566_v44  ;;  %v3494_v44 = vor.u32 %v4839_v36, %v3491_v38  ;;  %v4899_v53 = vld [vmem:[%s7405_s2 + $0x28c] sm:$0xf]  ;;  %v3606_v57 = vor.u32 %v4867_v51, %v3603_v52  ;;  %v3715_v2 = vld [vmem:[%s7405_s2 + $0x278] sm:$0xf0] }
  0x39   :  { %722 = vmatpush.bf16.msrb.mxu1 %v3694_v45  ;;  %748 = vmatpush.bf16.msrb.mxu3 %v3570_v50  ;;  %v3622_v45 = vor.u32 %v4871_v39, %v3619_v40  ;;  %v3475_v50 = vld [vmem:[%s7405_s2 + $0x98] sm:$0xf0]  ;;  %v3734_v61 = vor.u32 %v4899_v53, %v3731_v54  ;;  %v4863_v63 = vld [vmem:[%s7405_s2 + $0x16c] sm:$0xf] }
  0x3a   :  { %735 = vmatpush.bf16.msrb.mxu2 %v3442_v46  ;;  %v3729_v46 = vld [vmem:[%s7405_s2 + $0x288] sm:$0xf]  ;;  %v4895_v1 = vld [vmem:[%s7405_s2 + $0x26c] sm:$0xf]  ;;  %v3443_v12 = vld [vmem:[%s7405_s2 + $0x58] sm:$0xf0] }
  0x3b   :  { %v3730_v55 = vor.u32 %v4901_v47, %v3729_v46  ;;  %v4827_v10 = vld [vmem:[%s7405_s2 + $0x4c] sm:$0xf]  ;;  %v3718_v11 = vor.u32 %v4895_v1, %v3715_v2  ;;  %v3699_v16 = vld [vmem:[%s7405_s2 + $0x258] sm:$0xf0] }
  0x3c   :  { %710 = vmatpush.bf16.msrb.mxu0 %v3550_v56  ;;  %v3478_v56 = vor.u32 %v4835_v48, %v3475_v50  ;;  %v4891_v15 = vld [vmem:[%s7405_s2 + $0x24c] sm:$0xf] }
  0x3d   :  { %723 = vmatpush.bf16.msrb.mxu1 %v3678_v59  ;;  %749 = vmatpush.bf16.msrb.mxu3 %v3554_v0  ;;  %v4897_v59 = vld [vmem:[%s7405_s2 + $0x274] sm:$0xf0]  ;;  %v3587_v0 = vld [vmem:[%s7405_s2 + $0x178] sm:$0xf0] }
  0x3e   :  { %736 = vmatpush.bf16.msrb.mxu2 %v3426_v60  ;;  %v4831_v60 = vld [vmem:[%s7405_s2 + $0x6c] sm:$0xf]  ;;  %v3714_v3 = vor.u32 %v4897_v59, %v3713_v58  ;;  %v3590_v7 = vor.u32 %v4863_v63, %v3587_v0 }
  0x3f   :  { %v3462_v6 = vor.u32 %v4831_v60, %v3459_v62 }
  0x40   :  { %711 = vmatpush.bf16.msrb.mxu0 %v3534_v9  ;;  %v4893_v9 = vld [vmem:[%s7405_s2 + $0x254] sm:$0xf0] }
  0x41   :  { %724 = vmatpush.bf16.msrb.mxu1 %v3662_v13  ;;  %750 = vmatpush.bf16.msrb.mxu3 %v3538_v17  ;;  %v4859_v13 = vld [vmem:[%s7405_s2 + $0x14c] sm:$0xf] }
  0x42   :  { %737 = vmatpush.bf16.msrb.mxu2 %v3410_v14  ;;  %v3571_v14 = vld [vmem:[%s7405_s2 + $0x158] sm:$0xf0] }
  0x43   :  { %712 = vmatmul.bf16.vlgmr.msrb.gmra.mxu0 %v5527_v5 }
  0x44   :  { %756 = vmatpush.bf16.msra.mxu0 %v3778_v18  ;;  %725 = vmatmul.bf16.vlgmr.msrb.gmra.mxu1 %v5558_v19 }
  0x45   :  { %769 = vmatpush.bf16.msra.mxu1 %v3526_v20  ;;  %795 = vmatpush.bf16.msra.mxu3 %v3782_v25 }
  0x46   :  { %782 = vmatpush.bf16.msra.mxu2 %v3654_v21  ;;  %751 = vmatmul.bf16.vlgmr.msrb.gmra.mxu3 %v5527_v5 }
  0x47   :  { %738 = vmatmul.bf16.vlgmr.msrb.gmra.mxu2 %v5525_v4 }
  0x48   :  { %757 = vmatpush.bf16.msra.mxu0 %v3762_v31 }
  0x49   :  { %770 = vmatpush.bf16.msra.mxu1 %v3510_v32  ;;  %796 = vmatpush.bf16.msra.mxu3 %v3766_v37 }
  0x4a   :  { %783 = vmatpush.bf16.msra.mxu2 %v3638_v33 }
  0x4c   :  { %758 = vmatpush.bf16.msra.mxu0 %v3746_v43 }
  0x4d   :  { %771 = vmatpush.bf16.msra.mxu1 %v3494_v44  ;;  %797 = vmatpush.bf16.msra.mxu3 %v3750_v49 }
  0x4e   :  { %784 = vmatpush.bf16.msra.mxu2 %v3622_v45 }
  0x50   :  { %759 = vmatpush.bf16.msra.mxu0 %v3730_v55 }
  0x51   :  { %772 = vmatpush.bf16.msra.mxu1 %v3478_v56  ;;  %798 = vmatpush.bf16.msra.mxu3 %v3734_v61 }
  0x52   :  { %785 = vmatpush.bf16.msra.mxu2 %v3606_v57 }
  0x53   :  { %11 = vsyncpa [#allocation3], 0  ;;  %v3698_v17 = vor.u32 %v4893_v9, %v3697_v8  ;;  %v3446_v18 = vor.u32 %v4827_v10, %v3443_v12  ;;  %v3574_v20 = vor.u32 %v4859_v13, %v3571_v14  ;;  %v3681_v21 = vld [vmem:[%s7405_s2 + $0x228] sm:$0xf]  ;;  %v4889_v22 = vld [vmem:[%s7405_s2 + $0x234] sm:$0xf0]  ;;  %v3702_v24 = vor.u32 %v4891_v15, %v3699_v16 }
  0x54   :  { %760 = vmatpush.bf16.msra.mxu0 %v3714_v3  ;;  %v4823_v23 = vld [vmem:[%s7405_s2 + $0x2c] sm:$0xf]  ;;  %v3427_v25 = vld [vmem:[%s7405_s2 + $0x38] sm:$0xf0]  ;;  %v3682_v30 = vor.u32 %v4889_v22, %v3681_v21  ;;  %v3665_v31 = vld [vmem:[%s7405_s2 + $0x208] sm:$0xf] }
  0x55   :  { %773 = vmatpush.bf16.msra.mxu1 %v3462_v6  ;;  %799 = vmatpush.bf16.msra.mxu3 %v3718_v11  ;;  %v4855_v26 = vld [vmem:[%s7405_s2 + $0x12c] sm:$0xf]  ;;  %v3555_v27 = vld [vmem:[%s7405_s2 + $0x138] sm:$0xf0]  ;;  %v4885_v32 = vld [vmem:[%s7405_s2 + $0x214] sm:$0xf0]  ;;  %v3430_v33 = vor.u32 %v4823_v23, %v3427_v25 }
  0x56   :  { %786 = vmatpush.bf16.msra.mxu2 %v3590_v7  ;;  %v4887_v28 = vld [vmem:[%s7405_s2 + $0x22c] sm:$0xf]  ;;  %v3683_v29 = vld [vmem:[%s7405_s2 + $0x238] sm:$0xf0]  ;;  %v3558_v34 = vor.u32 %v4855_v26, %v3555_v27  ;;  %v3884_v42 = vld [vmem:[%s7405_s2 + $0x3c0] sm:$0xf]  ;;  %v3666_v45 = vor.u32 %v4885_v32, %v3665_v31 }
  0x57   :  { %v4819_v35 = vld [vmem:[%s7405_s2 + $0xc] sm:$0xf]  ;;  %v3411_v36 = vld [vmem:[%s7405_s2 + $0x18] sm:$0xf0]  ;;  %v3686_v38 = vor.u32 %v4887_v28, %v3683_v29  ;;  %v4940_v43 = vld [vmem:[%s7405_s2 + $0x3cc] sm:$0xf0] }
  0x58   :  { %761 = vmatpush.bf16.msra.mxu0 %v3698_v17  ;;  %v4851_v37 = vld [vmem:[%s7405_s2 + $0x10c] sm:$0xf]  ;;  %v3539_v39 = vld [vmem:[%s7405_s2 + $0x118] sm:$0xf0]  ;;  %v4938_v44 = vld [vmem:[%s7405_s2 + $0x3c4] sm:$0xf]  ;;  %v3414_v49 = vor.u32 %v4819_v35, %v3411_v36  ;;  %v3885_v54 = vor.u32 %v4940_v43, %v3884_v42 }
  0x59   :  { %774 = vmatpush.bf16.msra.mxu1 %v3446_v18  ;;  %800 = vmatpush.bf16.msra.mxu3 %v3702_v24  ;;  %v4883_v40 = vld [vmem:[%s7405_s2 + $0x20c] sm:$0xf]  ;;  %v3667_v41 = vld [vmem:[%s7405_s2 + $0x218] sm:$0xf0]  ;;  %v3886_v46 = vld [vmem:[%s7405_s2 + $0x3d0] sm:$0xf0]  ;;  %v3542_v50 = vor.u32 %v4851_v37, %v3539_v39 }
  0x5a   :  { %787 = vmatpush.bf16.msra.mxu2 %v3574_v20  ;;  %v3892_v47 = vld [vmem:[%s7405_s2 + $0x3c8] sm:$0xf]  ;;  %v4941_v48 = vld [vmem:[%s7405_s2 + $0x3d4] sm:$0xf0]  ;;  %v4939_v51 = vld [vmem:[%s7405_s2 + $0x3cc] sm:$0xf]  ;;  %v3670_v53 = vor.u32 %v4883_v40, %v3667_v41  ;;  %v3889_v55 = vor.u32 %v4938_v44, %v3886_v46 }
  0x5b   :  { %v3894_v52 = vld [vmem:[%s7405_s2 + $0x3d8] sm:$0xf0]  ;;  %v3893_v56 = vor.u32 %v4941_v48, %v3892_v47  ;;  %v3868_v57 = vld [vmem:[%s7405_s2 + $0x3a0] sm:$0xf]  ;;  %v4936_v58 = vld [vmem:[%s7405_s2 + $0x3ac] sm:$0xf0] }
  0x5c   :  { %762 = vmatpush.bf16.msra.mxu0 %v3682_v30  ;;  %v4934_v59 = vld [vmem:[%s7405_s2 + $0x3a4] sm:$0xf]  ;;  %v3897_v60 = vor.u32 %v4939_v51, %v3894_v52  ;;  %v3870_v61 = vld [vmem:[%s7405_s2 + $0x3b0] sm:$0xf0]  ;;  %v3876_v62 = vld [vmem:[%s7405_s2 + $0x3a8] sm:$0xf]  ;;  %v3869_v2 = vor.u32 %v4936_v58, %v3868_v57 }
  0x5d   :  { %775 = vmatpush.bf16.msra.mxu1 %v3430_v33  ;;  %801 = vmatpush.bf16.msra.mxu3 %v3686_v38  ;;  %v4937_v63 = vld [vmem:[%s7405_s2 + $0x3b4] sm:$0xf0]  ;;  %v4935_v0 = vld [vmem:[%s7405_s2 + $0x3ac] sm:$0xf]  ;;  %v3878_v1 = vld [vmem:[%s7405_s2 + $0x3b8] sm:$0xf0]  ;;  %v3873_v3 = vor.u32 %v4934_v59, %v3870_v61 }
  0x5e   :  { %788 = vmatpush.bf16.msra.mxu2 %v3558_v34  ;;  %v3877_v6 = vor.u32 %v4937_v63, %v3876_v62  ;;  %v3852_v7 = vld [vmem:[%s7405_s2 + $0x380] sm:$0xf]  ;;  %v4932_v8 = vld [vmem:[%s7405_s2 + $0x38c] sm:$0xf0]  ;;  %v4930_v9 = vld [vmem:[%s7405_s2 + $0x384] sm:$0xf]  ;;  %v3881_v10 = vor.u32 %v4935_v0, %v3878_v1 }
  0x5f   :  { %v3854_v11 = vld [vmem:[%s7405_s2 + $0x390] sm:$0xf0]  ;;  %v3860_v12 = vld [vmem:[%s7405_s2 + $0x388] sm:$0xf]  ;;  %v4933_v13 = vld [vmem:[%s7405_s2 + $0x394] sm:$0xf0]  ;;  %v3853_v16 = vor.u32 %v4932_v8, %v3852_v7 }
  0x60   :  { %763 = vmatpush.bf16.msra.mxu0 %v3666_v45  ;;  %v4931_v14 = vld [vmem:[%s7405_s2 + $0x38c] sm:$0xf]  ;;  %v3862_v15 = vld [vmem:[%s7405_s2 + $0x398] sm:$0xf0]  ;;  %v3857_v17 = vor.u32 %v4930_v9, %v3854_v11  ;;  %v3861_v18 = vor.u32 %v4933_v13, %v3860_v12  ;;  %v4926_v20 = vld [vmem:[%s7405_s2 + $0x364] sm:$0xf] }
  0x61   :  { %776 = vmatpush.bf16.msra.mxu1 %v3414_v49  ;;  %802 = vmatpush.bf16.msra.mxu3 %v3670_v53  ;;  %v3865_v21 = vor.u32 %v4931_v14, %v3862_v15  ;;  %v3844_v22 = vld [vmem:[%s7405_s2 + $0x368] sm:$0xf]  ;;  %v4929_v23 = vld [vmem:[%s7405_s2 + $0x374] sm:$0xf0]  ;;  %v4927_v24 = vld [vmem:[%s7405_s2 + $0x36c] sm:$0xf] }
  0x62   :  { %789 = vmatpush.bf16.msra.mxu2 %v3542_v50  ;;  %v3846_v25 = vld [vmem:[%s7405_s2 + $0x378] sm:$0xf0]  ;;  %v3845_v28 = vor.u32 %v4929_v23, %v3844_v22  ;;  %v3820_v29 = vld [vmem:[%s7405_s2 + $0x340] sm:$0xf]  ;;  %v4924_v30 = vld [vmem:[%s7405_s2 + $0x34c] sm:$0xf0] }
  0x63   :  { %764 = vmatmul.bf16.vlgmr.msra.gmra.mxu0 %v5558_v19  ;;  %v4922_v31 = vld [vmem:[%s7405_s2 + $0x344] sm:$0xf]  ;;  %v3849_v32 = vor.u32 %v4927_v24, %v3846_v25  ;;  %v3822_v33 = vld [vmem:[%s7405_s2 + $0x350] sm:$0xf0]  ;;  %v3828_v34 = vld [vmem:[%s7405_s2 + $0x348] sm:$0xf]  ;;  %v3821_v38 = vor.u32 %v4924_v30, %v3820_v29 }
  0x64   :  { %1040 = vmatpush.bf16.msrb.mxu0 %v3885_v54  ;;  %803 = vmatmul.bf16.vlgmr.msra.gmra.mxu3 %v5558_v19  ;;  %v4928_v19 = vld [vmem:[%s7405_s2 + $0x36c] sm:$0xf0]  ;;  %v4925_v35 = vld [vmem:[%s7405_s2 + $0x354] sm:$0xf0]  ;;  %v4923_v36 = vld [vmem:[%s7405_s2 + $0x34c] sm:$0xf]  ;;  %v3825_v39 = vor.u32 %v4922_v31, %v3822_v33 }
  0x65   :  { %1053 = vmatpush.bf16.msrb.mxu1 %v3889_v55  ;;  %1079 = vmatpush.bf16.msrb.mxu3 %v3897_v60  ;;  %v3830_v37 = vld [vmem:[%s7405_s2 + $0x358] sm:$0xf0]  ;;  %v3829_v40 = vor.u32 %v4925_v35, %v3828_v34  ;;  %v3804_v41 = vld [vmem:[%s7405_s2 + $0x320] sm:$0xf]  ;;  %v4920_v42 = vld [vmem:[%s7405_s2 + $0x32c] sm:$0xf0] }
  0x66   :  { %1066 = vmatpush.bf16.msrb.mxu2 %v3893_v56  ;;  %777 = vmatmul.bf16.vlgmr.msra.gmra.mxu1 %v5525_v4  ;;  %v3838_v4 = vld [vmem:[%s7405_s2 + $0x370] sm:$0xf0]  ;;  %v4918_v43 = vld [vmem:[%s7405_s2 + $0x324] sm:$0xf]  ;;  %v3833_v44 = vor.u32 %v4923_v36, %v3830_v37  ;;  %v3812_v46 = vld [vmem:[%s7405_s2 + $0x328] sm:$0xf]  ;;  %v3805_v50 = vor.u32 %v4920_v42, %v3804_v41 }
  0x67   :  { %790 = vmatmul.bf16.vlgmr.msra.gmra.mxu2 %v5527_v5  ;;  %v3836_v5 = vld [vmem:[%s7405_s2 + $0x360] sm:$0xf]  ;;  %v3841_v27 = vor.u32 %v4926_v20, %v3838_v4  ;;  %v3806_v45 = vld [vmem:[%s7405_s2 + $0x330] sm:$0xf0]  ;;  %v4921_v47 = vld [vmem:[%s7405_s2 + $0x334] sm:$0xf0] }
  0x68   :  { %1041 = vmatpush.bf16.msrb.mxu0 %v3869_v2  ;;  %v3837_v26 = vor.u32 %v4928_v19, %v3836_v5  ;;  %v4919_v48 = vld [vmem:[%s7405_s2 + $0x32c] sm:$0xf]  ;;  %v3814_v49 = vld [vmem:[%s7405_s2 + $0x338] sm:$0xf0]  ;;  %v3809_v51 = vor.u32 %v4918_v43, %v3806_v45  ;;  %v3813_v52 = vor.u32 %v4921_v47, %v3812_v46  ;;  %v3788_v53 = vld [vmem:[%s7405_s2 + $0x300] sm:$0xf] }
  0x69   :  { %1054 = vmatpush.bf16.msrb.mxu1 %v3873_v3  ;;  %1080 = vmatpush.bf16.msrb.mxu3 %v3881_v10  ;;  %v4916_v54 = vld [vmem:[%s7405_s2 + $0x30c] sm:$0xf0]  ;;  %v4914_v55 = vld [vmem:[%s7405_s2 + $0x304] sm:$0xf]  ;;  %v3817_v56 = vor.u32 %v4919_v48, %v3814_v49  ;;  %v3790_v57 = vld [vmem:[%s7405_s2 + $0x310] sm:$0xf0] }
  0x6a   :  { %1067 = vmatpush.bf16.msrb.mxu2 %v3877_v6  ;;  %v3796_v58 = vld [vmem:[%s7405_s2 + $0x308] sm:$0xf]  ;;  %v4917_v59 = vld [vmem:[%s7405_s2 + $0x314] sm:$0xf0]  ;;  %v4915_v60 = vld [vmem:[%s7405_s2 + $0x30c] sm:$0xf]  ;;  %v3789_v62 = vor.u32 %v4916_v54, %v3788_v53  ;;  %v3793_v63 = vor.u32 %v4914_v55, %v3790_v57 }
  0x6b   :  { %v3798_v61 = vld [vmem:[%s7405_s2 + $0x318] sm:$0xf0]  ;;  %v3797_v0 = vor.u32 %v4917_v59, %v3796_v58  ;;  %v883_v2 = vld [vmem:[%s7404_s1] sm:$0xf]  ;;  %vm1035_vm0 = vcmask 916480   ;;  %vm814_vm1 = vcmask 130048  }
  0x6c   :  { %1042 = vmatpush.bf16.msrb.mxu0 %v3853_v16  ;;  %v3801_v1 = vor.u32 %v4915_v60, %v3798_v61  ;;  %v151_v20 = vld [vmem:[%s7408_s5] ss:$8 sm:$0xf]  ;;  %v3785_v48 = vld [vmem:[%s7408_s5 + $0x3] ss:$8 sm:$0xf] }
  0x6d   :  { %1055 = vmatpush.bf16.msrb.mxu1 %v3857_v17  ;;  %1081 = vmatpush.bf16.msrb.mxu3 %v3865_v21  ;;  %v153_v21 = vperm.slane %v151_v20, 0  ;;  %v154_v4 = vperm.slane %v151_v20, 1  ;;  %v155_v22 = vperm.slane %v151_v20, 2  ;;  %v887_v49 = vperm.slane %v3785_v48, 0  ;;  %s5222_s0 = smov [#allocation2]   ;;  %s3390_s17 = sshll.u32 %s7409_s6, 4  ;;  %s3391_s17 = int_to_ptr.hbm [resolvable:$true] %s3390_s17 }
  0x6e   :  { %1068 = vmatpush.bf16.msrb.mxu2 %v3861_v18  ;;  %v889_v55 = vperm.slane %v3785_v48, 2  ;;  %vm1192_vm9 = vcmask 7168   ;;  %vm3233_vm14 = vcmask 261120   ;;  %vm3335_vm15 = vcmask 523264   ;;  %s3388_s15 = sshll.u32 %s5222_s0, 4  ;;  %s3389_s15 = int_to_ptr.vmem [resolvable:$true] %s3388_s15 }
  0x70   :  { %1043 = vmatpush.bf16.msrb.mxu0 %v3837_v26 }
  0x71   :  { %1056 = vmatpush.bf16.msrb.mxu1 %v3841_v27  ;;  %1082 = vmatpush.bf16.msrb.mxu3 %v3849_v32  ;;  %v156_v27 = vperm.slane %v151_v20, 3 }
  0x72   :  { %1069 = vmatpush.bf16.msrb.mxu2 %v3845_v28 }
  0x74   :  { %1044 = vmatpush.bf16.msrb.mxu0 %v3821_v38 }
  0x75   :  { %1057 = vmatpush.bf16.msrb.mxu1 %v3825_v39  ;;  %1083 = vmatpush.bf16.msrb.mxu3 %v3833_v44 }
  0x76   :  { %1070 = vmatpush.bf16.msrb.mxu2 %v3829_v40 }
  0x78   :  { %1045 = vmatpush.bf16.msrb.mxu0 %v3805_v50  ;;  %v888_v50 = vperm.slane %v3785_v48, 1 }
  0x79   :  { %1058 = vmatpush.bf16.msrb.mxu1 %v3809_v51  ;;  %1084 = vmatpush.bf16.msrb.mxu3 %v3817_v56  ;;  %v890_v56 = vperm.slane %v3785_v48, 3 }
  0x7a   :  { %1071 = vmatpush.bf16.msrb.mxu2 %v3813_v52 }
  0x7c   :  { %1046 = vmatpush.bf16.msrb.mxu0 %v3789_v62 }
  0x7d   :  { %1059 = vmatpush.bf16.msrb.mxu1 %v3793_v63  ;;  %1085 = vmatpush.bf16.msrb.mxu3 %v3801_v1 }
  0x7e   :  { %1072 = vmatpush.bf16.msrb.mxu2 %v3797_v0 }
  0x7f   :  { %3898 = vmatmul.msk.bf16.vlgmr.msrb.gmra.mxu0 %vm1035_vm0, %v883_v2 }
  0x80   :  { %3899 = vmatmul.msk.bf16.vlgmr.msrb.gmra.mxu1 %vm1035_vm0, %v883_v2  ;;  %3901 = vmatmul.msk.bf16.vlgmr.msrb.gmra.mxu3 %vm1035_vm0, %v883_v2 }
  0x81   :  { %3900 = vmatmul.msk.bf16.vlgmr.msrb.gmra.mxu2 %vm1035_vm0, %v883_v2 }
  0xa0   :  { %v661_v3 = vpop.f32.mrf.mxu0 }
  0xa1   :  { %v674_v6 = vpop.f32.mrf.mxu1  ;;  %v662_v23 = vadd.f32 %v661_v3, %v153_v21 }
  0xa3   :  { %v675_v28 = vadd.f32 %v674_v6, %v662_v23 }
  0xa8   :  { %v663_v8 = vpop.f32.mrf.mxu0 }
  0xa9   :  { %v700_v7 = vpop.f32.mrf.mxu3  ;;  %v676_v9 = vpop.f32.mrf.mxu1 }
  0xaa   :  { %v687_v10 = vpop.f32.mrf.mxu2  ;;  %v701_v24 = vadd.f32 %v700_v7, %v154_v4  ;;  %v5219_v7 = vmov 400.0  }
  0xab   :  { %v688_v33 = vadd.f32 %v687_v10, %v675_v28  ;;  %5176 = vrcp.f32 %v5219_v7 }
  0xb1   :  { %v702_v11 = vpop.f32.mrf.mxu3  ;;  %v5177_v8 = vpop.eup %5176 }
  0xb2   :  { %v689_v12 = vpop.f32.mrf.mxu2  ;;  %v820_v9 = vmul.f32 400.0, %v5177_v8  ;;  %vm824_vm2 = vweird.f32 %v5177_v8 }
  0xb4   :  { %v821_v10 = vsub.f32 1.0, %v820_v9 }
  0xb6   :  { %v822_v11 = vmul.f32 %v5177_v8, %v821_v10 }
  0xb8   :  { %v823_v12 = vadd.f32 %v5177_v8, %v822_v11 }
  0xc0   :  { %v713_v13 = vpop.f32.mrf.mxu0 }
  0xc1   :  { %v726_v14 = vpop.f32.mrf.mxu1  ;;  %v714_v29 = vadd.f32 %v713_v13, %v701_v24  ;;  %v6037_v13 = vsel %vm824_vm2, %v5177_v8, %v823_v12 }
  0xc3   :  { %v727_v34 = vadd.f32 %v726_v14, %v714_v29 }
  0xc5   :  { %v812_v40 = vadd.f32 %v727_v34, %v688_v33 }
  0xc8   :  { %v715_v16 = vpop.f32.mrf.mxu0 }
  0xc9   :  { %v752_v17 = vpop.f32.mrf.mxu3  ;;  %v728_v18 = vpop.f32.mrf.mxu1 }
  0xca   :  { %v739_v15 = vpop.f32.mrf.mxu2 }
  0xcb   :  { %v740_v25 = vadd.f32 %v739_v15, %v155_v22 }
  0xcd   :  { %v753_v31 = vadd.f32 %v752_v17, %v740_v25 }
  0xd1   :  { %v754_v19 = vpop.f32.mrf.mxu3 }
  0xd2   :  { %v741_v5 = vpop.f32.mrf.mxu2 }
  0xe0   :  { %v765_v26 = vpop.f32.mrf.mxu0 }
  0xe1   :  { %v766_v35 = vadd.f32 %v765_v26, %v753_v31 }
  0xe3   :  { %v778_v30 = vpop.f32.mrf.mxu1  ;;  %v813_v43 = vadd.f32 %v812_v40, %v766_v35 }
  0xe4   :  { %v779_v32 = vadd.f32 %v778_v30, %v156_v27 }
  0xe7   :  { %v804_v37 = vpop.f32.mrf.mxu3 }
  0xe8   :  { %v767_v39 = vpop.f32.mrf.mxu0 }
  0xea   :  { %v791_v36 = vpop.f32.mrf.mxu2 }
  0xeb   :  { %v792_v38 = vadd.f32 %v791_v36, %v779_v32  ;;  %v780_v42 = vpop.f32.mrf.mxu1 }
  0xed   :  { %v805_v41 = vadd.f32 %v804_v37, %v792_v38 }
  0xef   :  { %v815_v44 = vsel %vm814_vm1, %v805_v41, 0.0  ;;  %v806_v47 = vpop.f32.mrf.mxu3 }
  0xf0   :  { %v816_v45 = vadd.f32 %v815_v44, %v813_v43  ;;  %v3783_v47 = vld [vmem:[%s7408_s5 + $0x1] ss:$8 sm:$0xf] }
  0xf2   :  { %817 = vadd.xlane.f32.xlu0 %v816_v45  ;;  %v793_v46 = vpop.f32.mrf.mxu2 }
  0xfc   :  { %v1048_v51 = vpop.f32.mrf.mxu0 }
  0xfd   :  { %v1061_v52 = vpop.f32.mrf.mxu1  ;;  %v1049_v53 = vadd.f32 %v1048_v51, %v887_v49  ;;  %v3784_v49 = vld [vmem:[%s7408_s5 + $0x2] ss:$8 sm:$0xf]  ;;  %v858_v51 = vperm.slane %v3783_v47, 0 }
  0xfe   :  { %v1062_v54 = vadd.f32 %v1061_v52, %v888_v50  ;;  %v859_v52 = vperm.slane %v3783_v47, 1 }
 0x100   :  { %v1095_v57 = vadd.f32 %v1062_v54, %v1049_v53 }
 0x103   :  { %v1087_v60 = vpop.f32.mrf.mxu3 }
 0x104   :  { %v1074_v58 = vpop.f32.mrf.mxu2  ;;  %v1050_v61 = vpop.f32.mrf.mxu0  ;;  %v1088_v62 = vadd.f32 %v1087_v60, %v890_v56 }
 0x105   :  { %v1075_v59 = vadd.f32 %v1074_v58, %v889_v55  ;;  %v1063_v63 = vpop.f32.mrf.mxu1  ;;  %v6069_v55 = vld [vmem:[%s7408_s5 + $0x6] ss:$8 sm:$0xf]  ;;  %v872_v58 = vperm.slane %v3784_v49, 1 }
 0x106   :  { %v1097_v1 = vsel %vm814_vm1, %v1088_v62, 0.0  ;;  %v1164_v11 = vperm.slane %v6069_v55, 2  ;;  %v1165_v12 = vperm.slane %v6069_v55, 3 }
 0x107   :  { %v1096_v0 = vadd.f32 %v1095_v57, %v1075_v59  ;;  %v871_v57 = vperm.slane %v3784_v49, 0 }
 0x109   :  { %v1098_v2 = vadd.f32 %v1097_v1, %v1096_v0  ;;  %v874_v1 = vperm.slane %v3784_v49, 3 }
 0x10b   :  { %1099 = vadd.xlane.f32.xlu0 %v1098_v2  ;;  %v1089_v6 = vpop.f32.mrf.mxu3  ;;  %v1162_v2 = vperm.slane %v6069_v55, 0 }
 0x10c   :  { %v1076_v3 = vpop.f32.mrf.mxu2 }
 0x10d   :  { %v1163_v3 = vperm.slane %v6069_v55, 1 }
 0x165   :  { %v818_v14 = vpop.xlane.xlu0 %817 }
 0x166   :  { %v826_v15 = vmul.f32 %v6037_v13, %v818_v14 }
 0x168   :  { %v827_v16 = vsub.f32 %v688_v33, %v826_v15  ;;  %v828_v17 = vsub.f32 %v727_v34, %v826_v15  ;;  %v829_v18 = vsub.f32 %v766_v35, %v826_v15  ;;  %v830_v5 = vsub.f32 %v805_v41, %v826_v15 }
 0x16a   :  { %v831_v19 = vmul.f32 %v827_v16, %v827_v16  ;;  %v832_v20 = vmul.f32 %v828_v17, %v828_v17  ;;  %v834_v21 = vmul.f32 %v830_v5, %v830_v5  ;;  %v833_v4 = vmul.f32 %v829_v18, %v829_v18 }
 0x16c   :  { %v835_v22 = vadd.f32 %v832_v20, %v831_v19  ;;  %v837_v24 = vsel %vm814_vm1, %v834_v21, 0.0 }
 0x16e   :  { %v836_v23 = vadd.f32 %v835_v22, %v833_v4 }
 0x170   :  { %v838_v25 = vadd.f32 %v837_v24, %v836_v23 }
 0x172   :  { %839 = vadd.xlane.f32.xlu1 %v838_v25 }
 0x17e   :  { %v1100_v26 = vpop.xlane.xlu0 %1099 }
 0x17f   :  { %v1101_v27 = vmul.f32 %v1100_v26, %v6037_v13 }
 0x181   :  { %v6042_v28 = vsub.f32 %v1049_v53, %v1101_v27  ;;  %v6044_v29 = vsub.f32 %v1062_v54, %v1101_v27  ;;  %v6046_v30 = vsub.f32 %v1075_v59, %v1101_v27  ;;  %v6048_v31 = vsub.f32 %v1088_v62, %v1101_v27 }
 0x182   :  { %v860_v53 = vperm.slane %v3783_v47, 2  ;;  %v861_v54 = vperm.slane %v3783_v47, 3  ;;  %v873_v59 = vperm.slane %v3784_v49, 2 }
 0x183   :  { %v1106_v32 = vmul.f32 %v6042_v28, %v6042_v28  ;;  %v1107_v33 = vmul.f32 %v6044_v29, %v6044_v29  ;;  %v1109_v34 = vmul.f32 %v6048_v31, %v6048_v31  ;;  %v1108_v35 = vmul.f32 %v6046_v30, %v6046_v30 }
 0x185   :  { %v1110_v36 = vadd.f32 %v1107_v33, %v1106_v32  ;;  %v1112_v38 = vsel %vm814_vm1, %v1109_v34, 0.0  ;;  %v3902_v32 = vld [vmem:[%s7408_s5 + $0x4] ss:$8 sm:$0xf] }
 0x186   :  { %v3903_v34 = vld [vmem:[%s7408_s5 + $0x5] ss:$8 sm:$0xf] }
 0x187   :  { %v1111_v37 = vadd.f32 %v1110_v36, %v1108_v35  ;;  %v1133_v36 = vperm.slane %v3902_v32, 0 }
 0x189   :  { %v1113_v39 = vadd.f32 %v1112_v38, %v1111_v37  ;;  %v1134_v37 = vperm.slane %v3902_v32, 1  ;;  %v1135_v38 = vperm.slane %v3902_v32, 2 }
 0x18b   :  { %1114 = vadd.xlane.f32.xlu1 %v1113_v39  ;;  %v1136_v39 = vperm.slane %v3902_v32, 3 }
 0x1e5   :  { %v840_v40 = vpop.xlane.xlu1 %839 }
 0x1e6   :  { %v841_v41 = vmul.f32 %v840_v40, %v6037_v13  ;;  %v1146_v40 = vperm.slane %v3903_v34, 0 }
 0x1e8   :  { %v842_v42 = vadd.f32 1e-05, %v841_v41 }
 0x1ea   :  { %5178 = vrsqrt.f32 %v842_v42  ;;  %vm849_vm4 = vweird.f32 %v842_v42 }
 0x1f0   :  { %v5179_v43 = vpop.eup %5178 }
 0x1f1   :  { %v844_v44 = vmul.f32 %v5179_v43, %v842_v42  ;;  %vm850_vm3 = vweird.f32 %v5179_v43  ;;  %v1147_v42 = vperm.slane %v3903_v34, 1 }
 0x1f2   :  { %vm851_vm5 = vmor %vm849_vm4, %vm850_vm3  ;;  %vm3381_vm3 = vcmask 57344  }
 0x1f3   :  { %v845_v45 = vmul.f32 %v5179_v43, %v844_v44  ;;  %v1149_v44 = vperm.slane %v3903_v34, 3 }
 0x1f5   :  { %v846_v46 = vmul.f32 0.5, %v845_v45 }
 0x1f7   :  { %v847_v48 = vsub.f32 1.5, %v846_v46 }
 0x1f9   :  { %v848_v50 = vmul.f32 %v5179_v43, %v847_v48 }
 0x1fb   :  { %v852_v56 = vsel %vm851_vm5, %v5179_v43, %v848_v50  ;;  %v1148_v43 = vperm.slane %v3903_v34, 2 }
 0x1fc   :  { %v853_v60 = vmul.f32 %v852_v56, %v827_v16  ;;  %v854_v61 = vmul.f32 %v852_v56, %v828_v17  ;;  %v855_v62 = vmul.f32 %v852_v56, %v829_v18  ;;  %v856_v63 = vmul.f32 %v852_v56, %v830_v5 }
 0x1fe   :  { %v1115_v0 = vpop.xlane.xlu1 %1114  ;;  %v866_v7 = vmul.f32 %v858_v51, %v853_v60  ;;  %v867_v8 = vmul.f32 %v859_v52, %v854_v61  ;;  %v868_v9 = vmul.f32 %v860_v53, %v855_v62  ;;  %v869_v10 = vmul.f32 %v861_v54, %v856_v63  ;;  %v1160_v61 = vld [vmem:[%s7408_s5 + $0x3a] ss:$0 sm:$0xff] }
 0x1ff   :  { %v1116_v6 = vmul.f32 %v1115_v0, %v6037_v13 }
 0x200   :  { %v6076_v15 = vadd.f32 %v871_v57, %v866_v7  ;;  %v6078_v16 = vadd.f32 %v872_v58, %v867_v8  ;;  %v6080_v17 = vadd.f32 %v873_v59, %v868_v9  ;;  %v6082_v18 = vadd.f32 %v874_v1, %v869_v10 }
 0x201   :  { %v1117_v14 = vadd.f32 1e-05, %v1116_v6 }
 0x202   :  { %v1170_v13 = vmul.f32 %v1162_v2, %v6076_v15  ;;  %v1171_v5 = vmul.f32 %v1163_v3, %v6078_v16  ;;  %v1173_v19 = vmul.f32 %v1165_v12, %v6082_v18  ;;  %v1172_v20 = vmul.f32 %v1164_v11, %v6080_v17 }
 0x203   :  { %5180 = vrsqrt.f32 %v1117_v14  ;;  %vm1124_vm7 = vweird.f32 %v1117_v14 }
 0x204   :  { %v1174_v21 = vadd.f32 %v1171_v5, %v1170_v13  ;;  %v1176_v22 = vsel %vm814_vm1, %v1173_v19, 0.0 }
 0x206   :  { %v1175_v4 = vadd.f32 %v1174_v21, %v1172_v20 }
 0x208   :  { %v1177_v24 = vadd.f32 %v1176_v22, %v1175_v4 }
 0x209   :  { %v5181_v23 = vpop.eup %5180 }
 0x20a   :  { %v1119_v25 = vmul.f32 %v5181_v23, %v1117_v14  ;;  %1178 = vadd.xlane.f32.xlu2 %v1177_v24  ;;  %vm1125_vm6 = vweird.f32 %v5181_v23 }
 0x20b   :  { %vm1126_vm8 = vmor %vm1124_vm7, %vm1125_vm6 }
 0x20c   :  { %v1120_v26 = vmul.f32 %v5181_v23, %v1119_v25 }
 0x20e   :  { %v1121_v27 = vmul.f32 0.5, %v1120_v26 }
 0x210   :  { %v1122_v33 = vsub.f32 1.5, %v1121_v27 }
 0x212   :  { %v1123_v35 = vmul.f32 %v5181_v23, %v1122_v33 }
 0x214   :  { %v1127_v41 = vsel %vm1126_vm8, %v5181_v23, %v1123_v35 }
 0x215   :  { %v1128_v45 = vmul.f32 %v1127_v41, %v6042_v28  ;;  %v1129_v46 = vmul.f32 %v1127_v41, %v6044_v29  ;;  %v1130_v47 = vmul.f32 %v1127_v41, %v6046_v30  ;;  %v1131_v48 = vmul.f32 %v1127_v41, %v6048_v31 }
 0x217   :  { %v1141_v49 = vmul.f32 %v1133_v36, %v1128_v45  ;;  %v1142_v50 = vmul.f32 %v1134_v37, %v1129_v46  ;;  %v1143_v51 = vmul.f32 %v1135_v38, %v1130_v47  ;;  %v1144_v52 = vmul.f32 %v1136_v39, %v1131_v48  ;;  %v4105_v47 = vld [vmem:[%s7406_s3 + $0x188] sm:$0xf]  ;;  %v4994_v48 = vld [vmem:[%s7406_s3 + $0x1a0] sm:$0xf0] }
 0x219   :  { %v6099_v53 = vadd.f32 %v1146_v40, %v1141_v49  ;;  %v6101_v54 = vadd.f32 %v1147_v42, %v1142_v50  ;;  %v6103_v55 = vadd.f32 %v1148_v43, %v1143_v51  ;;  %v6105_v56 = vadd.f32 %v1149_v44, %v1144_v52  ;;  %v4077_v50 = vld [vmem:[%s7406_s3 + $0x150] sm:$0xf]  ;;  %v4987_v51 = vld [vmem:[%s7406_s3 + $0x168] sm:$0xf0] }
 0x21a   :  { %v4106_v49 = vor.u32 %v4994_v48, %v4105_v47  ;;  %v4078_v52 = vor.u32 %v4987_v51, %v4077_v50  ;;  %v4984_v47 = vld [vmem:[%s7406_s3 + $0x154] sm:$0xf]  ;;  %v4303_v51 = vld [vmem:[%s7406_s3 + $0x32c] sm:$0xf0] }
 0x21b   :  { %v1181_v28 = vmul.f32 %v1162_v2, %v6099_v53  ;;  %v1182_v29 = vmul.f32 %v1163_v3, %v6101_v54  ;;  %v1184_v30 = vmul.f32 %v1165_v12, %v6105_v56  ;;  %v1183_v31 = vmul.f32 %v1164_v11, %v6103_v55  ;;  %v5040_v50 = vld [vmem:[%s7406_s3 + $0x314] sm:$0xf] }
 0x21c   :  { %v5220_v2 = vmov 0   ;;  %2454 = vmatpush.bf16.msra.mxu0 %v4106_v49  ;;  %v4079_v49 = vld [vmem:[%s7406_s3 + $0x16c] sm:$0xf0] }
 0x21d   :  { %v1185_v57 = vadd.f32 %v1182_v29, %v1181_v28  ;;  %v1187_v59 = vsel %vm814_vm1, %v1184_v30, 0.0  ;;  %5173 = vset.pattern.permute.xlu2 %v5220_v2  ;;  %5172 = vset.pattern.permute.xlu1 %v5220_v2  ;;  %v4049_v28 = vld [vmem:[%s7406_s3 + $0x118] sm:$0xf]  ;;  %v4980_v29 = vld [vmem:[%s7406_s3 + $0x130] sm:$0xf0] }
 0x21e   :  { %5171 = vset.pattern.permute.xlu0 %v5220_v2  ;;  %v4050_v30 = vor.u32 %v4980_v29, %v4049_v28  ;;  %v4306_v28 = vor.u32 %v5040_v50, %v4303_v51  ;;  %v4497_v29 = vld [vmem:[%s7406_s3 + $0x498] sm:$0xf] }
 0x21f   :  { %v1186_v58 = vadd.f32 %v1185_v57, %v1183_v31  ;;  %v4021_v31 = vld [vmem:[%s7406_s3 + $0xe0] sm:$0xf]  ;;  %v4973_v57 = vld [vmem:[%s7406_s3 + $0xf8] sm:$0xf0]  ;;  %v4499_v50 = vld [vmem:[%s7406_s3 + $0x4b4] sm:$0xf0] }
 0x220   :  { %2455 = vmatpush.bf16.msra.mxu0 %v4078_v52  ;;  %v4082_v52 = vor.u32 %v4984_v47, %v4079_v49  ;;  %v5089_v49 = vld [vmem:[%s7406_s3 + $0x49c] sm:$0xf] }
 0x221   :  { %v1188_v60 = vadd.f32 %v1187_v59, %v1186_v58  ;;  %v4329_v58 = vld [vmem:[%s7406_s3 + $0x348] sm:$0xf]  ;;  %v4022_v59 = vor.u32 %v4973_v57, %v4021_v31  ;;  %v4161_v57 = vld [vmem:[%s7406_s3 + $0x1f8] sm:$0xf]  ;;  %v4502_v51 = vor.u32 %v5089_v49, %v4499_v50  ;;  %v5061_v50 = vld [vmem:[%s7406_s3 + $0x3bc] sm:$0xf] }
 0x223   :  { %1189 = vadd.xlane.f32.xlu2 %v1188_v60  ;;  %v5050_v60 = vld [vmem:[%s7406_s3 + $0x360] sm:$0xf0] }
 0x224   :  { %2456 = vmatpush.bf16.msra.mxu0 %v4050_v30  ;;  %v5092_v30 = vld [vmem:[%s7406_s3 + $0x4b0] sm:$0xf0] }
 0x225   :  { %v4498_v31 = vor.u32 %v5092_v30, %v4497_v29  ;;  %v4949_v29 = vld [vmem:[%s7406_s3 + $0x3c] sm:$0xf]  ;;  %v3939_v30 = vld [vmem:[%s7406_s3 + $0x54] sm:$0xf0] }
 0x228   :  { %2457 = vmatpush.bf16.msra.mxu0 %v4022_v59  ;;  %v4977_v59 = vld [vmem:[%s7406_s3 + $0x11c] sm:$0xf] }
 0x27d   :  { %v1179_v62 = vpop.xlane.xlu2 %1178 }
 0x27e   :  { %v1180_v63 = vadd.f32 %v1179_v62, %v1160_v61  ;;  %v4966_v62 = vld [vmem:[%s7406_s3 + $0xc0] sm:$0xf0] }
 0x280   :  { %v1193_v0 = vsel %vm1192_vm9, %v1180_v63, -inf }
 0x281   :  { %v1194_v1 = vrot.slane %v1193_v0, 4 }
 0x283   :  { %v1195_v3 = vmax.f32 %v1193_v0, %v1194_v1  ;;  %v4301_v0 = vld [vmem:[%s7406_s3 + $0x310] sm:$0xf]  ;;  %v5043_v1 = vld [vmem:[%s7406_s3 + $0x328] sm:$0xf0] }
 0x285   :  { %v1196_v8 = vrot.slane %v1195_v3, 2 }
 0x287   :  { %v1197_v11 = vmax.f32 %v1195_v3, %v1196_v8  ;;  %v4302_v3 = vor.u32 %v5043_v1, %v4301_v0 }
 0x289   :  { %v1198_v13 = vrot.slane %v1197_v11, 1 }
 0x28b   :  { %v1199_v20 = vmax.f32 %v1197_v11, %v1198_v13 }
 0x296   :  { %v1190_v6 = vpop.xlane.xlu2 %1189 }
 0x297   :  { %v1191_v7 = vadd.f32 %v1190_v6, %v1160_v61  ;;  %v3993_v61 = vld [vmem:[%s7406_s3 + $0xa8] sm:$0xf]  ;;  %v3965_v6 = vld [vmem:[%s7406_s3 + $0x70] sm:$0xf] }
 0x298   :  { %v3994_v2 = vor.u32 %v4966_v62, %v3993_v61  ;;  %v4051_v61 = vld [vmem:[%s7406_s3 + $0x134] sm:$0xf0]  ;;  %v5033_v62 = vld [vmem:[%s7406_s3 + $0x2dc] sm:$0xf] }
 0x299   :  { %v1200_v9 = vsel %vm1192_vm9, %v1191_v7, -inf  ;;  %v4054_v0 = vor.u32 %v4977_v59, %v4051_v61  ;;  %v4163_v59 = vld [vmem:[%s7406_s3 + $0x214] sm:$0xf0]  ;;  %v5057_v61 = vld [vmem:[%s7406_s3 + $0x398] sm:$0xf0] }
 0x29a   :  { %v1201_v10 = vrot.slane %v1200_v9, 4  ;;  %2458 = vmatpush.bf16.msra.mxu0 %v3994_v2  ;;  %v4469_v2 = vld [vmem:[%s7406_s3 + $0x460] sm:$0xf] }
 0x29c   :  { %v1202_v12 = vmax.f32 %v1200_v9, %v1201_v10  ;;  %v4273_v9 = vld [vmem:[%s7406_s3 + $0x2d8] sm:$0xf]  ;;  %v5036_v10 = vld [vmem:[%s7406_s3 + $0x2f0] sm:$0xf0] }
 0x29d   :  { %v4274_v11 = vor.u32 %v5036_v10, %v4273_v9  ;;  %v4970_v9 = vld [vmem:[%s7406_s3 + $0xe4] sm:$0xf] }
 0x29e   :  { %v1203_v14 = vrot.slane %v1202_v12, 2 }
 0x2a0   :  { %v1204_v5 = vmax.f32 %v1202_v12, %v1203_v14  ;;  %v3937_v12 = vld [vmem:[%s7406_s3 + $0x38] sm:$0xf]  ;;  %v4952_v14 = vld [vmem:[%s7406_s3 + $0x50] sm:$0xf0] }
 0x2a1   :  { %v3938_v13 = vor.u32 %v4952_v14, %v3937_v12  ;;  %v5026_v12 = vld [vmem:[%s7406_s3 + $0x2a4] sm:$0xf]  ;;  %v4247_v14 = vld [vmem:[%s7406_s3 + $0x2bc] sm:$0xf0] }
 0x2a2   :  { %v1205_v19 = vrot.slane %v1204_v5, 1 }
 0x2a4   :  { %v1206_v21 = vmax.f32 %v1204_v5, %v1205_v19  ;;  %v4245_v5 = vld [vmem:[%s7406_s3 + $0x2a0] sm:$0xf]  ;;  %v5029_v19 = vld [vmem:[%s7406_s3 + $0x2b8] sm:$0xf0] }
 0x2a6   :  { %v1207_v4 = vmax.f32 %v1199_v20, %v1206_v21  ;;  %v4246_v20 = vor.u32 %v5029_v19, %v4245_v5  ;;  %v4553_v21 = vld [vmem:[%s7406_s3 + $0x508] sm:$0xf]  ;;  %v4250_v5 = vor.u32 %v5026_v12, %v4247_v14  ;;  %v4135_v14 = vld [vmem:[%s7406_s3 + $0x1dc] sm:$0xf0] }
 0x2a7   :  { %v4441_v19 = vld [vmem:[%s7406_s3 + $0x428] sm:$0xf] }
 0x2a8   :  { %v1208_v22 = vsub.f32 %v1180_v63, %v1207_v4  ;;  %v1211_v23 = vsub.f32 %v1191_v7, %v1207_v4  ;;  %v4330_v63 = vor.u32 %v5050_v60, %v4329_v58  ;;  %v4959_v7 = vld [vmem:[%s7406_s3 + $0x88] sm:$0xf0]  ;;  %v5106_v4 = vld [vmem:[%s7406_s3 + $0x520] sm:$0xf0]  ;;  %v5008_v58 = vld [vmem:[%s7406_s3 + $0x210] sm:$0xf0] }
 0x2a9   :  { %v3966_v8 = vor.u32 %v4959_v7, %v3965_v6  ;;  %v4162_v60 = vor.u32 %v5008_v58, %v4161_v57  ;;  %v4133_v7 = vld [vmem:[%s7406_s3 + $0x1c0] sm:$0xf] }
 0x2aa   :  { %v1209_v24 = vmul.f32 1.442695, %v1208_v22  ;;  %v1212_v25 = vmul.f32 1.442695, %v1211_v23  ;;  %2467 = vmatpush.bf16.msra.mxu1 %v4330_v63  ;;  %v4554_v22 = vor.u32 %v5106_v4, %v4553_v21  ;;  %v3909_v23 = vld [vmem:[%s7406_s3] sm:$0xf] }
 0x2ab   :  { %2459 = vmatpush.bf16.msra.mxu0 %v3966_v8  ;;  %v4275_v63 = vld [vmem:[%s7406_s3 + $0x2f4] sm:$0xf0]  ;;  %v5001_v8 = vld [vmem:[%s7406_s3 + $0x1d8] sm:$0xf0]  ;;  %v5103_v21 = vld [vmem:[%s7406_s3 + $0x50c] sm:$0xf] }
 0x2ac   :  { %5182 = vpow2.f32 %v1209_v24  ;;  %v4945_v24 = vld [vmem:[%s7406_s3 + $0x18] sm:$0xf0]  ;;  %2480 = vmatpush.bf16.msra.mxu2 %v4554_v22  ;;  %v4278_v1 = vor.u32 %v5033_v62, %v4275_v63  ;;  %v4134_v10 = vor.u32 %v5001_v8, %v4133_v7  ;;  %v4555_v22 = vld [vmem:[%s7406_s3 + $0x524] sm:$0xf0]  ;;  %v3942_v62 = vor.u32 %v4949_v29, %v3939_v30 }
 0x2ad   :  { %5184 = vpow2.f32 %v1212_v25  ;;  %v4581_v25 = vld [vmem:[%s7406_s3 + $0x540] sm:$0xf] }
 0x2ae   :  { %2468 = vmatpush.bf16.msra.mxu1 %v4302_v3  ;;  %v5085_v3 = vld [vmem:[%s7406_s3 + $0x478] sm:$0xf0] }
 0x2af   :  { %2460 = vmatpush.bf16.msra.mxu0 %v3938_v13  ;;  %v4470_v6 = vor.u32 %v5085_v3, %v4469_v2 }
 0x2b2   :  { %v5183_v26 = vpop.eup %5182  ;;  %2469 = vmatpush.bf16.msra.mxu1 %v4274_v11  ;;  %v4023_v11 = vld [vmem:[%s7406_s3 + $0xfc] sm:$0xf0] }
 0x2b3   :  { %v5185_v27 = vpop.eup %5184  ;;  %1231 = vperm.xlu1 %5172, %v5183_v26   ;;  %v1214_v32 = vsel %vm1192_vm9, %v5183_v26, 0.0  ;;  %v3910_v26 = vor.u32 %v4945_v24, %v3909_v23  ;;  %v4026_v13 = vor.u32 %v4970_v9, %v4023_v11  ;;  %v4963_v23 = vld [vmem:[%s7406_s3 + $0xac] sm:$0xf]  ;;  %v3995_v24 = vld [vmem:[%s7406_s3 + $0xc4] sm:$0xf0] }
 0x2b4   :  { %v1221_v33 = vsel %vm1192_vm9, %v5185_v27, 0.0  ;;  %1265 = vperm.xlu2 %5173, %v5185_v27   ;;  %v1215_v34 = vrot.slane %v1214_v32, 4  ;;  %v5113_v27 = vld [vmem:[%s7406_s3 + $0x558] sm:$0xf0]  ;;  %v4942_v9 = vld [vmem:[%s7406_s3 + $0x4] sm:$0xf] }
 0x2b5   :  { %v1222_v35 = vrot.slane %v1221_v33, 4  ;;  %2461 = vmatpush.bf16.msra.mxu0 %v3910_v26  ;;  %v3998_v26 = vor.u32 %v4963_v23, %v3995_v24 }
 0x2b6   :  { %v1216_v36 = vadd.f32 %v1215_v34, %v1214_v32  ;;  %2470 = vmatpush.bf16.msra.mxu1 %v4246_v20  ;;  %v4217_v32 = vld [vmem:[%s7406_s3 + $0x268] sm:$0xf]  ;;  %v4582_v34 = vor.u32 %v5113_v27, %v4581_v25  ;;  %v5078_v20 = vld [vmem:[%s7406_s3 + $0x440] sm:$0xf0]  ;;  %v4558_v25 = vor.u32 %v5103_v21, %v4555_v22  ;;  %v5019_v27 = vld [vmem:[%s7406_s3 + $0x26c] sm:$0xf] }
 0x2b7   :  { %v1223_v37 = vadd.f32 %v1222_v35, %v1221_v33  ;;  %v5022_v33 = vld [vmem:[%s7406_s3 + $0x280] sm:$0xf0]  ;;  %v4442_v4 = vor.u32 %v5078_v20, %v4441_v19  ;;  %v4583_v20 = vld [vmem:[%s7406_s3 + $0x55c] sm:$0xf0]  ;;  %v5075_v21 = vld [vmem:[%s7406_s3 + $0x42c] sm:$0xf] }
 0x2b8   :  { %v1217_v38 = vrot.slane %v1216_v36, 2  ;;  %v4218_v35 = vor.u32 %v5022_v33, %v4217_v32  ;;  %2500 = vmatpush.bf16.msra.mxu3 %v4582_v34  ;;  %v4219_v32 = vld [vmem:[%s7406_s3 + $0x284] sm:$0xf0]  ;;  %v4413_v33 = vld [vmem:[%s7406_s3 + $0x3f0] sm:$0xf] }
 0x2b9   :  { %v1224_v39 = vrot.slane %v1223_v37, 2  ;;  %v4222_v34 = vor.u32 %v5019_v27, %v4219_v32 }
 0x2ba   :  { %v1218_v40 = vadd.f32 %v1217_v38, %v1216_v36  ;;  %v4991_v36 = vld [vmem:[%s7406_s3 + $0x18c] sm:$0xf]  ;;  %2471 = vmatpush.bf16.msra.mxu1 %v4218_v35 }
 0x2bb   :  { %v1225_v41 = vadd.f32 %v1224_v39, %v1223_v37  ;;  %v4107_v37 = vld [vmem:[%s7406_s3 + $0x1a4] sm:$0xf0]  ;;  %v5047_v38 = vld [vmem:[%s7406_s3 + $0x34c] sm:$0xf] }
 0x2bc   :  { %v1219_v42 = vrot.slane %v1218_v40, 1  ;;  %v4331_v39 = vld [vmem:[%s7406_s3 + $0x364] sm:$0xf0]  ;;  %v5071_v35 = vld [vmem:[%s7406_s3 + $0x408] sm:$0xf0] }
 0x2bd   :  { %v1226_v43 = vrot.slane %v1225_v41, 1 }
 0x2be   :  { %v1220_v44 = vadd.f32 %v1219_v42, %v1218_v40  ;;  %v4525_v40 = vld [vmem:[%s7406_s3 + $0x4d0] sm:$0xf]  ;;  %v4110_v42 = vor.u32 %v4991_v36, %v4107_v37  ;;  %v5096_v36 = vld [vmem:[%s7406_s3 + $0x4d4] sm:$0xf] }
 0x2bf   :  { %v1227_v45 = vadd.f32 %v1226_v43, %v1225_v41  ;;  %v5099_v41 = vld [vmem:[%s7406_s3 + $0x4e8] sm:$0xf0]  ;;  %v4334_v43 = vor.u32 %v5047_v38, %v4331_v39  ;;  %v4527_v37 = vld [vmem:[%s7406_s3 + $0x4ec] sm:$0xf0]  ;;  %v4414_v38 = vor.u32 %v5071_v35, %v4413_v33 }
 0x2c0   :  { %2506 = vmatpush.bf16.msrb.mxu3 %v4110_v42  ;;  %v4530_v39 = vor.u32 %v5096_v36, %v4527_v37  ;;  %v5012_v42 = vld [vmem:[%s7406_s3 + $0x234] sm:$0xf] }
 0x2c1   :  { %v1228_v46 = vadd.f32 %v1227_v45, %v1220_v44  ;;  %v4526_v44 = vor.u32 %v5099_v41, %v4525_v40  ;;  %v4189_v45 = vld [vmem:[%s7406_s3 + $0x230] sm:$0xf]  ;;  %2519 = vmatpush.bf16.msrb.mxu0 %v4334_v43  ;;  %v4956_v40 = vld [vmem:[%s7406_s3 + $0x74] sm:$0xf] }
 0x2c2   :  { %v3967_v41 = vld [vmem:[%s7406_s3 + $0x8c] sm:$0xf0] }
 0x2c3   :  { %1303 = vperm.xlu0 %5171, %v1228_v46   ;;  %v5015_v46 = vld [vmem:[%s7406_s3 + $0x248] sm:$0xf0]  ;;  %2481 = vmatpush.bf16.msra.mxu2 %v4526_v44  ;;  %v3970_v43 = vor.u32 %v4956_v40, %v3967_v41  ;;  %v4191_v44 = vld [vmem:[%s7406_s3 + $0x24c] sm:$0xf0] }
 0x2c4   :  { %v4190_v48 = vor.u32 %v5015_v46, %v4189_v45  ;;  %2507 = vmatpush.bf16.msrb.mxu3 %v4082_v52  ;;  %v4385_v45 = vld [vmem:[%s7406_s3 + $0x3b8] sm:$0xf]  ;;  %v5064_v46 = vld [vmem:[%s7406_s3 + $0x3d0] sm:$0xf0]  ;;  %v4194_v47 = vor.u32 %v5012_v42, %v4191_v44  ;;  %v4415_v41 = vld [vmem:[%s7406_s3 + $0x40c] sm:$0xf0] }
 0x2c5   :  { %2520 = vmatpush.bf16.msrb.mxu0 %v4306_v28 }
 0x2c6   :  { %2472 = vmatpush.bf16.msra.mxu1 %v4190_v48  ;;  %v4386_v48 = vor.u32 %v5064_v46, %v4385_v45 }
 0x2c7   :  { %2482 = vmatpush.bf16.msra.mxu2 %v4498_v31  ;;  %v5005_v31 = vld [vmem:[%s7406_s3 + $0x1fc] sm:$0xf] }
 0x2c8   :  { %2508 = vmatpush.bf16.msrb.mxu3 %v4054_v0  ;;  %v4166_v63 = vor.u32 %v5005_v31, %v4163_v59  ;;  %v4471_v0 = vld [vmem:[%s7406_s3 + $0x47c] sm:$0xf0] }
 0x2c9   :  { %2521 = vmatpush.bf16.msrb.mxu0 %v4278_v1 }
 0x2ca   :  { %2473 = vmatpush.bf16.msra.mxu1 %v4162_v60  ;;  %v4357_v60 = vld [vmem:[%s7406_s3 + $0x380] sm:$0xf] }
 0x2cb   :  { %2483 = vmatpush.bf16.msra.mxu2 %v4470_v6 }
 0x2cc   :  { %2509 = vmatpush.bf16.msrb.mxu3 %v4026_v13  ;;  %v5110_v13 = vld [vmem:[%s7406_s3 + $0x544] sm:$0xf] }
 0x2cd   :  { %2522 = vmatpush.bf16.msrb.mxu0 %v4250_v5 }
 0x2ce   :  { %2474 = vmatpush.bf16.msra.mxu1 %v4134_v10  ;;  %v3911_v10 = vld [vmem:[%s7406_s3 + $0x1c] sm:$0xf0] }
 0x2cf   :  { %2484 = vmatpush.bf16.msra.mxu2 %v4442_v4  ;;  %v4443_v4 = vld [vmem:[%s7406_s3 + $0x444] sm:$0xf0] }
 0x2d0   :  { %2510 = vmatpush.bf16.msrb.mxu3 %v3998_v26  ;;  %v4446_v27 = vor.u32 %v5075_v21, %v4443_v4 }
 0x2d1   :  { %2523 = vmatpush.bf16.msrb.mxu0 %v4222_v34 }
 0x2d2   :  { %2532 = vmatpush.bf16.msrb.mxu1 %v4558_v25  ;;  %v4586_v25 = vor.u32 %v5110_v13, %v4583_v20 }
 0x2d3   :  { %2485 = vmatpush.bf16.msra.mxu2 %v4414_v38 }
 0x2d4   :  { %2511 = vmatpush.bf16.msrb.mxu3 %v3970_v43 }
 0x2d5   :  { %2524 = vmatpush.bf16.msrb.mxu0 %v4194_v47 }
 0x2d6   :  { %2533 = vmatpush.bf16.msrb.mxu1 %v4530_v39  ;;  %v5068_v39 = vld [vmem:[%s7406_s3 + $0x3f4] sm:$0xf] }
 0x2d7   :  { %2486 = vmatpush.bf16.msra.mxu2 %v4386_v48  ;;  %v4418_v44 = vor.u32 %v5068_v39, %v4415_v41 }
 0x2d8   :  { %2512 = vmatpush.bf16.msrb.mxu3 %v3942_v62  ;;  %v5054_v62 = vld [vmem:[%s7406_s3 + $0x384] sm:$0xf] }
 0x2d9   :  { %2525 = vmatpush.bf16.msrb.mxu0 %v4166_v63  ;;  %v4359_v63 = vld [vmem:[%s7406_s3 + $0x39c] sm:$0xf0] }
 0x2da   :  { %2534 = vmatpush.bf16.msrb.mxu1 %v4502_v51  ;;  %v4387_v51 = vld [vmem:[%s7406_s3 + $0x3d4] sm:$0xf0] }
 0x2db   :  { %v4390_v29 = vor.u32 %v5061_v50, %v4387_v51 }
 0x30e   :  { %v1266_v52 = vpop.permute.xlu2 %1265 }
 0x30f   :  { %v1271_v1 = vmul.f32 %v1266_v52, %v6105_v56  ;;  %v1268_v11 = vmul.f32 %v1266_v52, %v6099_v53  ;;  %v1269_v12 = vmul.f32 %v1266_v52, %v6101_v54  ;;  %v1270_v5 = vmul.f32 %v1266_v52, %v6103_v55 }
 0x311   :  { %v1290_v22 = vsel %vm814_vm1, %v1271_v1, 0.0  ;;  %v1272_v32 = vrot.slane %v1268_v11, 4  ;;  %v1278_v33 = vrot.slane %v1269_v12, 4  ;;  %v1284_v34 = vrot.slane %v1270_v5, 4 }
 0x312   :  { %v1291_v35 = vrot.slane %v1290_v22, 4 }
 0x313   :  { %v1273_v42 = vadd.f32 %v1272_v32, %v1268_v11  ;;  %v1279_v43 = vadd.f32 %v1278_v33, %v1269_v12  ;;  %v1285_v45 = vadd.f32 %v1284_v34, %v1270_v5 }
 0x314   :  { %v1292_v46 = vadd.f32 %v1291_v35, %v1290_v22 }
 0x315   :  { %v1274_v30 = vrot.slane %v1273_v42, 2  ;;  %v1280_v31 = vrot.slane %v1279_v43, 2 }
 0x317   :  { %v1281_v1 = vadd.f32 %v1280_v31, %v1279_v43 }
 0x325   :  { %v1232_v28 = vpop.permute.xlu1 %1231 }
 0x326   :  { %v1234_v57 = vmul.f32 %v1232_v28, %v6076_v15  ;;  %v1237_v58 = vmul.f32 %v1232_v28, %v6082_v18  ;;  %v4358_v15 = vor.u32 %v5057_v61, %v4357_v60  ;;  %v5082_v18 = vld [vmem:[%s7406_s3 + $0x464] sm:$0xf]  ;;  %v1235_v2 = vmul.f32 %v1232_v28, %v6078_v16 }
 0x327   :  { %v1236_v3 = vmul.f32 %v1232_v28, %v6080_v17  ;;  %v4474_v8 = vor.u32 %v5082_v18, %v4471_v0  ;;  %v3914_v16 = vor.u32 %v4942_v9, %v3911_v10  ;;  %v4998_v17 = vld [vmem:[%s7406_s3 + $0x1c4] sm:$0xf]  ;;  %v4362_v18 = vor.u32 %v5054_v62, %v4359_v63  ;;  %v5044_v62 = vld [vmem:[%s7406_s3 + $0x330] sm:$0xf0] }
 0x328   :  { %v1238_v6 = vrot.slane %v1234_v57, 4  ;;  %v1256_v7 = vsel %vm814_vm1, %v1237_v58, 0.0  ;;  %2487 = vmatpush.bf16.msra.mxu2 %v4358_v15  ;;  %v4138_v19 = vor.u32 %v4998_v17, %v4135_v14  ;;  %v1244_v23 = vrot.slane %v1235_v2, 4 }
 0x329   :  { %v1250_v24 = vrot.slane %v1236_v3, 4  ;;  %2535 = vmatpush.bf16.msrb.mxu1 %v4474_v8  ;;  %v1257_v26 = vrot.slane %v1256_v7, 4  ;;  %2513 = vmatpush.bf16.msrb.mxu3 %v3914_v16  ;;  %v1293_v58 = vrot.slane %v1292_v46, 2  ;;  %v1275_v0 = vadd.f32 %v1274_v30, %v1273_v42  ;;  %v5114_v30 = vld [vmem:[%s7406_s3 + $0x560] sm:$0xf0] }
 0x32a   :  { %v1239_v36 = vadd.f32 %v1238_v6, %v1234_v57  ;;  %2526 = vmatpush.bf16.msrb.mxu0 %v4138_v19  ;;  %v1245_v37 = vadd.f32 %v1244_v23, %v1235_v2  ;;  %v1286_v57 = vrot.slane %v1285_v45, 2  ;;  %v1282_v16 = vrot.slane %v1281_v1, 1 }
 0x32b   :  { %v1251_v38 = vadd.f32 %v1250_v24, %v1236_v3  ;;  %v1258_v40 = vadd.f32 %v1257_v26, %v1256_v7  ;;  %v1294_v3 = vadd.f32 %v1293_v58, %v1292_v46  ;;  %v1276_v12 = vrot.slane %v1275_v0, 1  ;;  %v4337_v46 = vld [vmem:[%s7406_s3 + $0x350] sm:$0xf]  ;;  %v4085_v58 = vld [vmem:[%s7406_s3 + $0x158] sm:$0xf] }
 0x32c   :  { %2552 = vmatpush.bf16.msrb.mxu2 %v4586_v25  ;;  %v1240_v47 = vrot.slane %v1239_v36, 2  ;;  %v1246_v48 = vrot.slane %v1245_v37, 2  ;;  %v1287_v2 = vadd.f32 %v1286_v57, %v1285_v45  ;;  %v1283_v25 = vadd.f32 %v1282_v16, %v1281_v1  ;;  %v4995_v45 = vld [vmem:[%s7406_s3 + $0x1a8] sm:$0xf0]  ;;  %v4029_v16 = vld [vmem:[%s7406_s3 + $0xe8] sm:$0xf] }
 0x32d   :  { %2536 = vmatpush.bf16.msrb.mxu1 %v4446_v27  ;;  %v1252_v49 = vrot.slane %v1251_v38, 2  ;;  %v1259_v52 = vrot.slane %v1258_v40, 2  ;;  %v1295_v14 = vrot.slane %v1294_v3, 1  ;;  %v1277_v24 = vadd.f32 %v1276_v12, %v1275_v0 }
 0x32e   :  { %v1241_v59 = vadd.f32 %v1240_v47, %v1239_v36  ;;  %v1247_v60 = vadd.f32 %v1246_v48, %v1245_v37  ;;  %v1288_v17 = vrot.slane %v1287_v2, 1  ;;  %v5051_v47 = vld [vmem:[%s7406_s3 + $0x368] sm:$0xf0]  ;;  %v4561_v48 = vld [vmem:[%s7406_s3 + $0x510] sm:$0xf] }
 0x32f   :  { %v1253_v61 = vadd.f32 %v1252_v49, %v1251_v38  ;;  %v1260_v15 = vadd.f32 %v1259_v52, %v1258_v40  ;;  %v1296_v27 = vadd.f32 %v1295_v14, %v1294_v3  ;;  %v4113_v40 = vld [vmem:[%s7406_s3 + $0x190] sm:$0xf]  ;;  %v4974_v14 = vld [vmem:[%s7406_s3 + $0x100] sm:$0xf0] }
 0x330   :  { %v1242_v7 = vrot.slane %v1241_v59, 1  ;;  %v1248_v8 = vrot.slane %v1247_v60, 1  ;;  %v1289_v26 = vadd.f32 %v1288_v17, %v1287_v2  ;;  %v4114_v31 = vor.u32 %v4995_v45, %v4113_v40  ;;  %v4057_v2 = vld [vmem:[%s7406_s3 + $0x120] sm:$0xf]  ;;  %v4985_v45 = vld [vmem:[%s7406_s3 + $0x15c] sm:$0xf] }
 0x331   :  { %2537 = vmatpush.bf16.msrb.mxu1 %v4418_v44  ;;  %v1254_v9 = vrot.slane %v1253_v61, 1  ;;  %v1261_v10 = vrot.slane %v1260_v15, 1 }
 0x332   :  { %v1243_v5 = vadd.f32 %v1242_v7, %v1241_v59  ;;  %v1249_v19 = vadd.f32 %v1248_v8, %v1247_v60  ;;  %v4988_v60 = vld [vmem:[%s7406_s3 + $0x170] sm:$0xf0]  ;;  %v4281_v7 = vld [vmem:[%s7406_s3 + $0x2e0] sm:$0xf]  ;;  %v5037_v8 = vld [vmem:[%s7406_s3 + $0x2f8] sm:$0xf0] }
 0x333   :  { %v1255_v20 = vadd.f32 %v1254_v9, %v1253_v61  ;;  %v1262_v4 = vadd.f32 %v1261_v10, %v1260_v15  ;;  %v4309_v61 = vld [vmem:[%s7406_s3 + $0x318] sm:$0xf]  ;;  %v4086_v0 = vor.u32 %v4988_v60, %v4085_v58  ;;  %v4505_v9 = vld [vmem:[%s7406_s3 + $0x4a0] sm:$0xf]  ;;  %v5093_v10 = vld [vmem:[%s7406_s3 + $0x4b8] sm:$0xf0]  ;;  %v4282_v12 = vor.u32 %v5037_v8, %v4281_v7 }
 0x334   :  { %v1297_v33 = vadd.f32 %v1277_v24, %v1243_v5  ;;  %v1298_v34 = vadd.f32 %v1283_v25, %v1249_v19  ;;  %v4533_v15 = vld [vmem:[%s7406_s3 + $0x4d8] sm:$0xf]  ;;  %v4310_v1 = vor.u32 %v5044_v62, %v4309_v61  ;;  %v4506_v17 = vor.u32 %v5093_v10, %v4505_v9  ;;  %v5030_v5 = vld [vmem:[%s7406_s3 + $0x2c0] sm:$0xf0]  ;;  %v4477_v19 = vld [vmem:[%s7406_s3 + $0x468] sm:$0xf] }
 0x335   :  { %v1304_v28 = vpop.permute.xlu0 %1303  ;;  %2538 = vmatpush.bf16.msrb.mxu1 %v4390_v29  ;;  %v1299_v36 = vadd.f32 %v1289_v26, %v1255_v20  ;;  %v1300_v37 = vadd.f32 %v1296_v27, %v1262_v4  ;;  %v4589_v29 = vld [vmem:[%s7406_s3 + $0x548] sm:$0xf]  ;;  %v5086_v20 = vld [vmem:[%s7406_s3 + $0x480] sm:$0xf0]  ;;  %v4225_v25 = vld [vmem:[%s7406_s3 + $0x270] sm:$0xf] }
 0x336   :  { %5186 = vrcp.f32 %v1304_v28  ;;  %v1317_v21 = vand.u32 2147483648, %v1304_v28  ;;  %v1315_v23 = vand.u32 2147483647, %v1304_v28  ;;  %vm1311_vm11 = vweird.f32 %v1304_v28  ;;  %v5023_v26 = vld [vmem:[%s7406_s3 + $0x288] sm:$0xf0] }
 0x337   :  { %v4590_v63 = vor.u32 %v5114_v30, %v4589_v29  ;;  %v4478_v24 = vor.u32 %v5086_v20, %v4477_v19  ;;  %v4449_v27 = vld [vmem:[%s7406_s3 + $0x430] sm:$0xf]  ;;  %v5009_v29 = vld [vmem:[%s7406_s3 + $0x218] sm:$0xf0]  ;;  %v4393_v30 = vld [vmem:[%s7406_s3 + $0x3c0] sm:$0xf] }
 0x338   :  { %v1318_v35 = vor.u32 1.1754944e-38, %v1317_v21  ;;  %vm1316_vm13 = vcmp.eq.f32.partialorder %v1315_v23, 8.507059e+37  ;;  %v4030_v21 = vor.u32 %v4974_v14, %v4029_v16  ;;  %v4967_v23 = vld [vmem:[%s7406_s3 + $0xc8] sm:$0xf0]  ;;  %v4059_v58 = vld [vmem:[%s7406_s3 + $0x13c] sm:$0xf0] }
 0x339   :  { %2539 = vmatpush.bf16.msrb.mxu1 %v4362_v18  ;;  %v5100_v18 = vld [vmem:[%s7406_s3 + $0x4f0] sm:$0xf0]  ;;  %v3917_v61 = vld [vmem:[%s7406_s3 + $0x8] sm:$0xf]  ;;  %v4946_v62 = vld [vmem:[%s7406_s3 + $0x20] sm:$0xf0] }
 0x33a   :  { %v4534_v3 = vor.u32 %v5100_v18, %v4533_v15  ;;  %v5048_v7 = vld [vmem:[%s7406_s3 + $0x354] sm:$0xf]  ;;  %v4339_v8 = vld [vmem:[%s7406_s3 + $0x36c] sm:$0xf0]  ;;  %v5111_v16 = vld [vmem:[%s7406_s3 + $0x54c] sm:$0xf] }
 0x33b   :  { %v5104_v9 = vld [vmem:[%s7406_s3 + $0x514] sm:$0xf]  ;;  %v4563_v10 = vld [vmem:[%s7406_s3 + $0x52c] sm:$0xf0] }
 0x33c   :  { %v5187_v6 = vpop.eup %5186  ;;  %v4566_v19 = vor.u32 %v5104_v9, %v4563_v10  ;;  %v4964_v20 = vld [vmem:[%s7406_s3 + $0xb4] sm:$0xf]  ;;  %v4009_v9 = vld [vmem:[%s7406_s3 + $0xb8] sm:$0xf] }
 0x33d   :  { %v1307_v11 = vmul.f32 %v5187_v6, %v1304_v28  ;;  %vm1312_vm10 = vweird.f32 %v5187_v6  ;;  %v5107_v28 = vld [vmem:[%s7406_s3 + $0x528] sm:$0xf0]  ;;  %v4968_v10 = vld [vmem:[%s7406_s3 + $0xd0] sm:$0xf0] }
 0x33e   :  { %vm1313_vm12 = vmor %vm1311_vm11, %vm1312_vm10  ;;  %v4562_v59 = vor.u32 %v5107_v28, %v4561_v48  ;;  %v4169_v28 = vld [vmem:[%s7406_s3 + $0x200] sm:$0xf] }
 0x33f   :  { %v1308_v13 = vsub.f32 1.0, %v1307_v11  ;;  %v4170_v60 = vor.u32 %v5009_v29, %v4169_v28  ;;  %v4255_v28 = vld [vmem:[%s7406_s3 + $0x2c4] sm:$0xf0]  ;;  %v5083_v29 = vld [vmem:[%s7406_s3 + $0x46c] sm:$0xf] }
 0x341   :  { %v1309_v22 = vmul.f32 %v5187_v6, %v1308_v13  ;;  %v4253_v13 = vld [vmem:[%s7406_s3 + $0x2a8] sm:$0xf] }
 0x342   :  { %v4254_v4 = vor.u32 %v5030_v5, %v4253_v13  ;;  %v4342_v5 = vor.u32 %v5048_v7, %v4339_v8 }
 0x343   :  { %v1310_v32 = vadd.f32 %v5187_v6, %v1309_v22  ;;  %v4001_v22 = vld [vmem:[%s7406_s3 + $0xb0] sm:$0xf] }
 0x345   :  { %v1314_v38 = vsel %vm1313_vm12, %v5187_v6, %v1310_v32  ;;  %v4981_v6 = vld [vmem:[%s7406_s3 + $0x138] sm:$0xf0]  ;;  %v5079_v32 = vld [vmem:[%s7406_s3 + $0x448] sm:$0xf0] }
 0x346   :  { %v1319_v39 = vsel %vm1316_vm13, %v1318_v35, %v1314_v38  ;;  %v4058_v11 = vor.u32 %v4981_v6, %v4057_v2  ;;  %v4002_v35 = vor.u32 %v4967_v23, %v4001_v22  ;;  %v4960_v38 = vld [vmem:[%s7406_s3 + $0x90] sm:$0xf0]  ;;  %v5058_v2 = vld [vmem:[%s7406_s3 + $0x3a0] sm:$0xf0]  ;;  %v4031_v6 = vld [vmem:[%s7406_s3 + $0x104] sm:$0xf0] }
 0x347   :  { %v1320_v41 = vmul.f32 %v1319_v39, %v1297_v33  ;;  %v1321_v42 = vmul.f32 %v1319_v39, %v1298_v34  ;;  %v1322_v43 = vmul.f32 %v1319_v39, %v1299_v36  ;;  %v1323_v44 = vmul.f32 %v1319_v39, %v1300_v37  ;;  %v4992_v33 = vld [vmem:[%s7406_s3 + $0x194] sm:$0xf]  ;;  %v4115_v34 = vld [vmem:[%s7406_s3 + $0x1ac] sm:$0xf0]  ;;  %v3973_v37 = vld [vmem:[%s7406_s3 + $0x78] sm:$0xf] }
 0x348   :  { %v4226_v36 = vor.u32 %v5023_v26, %v4225_v25  ;;  %v4450_v39 = vor.u32 %v5079_v32, %v4449_v27  ;;  %v4118_v40 = vor.u32 %v4992_v33, %v4115_v34  ;;  %v4003_v23 = vld [vmem:[%s7406_s3 + $0xcc] sm:$0xf0]  ;;  %v4311_v25 = vld [vmem:[%s7406_s3 + $0x334] sm:$0xf0]  ;;  %v5097_v26 = vld [vmem:[%s7406_s3 + $0x4dc] sm:$0xf] }
 0x349   :  { %v1324_v49 = vadd.f32 %v1320_v41, %v6099_v53  ;;  %v1325_v50 = vadd.f32 %v1321_v42, %v6101_v54  ;;  %v1326_v51 = vadd.f32 %v1322_v43, %v6103_v55  ;;  %v1327_v52 = vadd.f32 %v1323_v44, %v6105_v56  ;;  %v4197_v41 = vld [vmem:[%s7406_s3 + $0x238] sm:$0xf]  ;;  %v5016_v42 = vld [vmem:[%s7406_s3 + $0x250] sm:$0xf0] }
 0x34a   :  { %v4338_v53 = vor.u32 %v5051_v47, %v4337_v46  ;;  %v4421_v43 = vld [vmem:[%s7406_s3 + $0x3f8] sm:$0xf]  ;;  %v5072_v44 = vld [vmem:[%s7406_s3 + $0x410] sm:$0xf0]  ;;  %v3974_v47 = vor.u32 %v4960_v38, %v3973_v37  ;;  %v4198_v48 = vor.u32 %v5016_v42, %v4197_v41  ;;  %v4006_v33 = vor.u32 %v4964_v20, %v4003_v23  ;;  %v4989_v37 = vld [vmem:[%s7406_s3 + $0x178] sm:$0xf0] }
 0x34b   :  { %v6457_v57 = vpack.c.bf16 %v1324_v49, %v1324_v49  ;;  %v6459_v54 = vpack.c.bf16 %v1325_v50, %v1325_v50  ;;  %v6461_v55 = vpack.c.bf16 %v1326_v51, %v1326_v51  ;;  %v6463_v56 = vpack.c.bf16 %v1327_v52, %v1327_v52  ;;  %v4087_v46 = vld [vmem:[%s7406_s3 + $0x174] sm:$0xf0]  ;;  %v3945_v49 = vld [vmem:[%s7406_s3 + $0x40] sm:$0xf]  ;;  %v4953_v50 = vld [vmem:[%s7406_s3 + $0x58] sm:$0xf0] }
 0x34c   :  { %v4422_v51 = vor.u32 %v5072_v44, %v4421_v43  ;;  %v4090_v52 = vor.u32 %v4985_v45, %v4087_v46  ;;  %v4535_v27 = vld [vmem:[%s7406_s3 + $0x4f4] sm:$0xf0]  ;;  %v4283_v41 = vld [vmem:[%s7406_s3 + $0x2fc] sm:$0xf0]  ;;  %v5090_v42 = vld [vmem:[%s7406_s3 + $0x4a4] sm:$0xf]  ;;  %v4010_v20 = vor.u32 %v4968_v10, %v4009_v9 }
 0x34d   :  { %2462 = vmatmul.bf16.vlgmr.msra.gmra.mxu0 %v6457_v57  ;;  %2475 = vmatmul.bf16.vlgmr.msra.gmra.mxu1 %v6459_v54  ;;  %v4538_v38 = vor.u32 %v5097_v26, %v4535_v27  ;;  %v4507_v43 = vld [vmem:[%s7406_s3 + $0x4bc] sm:$0xf0]  ;;  %v5062_v27 = vld [vmem:[%s7406_s3 + $0x3c4] sm:$0xf] }
 0x34e   :  { %2488 = vmatmul.bf16.vlgmr.msra.gmra.mxu2 %v6461_v55  ;;  %4607 = vmatmul.msk.bf16.vlgmr.msra.gmra.mxu3 %vm814_vm1, %v6463_v56  ;;  %v4171_v26 = vld [vmem:[%s7406_s3 + $0x21c] sm:$0xf0] }
 0x34f   :  { %2558 = vmatpush.bf16.msra.mxu2 %v4114_v31  ;;  %2571 = vmatpush.bf16.msra.mxu3 %v4338_v53  ;;  %v5065_v31 = vld [vmem:[%s7406_s3 + $0x3d8] sm:$0xf0]  ;;  %v4978_v53 = vld [vmem:[%s7406_s3 + $0x124] sm:$0xf]  ;;  %v4319_v9 = vld [vmem:[%s7406_s3 + $0x33c] sm:$0xf0] }
 0x350   :  { %2584 = vmatpush.bf16.msra.mxu0 %v4562_v59  ;;  %2604 = vmatpush.bf16.msra.mxu1 %v4590_v63  ;;  %v3946_v59 = vor.u32 %v4953_v50, %v3945_v49  ;;  %v4141_v63 = vld [vmem:[%s7406_s3 + $0x1c8] sm:$0xf]  ;;  %v4394_v15 = vor.u32 %v5065_v31, %v4393_v30  ;;  %v4062_v18 = vor.u32 %v4978_v53, %v4059_v58  ;;  %v4982_v49 = vld [vmem:[%s7406_s3 + $0x140] sm:$0xf0]  ;;  %v4943_v53 = vld [vmem:[%s7406_s3 + $0xc] sm:$0xf] }
 0x351   :  { %v4510_v50 = vor.u32 %v5090_v42, %v4507_v43  ;;  %v4479_v30 = vld [vmem:[%s7406_s3 + $0x484] sm:$0xf0]  ;;  %v5055_v43 = vld [vmem:[%s7406_s3 + $0x38c] sm:$0xf] }
 0x352   :  { %v4143_v42 = vld [vmem:[%s7406_s3 + $0x1e4] sm:$0xf0] }
 0x353   :  { %2559 = vmatpush.bf16.msra.mxu2 %v4086_v0  ;;  %2572 = vmatpush.bf16.msra.mxu3 %v4310_v1  ;;  %v5002_v0 = vld [vmem:[%s7406_s3 + $0x1e0] sm:$0xf0]  ;;  %v4365_v1 = vld [vmem:[%s7406_s3 + $0x388] sm:$0xf] }
 0x354   :  { %2585 = vmatpush.bf16.msra.mxu0 %v4534_v3  ;;  %v4971_v3 = vld [vmem:[%s7406_s3 + $0xec] sm:$0xf]  ;;  %v4366_v14 = vor.u32 %v5058_v2, %v4365_v1  ;;  %v4451_v1 = vld [vmem:[%s7406_s3 + $0x44c] sm:$0xf0]  ;;  %v4345_v2 = vld [vmem:[%s7406_s3 + $0x358] sm:$0xf] }
 0x355   :  { %v4034_v13 = vor.u32 %v4971_v3, %v4031_v6  ;;  %v5052_v3 = vld [vmem:[%s7406_s3 + $0x370] sm:$0xf0] }
 0x357   :  { %2560 = vmatpush.bf16.msra.mxu2 %v4058_v11  ;;  %2573 = vmatpush.bf16.msra.mxu3 %v4282_v12  ;;  %v3918_v11 = vor.u32 %v4946_v62, %v3917_v61  ;;  %v4142_v12 = vor.u32 %v5002_v0, %v4141_v63  ;;  %v4037_v61 = vld [vmem:[%s7406_s3 + $0xf0] sm:$0xf]  ;;  %v4975_v62 = vld [vmem:[%s7406_s3 + $0x108] sm:$0xf0]  ;;  %v4482_v63 = vor.u32 %v5083_v29, %v4479_v30  ;;  %v5076_v0 = vld [vmem:[%s7406_s3 + $0x434] sm:$0xf] }
 0x358   :  { %2586 = vmatpush.bf16.msra.mxu0 %v4506_v17  ;;  %v4591_v17 = vld [vmem:[%s7406_s3 + $0x564] sm:$0xf0]  ;;  %v4038_v6 = vor.u32 %v4975_v62, %v4037_v61  ;;  %v4947_v29 = vld [vmem:[%s7406_s3 + $0x28] sm:$0xf0]  ;;  %v5024_v62 = vld [vmem:[%s7406_s3 + $0x290] sm:$0xf0] }
 0x359   :  { %v4594_v22 = vor.u32 %v5111_v16, %v4591_v17  ;;  %v5013_v16 = vld [vmem:[%s7406_s3 + $0x23c] sm:$0xf]  ;;  %v4199_v17 = vld [vmem:[%s7406_s3 + $0x254] sm:$0xf0] }
 0x35b   :  { %2561 = vmatpush.bf16.msra.mxu2 %v4030_v21  ;;  %2574 = vmatpush.bf16.msra.mxu3 %v4254_v4  ;;  %v4121_v21 = vld [vmem:[%s7406_s3 + $0x198] sm:$0xf]  ;;  %v4996_v4 = vld [vmem:[%s7406_s3 + $0x1b0] sm:$0xf0] }
 0x35c   :  { %2587 = vmatpush.bf16.msra.mxu0 %v4478_v24  ;;  %v5041_v24 = vld [vmem:[%s7406_s3 + $0x31c] sm:$0xf]  ;;  %v4122_v32 = vor.u32 %v4996_v4, %v4121_v21  ;;  %v4202_v21 = vor.u32 %v5013_v16, %v4199_v17  ;;  %v3981_v4 = vld [vmem:[%s7406_s3 + $0x80] sm:$0xf]  ;;  %v4513_v17 = vld [vmem:[%s7406_s3 + $0x4a8] sm:$0xf] }
 0x35d   :  { %2527 = vmatmul.bf16.vlgmr.msrb.gmra.mxu0 %v6459_v54  ;;  %2540 = vmatmul.bf16.vlgmr.msrb.gmra.mxu1 %v6461_v55  ;;  %v4314_v34 = vor.u32 %v5041_v24, %v4311_v25  ;;  %v5006_v25 = vld [vmem:[%s7406_s3 + $0x204] sm:$0xf]  ;;  %v4095_v16 = vld [vmem:[%s7406_s3 + $0x17c] sm:$0xf0] }
 0x35e   :  { %2514 = vmatmul.bf16.vlgmr.msrb.gmra.mxu3 %v6457_v57  ;;  %4608 = vmatmul.msk.bf16.vlgmr.msrb.gmra.mxu2 %vm814_vm1, %v6463_v56 }
 0x35f   :  { %2562 = vmatpush.bf16.msra.mxu2 %v4002_v35  ;;  %2575 = vmatpush.bf16.msra.mxu3 %v4226_v36  ;;  %v4957_v35 = vld [vmem:[%s7406_s3 + $0x7c] sm:$0xf]  ;;  %v4093_v36 = vld [vmem:[%s7406_s3 + $0x160] sm:$0xf] }
 0x360   :  { %2588 = vmatpush.bf16.msra.mxu0 %v4450_v39  ;;  %2610 = vmatpush.bf16.msrb.mxu1 %v4118_v40  ;;  %v3975_v39 = vld [vmem:[%s7406_s3 + $0x94] sm:$0xf0]  ;;  %v5034_v40 = vld [vmem:[%s7406_s3 + $0x2e4] sm:$0xf]  ;;  %v4094_v44 = vor.u32 %v4989_v37, %v4093_v36  ;;  %v4174_v36 = vor.u32 %v5006_v25, %v4171_v26  ;;  %v3953_v37 = vld [vmem:[%s7406_s3 + $0x48] sm:$0xf] }
 0x361   :  { %v3978_v45 = vor.u32 %v4957_v35, %v3975_v39  ;;  %v4286_v46 = vor.u32 %v5034_v40, %v4283_v41  ;;  %v4999_v39 = vld [vmem:[%s7406_s3 + $0x1cc] sm:$0xf]  ;;  %v4067_v25 = vld [vmem:[%s7406_s3 + $0x144] sm:$0xf0]  ;;  %v4485_v26 = vld [vmem:[%s7406_s3 + $0x470] sm:$0xf] }
 0x363   :  { %2563 = vmatpush.bf16.msra.mxu2 %v3974_v47  ;;  %2576 = vmatpush.bf16.msra.mxu3 %v4198_v48  ;;  %v4950_v47 = vld [vmem:[%s7406_s3 + $0x44] sm:$0xf]  ;;  %v4065_v48 = vld [vmem:[%s7406_s3 + $0x128] sm:$0xf] }
 0x364   :  { %2589 = vmatpush.bf16.msra.mxu0 %v4422_v51  ;;  %2611 = vmatpush.bf16.msrb.mxu1 %v4090_v52  ;;  %v3947_v51 = vld [vmem:[%s7406_s3 + $0x5c] sm:$0xf0]  ;;  %v5027_v52 = vld [vmem:[%s7406_s3 + $0x2ac] sm:$0xf]  ;;  %v4066_v31 = vor.u32 %v4982_v49, %v4065_v48  ;;  %v5108_v49 = vld [vmem:[%s7406_s3 + $0x530] sm:$0xf0] }
 0x365   :  { %v3950_v58 = vor.u32 %v4950_v47, %v3947_v51  ;;  %v4569_v47 = vld [vmem:[%s7406_s3 + $0x518] sm:$0xf]  ;;  %v5115_v51 = vld [vmem:[%s7406_s3 + $0x568] sm:$0xf0] }
 0x367   :  { %2564 = vmatpush.bf16.msra.mxu2 %v3946_v59  ;;  %2577 = vmatpush.bf16.msra.mxu3 %v4170_v60  ;;  %v4258_v59 = vor.u32 %v5027_v52, %v4255_v28  ;;  %v3919_v60 = vld [vmem:[%s7406_s3 + $0x24] sm:$0xf0]  ;;  %v4146_v52 = vor.u32 %v4999_v39, %v4143_v42  ;;  %v3925_v28 = vld [vmem:[%s7406_s3 + $0x10] sm:$0xf]  ;;  %v4457_v42 = vld [vmem:[%s7406_s3 + $0x438] sm:$0xf] }
 0x368   :  { %2590 = vmatpush.bf16.msra.mxu0 %v4394_v15  ;;  %2612 = vmatpush.bf16.msrb.mxu1 %v4062_v18  ;;  %v5020_v15 = vld [vmem:[%s7406_s3 + $0x274] sm:$0xf]  ;;  %v4227_v18 = vld [vmem:[%s7406_s3 + $0x28c] sm:$0xf0]  ;;  %v3922_v7 = vor.u32 %v4943_v53, %v3919_v60  ;;  %v4233_v53 = vld [vmem:[%s7406_s3 + $0x278] sm:$0xf]  ;;  %v4570_v60 = vor.u32 %v5108_v49, %v4569_v47 }
 0x369   :  { %v4230_v8 = vor.u32 %v5020_v15, %v4227_v18  ;;  %v4123_v15 = vld [vmem:[%s7406_s3 + $0x1b4] sm:$0xf0]  ;;  %v3926_v18 = vor.u32 %v4947_v29, %v3925_v28  ;;  %v4965_v49 = vld [vmem:[%s7406_s3 + $0xbc] sm:$0xf] }
 0x36a   :  { %v5021_v28 = vld [vmem:[%s7406_s3 + $0x27c] sm:$0xf]  ;;  %v4235_v29 = vld [vmem:[%s7406_s3 + $0x294] sm:$0xf0] }
 0x36b   :  { %2565 = vmatpush.bf16.msra.mxu2 %v3918_v11  ;;  %2578 = vmatpush.bf16.msra.mxu3 %v4142_v12  ;;  %v4454_v11 = vor.u32 %v5076_v0, %v4451_v1  ;;  %v4346_v12 = vor.u32 %v5052_v3, %v4345_v2  ;;  %v4541_v0 = vld [vmem:[%s7406_s3 + $0x4e0] sm:$0xf]  ;;  %v5101_v1 = vld [vmem:[%s7406_s3 + $0x4f8] sm:$0xf0]  ;;  %v4234_v3 = vor.u32 %v5024_v62, %v4233_v53  ;;  %v5098_v53 = vld [vmem:[%s7406_s3 + $0x4e4] sm:$0xf] }
 0x36c   :  { %2591 = vmatpush.bf16.msra.mxu0 %v4366_v14  ;;  %2613 = vmatpush.bf16.msrb.mxu1 %v4034_v13  ;;  %v5069_v14 = vld [vmem:[%s7406_s3 + $0x3fc] sm:$0xf]  ;;  %v4423_v13 = vld [vmem:[%s7406_s3 + $0x414] sm:$0xf0]  ;;  %v4542_v10 = vor.u32 %v5101_v1, %v4541_v0  ;;  %v3983_v62 = vld [vmem:[%s7406_s3 + $0x9c] sm:$0xf0] }
 0x36d   :  { %4609 = vmatmul.msk.bf16.vlgmr.msra.gmra.mxu1 %vm814_vm1, %v6463_v56  ;;  %v4426_v23 = vor.u32 %v5069_v14, %v4423_v13  ;;  %v5094_v14 = vld [vmem:[%s7406_s3 + $0x4c0] sm:$0xf0]  ;;  %v4207_v0 = vld [vmem:[%s7406_s3 + $0x25c] sm:$0xf0]  ;;  %v4401_v1 = vld [vmem:[%s7406_s3 + $0x3c8] sm:$0xf] }
 0x36e   :  { %2566 = vmatmul.bf16.vlgmr.msra.gmra.mxu2 %v6457_v57  ;;  %2579 = vmatmul.bf16.vlgmr.msra.gmra.mxu3 %v6459_v54 }
 0x36f   :  { %2623 = vmatpush.bf16.msrb.mxu2 %v4342_v5  ;;  %2636 = vmatpush.bf16.msrb.mxu3 %v4566_v19  ;;  %v4317_v5 = vld [vmem:[%s7406_s3 + $0x320] sm:$0xf]  ;;  %v5045_v19 = vld [vmem:[%s7406_s3 + $0x338] sm:$0xf0] }
 0x370   :  { %2656 = vmatpush.bf16.msrb.mxu0 %v4594_v22  ;;  %2614 = vmatpush.bf16.msrb.mxu1 %v4006_v33  ;;  %v4961_v22 = vld [vmem:[%s7406_s3 + $0x98] sm:$0xf0]  ;;  %v4318_v24 = vor.u32 %v5045_v19, %v4317_v5  ;;  %v4289_v33 = vld [vmem:[%s7406_s3 + $0x2e8] sm:$0xf] }
 0x371   :  { %2592 = vmatmul.bf16.vlgmr.msra.gmra.mxu0 %v6461_v55  ;;  %v3982_v35 = vor.u32 %v4961_v22, %v3981_v4  ;;  %v4291_v4 = vld [vmem:[%s7406_s3 + $0x304] sm:$0xf0]  ;;  %v4514_v22 = vor.u32 %v5094_v14, %v4513_v17  ;;  %v4373_v14 = vld [vmem:[%s7406_s3 + $0x390] sm:$0xf] }
 0x372   :  { %v4179_v17 = vld [vmem:[%s7406_s3 + $0x224] sm:$0xf0] }
 0x373   :  { %2624 = vmatpush.bf16.msrb.mxu2 %v4314_v34  ;;  %2637 = vmatpush.bf16.msrb.mxu3 %v4538_v38  ;;  %v5038_v34 = vld [vmem:[%s7406_s3 + $0x300] sm:$0xf0] }
 0x374   :  { %2662 = vmatpush.bf16.msra.mxu0 %v4122_v32  ;;  %2615 = vmatpush.bf16.msrb.mxu1 %v3978_v45  ;;  %v4395_v32 = vld [vmem:[%s7406_s3 + $0x3dc] sm:$0xf0]  ;;  %v4954_v38 = vld [vmem:[%s7406_s3 + $0x60] sm:$0xf0]  ;;  %v4290_v41 = vor.u32 %v5038_v34, %v4289_v33  ;;  %v4261_v45 = vld [vmem:[%s7406_s3 + $0x2b0] sm:$0xf] }
 0x375   :  { %v4398_v40 = vor.u32 %v5062_v27, %v4395_v32  ;;  %v3954_v48 = vor.u32 %v4954_v38, %v3953_v37  ;;  %v5087_v27 = vld [vmem:[%s7406_s3 + $0x488] sm:$0xf0]  ;;  %v4149_v33 = vld [vmem:[%s7406_s3 + $0x1d0] sm:$0xf]  ;;  %v5028_v37 = vld [vmem:[%s7406_s3 + $0x2b4] sm:$0xf] }
 0x376   :  { %v4263_v38 = vld [vmem:[%s7406_s3 + $0x2cc] sm:$0xf0]  ;;  %v4486_v39 = vor.u32 %v5087_v27, %v4485_v26  ;;  %v5000_v27 = vld [vmem:[%s7406_s3 + $0x1d4] sm:$0xf] }
 0x377   :  { %2625 = vmatpush.bf16.msrb.mxu2 %v4286_v46  ;;  %2638 = vmatpush.bf16.msrb.mxu3 %v4510_v50  ;;  %v5031_v46 = vld [vmem:[%s7406_s3 + $0x2c8] sm:$0xf0]  ;;  %v4597_v50 = vld [vmem:[%s7406_s3 + $0x550] sm:$0xf] }
 0x378   :  { %2663 = vmatpush.bf16.msra.mxu0 %v4094_v44  ;;  %2616 = vmatpush.bf16.msrb.mxu1 %v3950_v58  ;;  %v4367_v44 = vld [vmem:[%s7406_s3 + $0x3a4] sm:$0xf0]  ;;  %v5049_v58 = vld [vmem:[%s7406_s3 + $0x35c] sm:$0xf]  ;;  %v4598_v61 = vor.u32 %v5115_v51, %v4597_v50  ;;  %v4011_v50 = vld [vmem:[%s7406_s3 + $0xd4] sm:$0xf0] }
 0x379   :  { %v4370_v30 = vor.u32 %v5055_v43, %v4367_v44  ;;  %v5080_v43 = vld [vmem:[%s7406_s3 + $0x450] sm:$0xf0]  ;;  %v5105_v44 = vld [vmem:[%s7406_s3 + $0x51c] sm:$0xf]  ;;  %v3927_v26 = vld [vmem:[%s7406_s3 + $0x2c] sm:$0xf0] }
 0x37a   :  { %v4458_v51 = vor.u32 %v5080_v43, %v4457_v42  ;;  %v5109_v42 = vld [vmem:[%s7406_s3 + $0x538] sm:$0xf0] }
 0x37b   :  { %2626 = vmatpush.bf16.msrb.mxu2 %v4258_v59  ;;  %2639 = vmatpush.bf16.msrb.mxu3 %v4482_v63  ;;  %v4347_v59 = vld [vmem:[%s7406_s3 + $0x374] sm:$0xf0]  ;;  %v4993_v63 = vld [vmem:[%s7406_s3 + $0x19c] sm:$0xf] }
 0x37c   :  { %2664 = vmatpush.bf16.msra.mxu0 %v4066_v31  ;;  %2617 = vmatpush.bf16.msrb.mxu1 %v3922_v7  ;;  %v4262_v31 = vor.u32 %v5031_v46, %v4261_v45  ;;  %v4350_v2 = vor.u32 %v5049_v58, %v4347_v59  ;;  %v4205_v7 = vld [vmem:[%s7406_s3 + $0x240] sm:$0xf]  ;;  %v4571_v45 = vld [vmem:[%s7406_s3 + $0x534] sm:$0xf0]  ;;  %v4266_v46 = vor.u32 %v5028_v37, %v4263_v38  ;;  %v4997_v37 = vld [vmem:[%s7406_s3 + $0x1b8] sm:$0xf0] }
 0x37d   :  { %v4543_v58 = vld [vmem:[%s7406_s3 + $0x4fc] sm:$0xf0]  ;;  %v4014_v59 = vor.u32 %v4965_v49, %v4011_v50  ;;  %v4101_v49 = vld [vmem:[%s7406_s3 + $0x168] sm:$0xf] }
 0x37e   :  { %v4353_v38 = vld [vmem:[%s7406_s3 + $0x360] sm:$0xf] }
 0x37f   :  { %2627 = vmatpush.bf16.msrb.mxu2 %v4230_v8  ;;  %2640 = vmatpush.bf16.msrb.mxu3 %v4454_v11  ;;  %v5042_v8 = vld [vmem:[%s7406_s3 + $0x324] sm:$0xf]  ;;  %v5017_v11 = vld [vmem:[%s7406_s3 + $0x258] sm:$0xf0] }
 0x380   :  { %2665 = vmatpush.bf16.msra.mxu0 %v4038_v6  ;;  %2675 = vmatpush.bf16.msra.mxu1 %v4346_v12  ;;  %v4126_v6 = vor.u32 %v4993_v63, %v4123_v15  ;;  %v4986_v12 = vld [vmem:[%s7406_s3 + $0x164] sm:$0xf]  ;;  %v4322_v13 = vor.u32 %v5042_v8, %v4319_v9  ;;  %v4206_v5 = vor.u32 %v5017_v11, %v4205_v7  ;;  %v4951_v9 = vld [vmem:[%s7406_s3 + $0x4c] sm:$0xf] }
 0x381   :  { %4610 = vmatmul.msk.bf16.vlgmr.msrb.gmra.mxu0 %vm814_vm1, %v6463_v56  ;;  %2618 = vmatmul.bf16.vlgmr.msrb.gmra.mxu1 %v6457_v57  ;;  %v4098_v19 = vor.u32 %v4986_v12, %v4095_v16  ;;  %v4546_v15 = vor.u32 %v5098_v53, %v4543_v58  ;;  %v5007_v16 = vld [vmem:[%s7406_s3 + $0x20c] sm:$0xf] }
 0x383   :  { %2628 = vmatpush.bf16.msrb.mxu2 %v4202_v21  ;;  %2641 = vmatpush.bf16.msrb.mxu3 %v4426_v23  ;;  %v5035_v21 = vld [vmem:[%s7406_s3 + $0x2ec] sm:$0xf]  ;;  %v5010_v23 = vld [vmem:[%s7406_s3 + $0x220] sm:$0xf0] }
 0x384   :  { %2666 = vmatpush.bf16.msra.mxu0 %v4010_v20  ;;  %2676 = vmatpush.bf16.msra.mxu1 %v4318_v24  ;;  %v4177_v20 = vld [vmem:[%s7406_s3 + $0x208] sm:$0xf]  ;;  %v4979_v24 = vld [vmem:[%s7406_s3 + $0x12c] sm:$0xf]  ;;  %v4294_v32 = vor.u32 %v5035_v21, %v4291_v4  ;;  %v4599_v21 = vld [vmem:[%s7406_s3 + $0x56c] sm:$0xf0] }
 0x385   :  { %v4178_v34 = vor.u32 %v5010_v23, %v4177_v20  ;;  %v5112_v20 = vld [vmem:[%s7406_s3 + $0x554] sm:$0xf] }
 0x386   :  { %v4944_v23 = vld [vmem:[%s7406_s3 + $0x14] sm:$0xf] }
 0x387   :  { %2629 = vmatpush.bf16.msrb.mxu2 %v4174_v36  ;;  %2642 = vmatpush.bf16.msrb.mxu3 %v4398_v40  ;;  %v5003_v36 = vld [vmem:[%s7406_s3 + $0x1e8] sm:$0xf0]  ;;  %v4972_v40 = vld [vmem:[%s7406_s3 + $0xf4] sm:$0xf] }
 0x388   :  { %2667 = vmatpush.bf16.msra.mxu0 %v3982_v35  ;;  %2677 = vmatpush.bf16.msra.mxu1 %v4290_v41  ;;  %v4070_v35 = vor.u32 %v4979_v24, %v4067_v25  ;;  %v4039_v41 = vld [vmem:[%s7406_s3 + $0x10c] sm:$0xf0]  ;;  %v4150_v47 = vor.u32 %v5003_v36, %v4149_v33  ;;  %v4602_v33 = vor.u32 %v5112_v20, %v4599_v21  ;;  %v4129_v36 = vld [vmem:[%s7406_s3 + $0x1a0] sm:$0xf] }
 0x38b   :  { %2630 = vmatpush.bf16.msrb.mxu2 %v4146_v52  ;;  %2643 = vmatpush.bf16.msrb.mxu3 %v4370_v30  ;;  %v4574_v52 = vor.u32 %v5105_v44, %v4571_v45  ;;  %v4429_v30 = vld [vmem:[%s7406_s3 + $0x400] sm:$0xf]  ;;  %v4130_v45 = vor.u32 %v4997_v37, %v4129_v36  ;;  %v3989_v36 = vld [vmem:[%s7406_s3 + $0x88] sm:$0xf] }
 0x38c   :  { %2668 = vmatpush.bf16.msra.mxu0 %v3954_v48  ;;  %2678 = vmatpush.bf16.msra.mxu1 %v4262_v31  ;;  %v4042_v48 = vor.u32 %v4972_v40, %v4039_v41  ;;  %v5073_v31 = vld [vmem:[%s7406_s3 + $0x418] sm:$0xf0]  ;;  %v3930_v40 = vor.u32 %v4944_v23, %v3927_v26  ;;  %v4577_v41 = vld [vmem:[%s7406_s3 + $0x520] sm:$0xf] }
 0x38d   :  { %v4430_v63 = vor.u32 %v5073_v31, %v4429_v30  ;;  %v4578_v50 = vor.u32 %v5109_v42, %v4577_v41  ;;  %v5102_v30 = vld [vmem:[%s7406_s3 + $0x500] sm:$0xf0]  ;;  %v4969_v23 = vld [vmem:[%s7406_s3 + $0xd8] sm:$0xf0]  ;;  %v4437_v41 = vld [vmem:[%s7406_s3 + $0x408] sm:$0xf] }
 0x38e   :  { %2631 = vmatmul.bf16.vlgmr.msrb.gmra.mxu2 %v6459_v54  ;;  %2644 = vmatmul.bf16.vlgmr.msrb.gmra.mxu3 %v6461_v55  ;;  %v5074_v42 = vld [vmem:[%s7406_s3 + $0x420] sm:$0xf0] }
 0x38f   :  { %2688 = vmatpush.bf16.msra.mxu2 %v4570_v60  ;;  %2708 = vmatpush.bf16.msra.mxu3 %v4598_v61  ;;  %v4238_v60 = vor.u32 %v5021_v28, %v4235_v29  ;;  %v4958_v61 = vld [vmem:[%s7406_s3 + $0x84] sm:$0xf]  ;;  %v4549_v29 = vld [vmem:[%s7406_s3 + $0x4e8] sm:$0xf] }
 0x390   :  { %2669 = vmatpush.bf16.msra.mxu0 %v3926_v18  ;;  %2679 = vmatpush.bf16.msra.mxu1 %v4234_v3  ;;  %v5014_v18 = vld [vmem:[%s7406_s3 + $0x244] sm:$0xf]  ;;  %v5091_v3 = vld [vmem:[%s7406_s3 + $0x4ac] sm:$0xf]  ;;  %v3986_v7 = vor.u32 %v4958_v61, %v3983_v62  ;;  %v4073_v61 = vld [vmem:[%s7406_s3 + $0x130] sm:$0xf]  ;;  %v4550_v62 = vor.u32 %v5102_v30, %v4549_v29 }
 0x391   :  { %v4210_v8 = vor.u32 %v5014_v18, %v4207_v0  ;;  %v5046_v28 = vld [vmem:[%s7406_s3 + $0x340] sm:$0xf0]  ;;  %v5039_v18 = vld [vmem:[%s7406_s3 + $0x308] sm:$0xf0]  ;;  %v4521_v0 = vld [vmem:[%s7406_s3 + $0x4b0] sm:$0xf] }
 0x392   :  { %v3933_v29 = vld [vmem:[%s7406_s3 + $0x18] sm:$0xf] }
 0x393   :  { %2714 = vmatpush.bf16.msrb.mxu3 %v4126_v6  ;;  %2689 = vmatpush.bf16.msra.mxu2 %v4542_v10  ;;  %v4515_v6 = vld [vmem:[%s7406_s3 + $0x4c4] sm:$0xf0] }
 0x394   :  { %2727 = vmatpush.bf16.msrb.mxu0 %v4350_v2  ;;  %2680 = vmatpush.bf16.msra.mxu1 %v4206_v5  ;;  %v5066_v2 = vld [vmem:[%s7406_s3 + $0x3e0] sm:$0xf0]  ;;  %v3955_v10 = vld [vmem:[%s7406_s3 + $0x64] sm:$0xf0]  ;;  %v4518_v12 = vor.u32 %v5091_v3, %v4515_v6  ;;  %v5084_v5 = vld [vmem:[%s7406_s3 + $0x474] sm:$0xf] }
 0x395   :  { %2670 = vmatmul.bf16.vlgmr.msra.gmra.mxu0 %v6457_v57  ;;  %v4402_v11 = vor.u32 %v5066_v2, %v4401_v1  ;;  %v3958_v4 = vor.u32 %v4951_v9, %v3955_v10  ;;  %v5095_v1 = vld [vmem:[%s7406_s3 + $0x4c8] sm:$0xf0]  ;;  %v5056_v3 = vld [vmem:[%s7406_s3 + $0x394] sm:$0xf]  ;;  %v4045_v9 = vld [vmem:[%s7406_s3 + $0xf8] sm:$0xf] }
 0x396   :  { %v4976_v10 = vld [vmem:[%s7406_s3 + $0x110] sm:$0xf0] }
 0x397   :  { %2715 = vmatpush.bf16.msrb.mxu3 %v4098_v19  ;;  %2690 = vmatpush.bf16.msra.mxu2 %v4514_v22  ;;  %v4487_v19 = vld [vmem:[%s7406_s3 + $0x48c] sm:$0xf0]  ;;  %v4182_v22 = vor.u32 %v5007_v16, %v4179_v17  ;;  %v5032_v16 = vld [vmem:[%s7406_s3 + $0x2d0] sm:$0xf0]  ;;  %v4493_v17 = vld [vmem:[%s7406_s3 + $0x478] sm:$0xf]  ;;  %v4046_v20 = vor.u32 %v4976_v10, %v4045_v9 }
 0x398   :  { %2728 = vmatpush.bf16.msrb.mxu0 %v4322_v13  ;;  %2681 = vmatpush.bf16.msra.mxu1 %v4178_v34  ;;  %v5059_v13 = vld [vmem:[%s7406_s3 + $0x3a8] sm:$0xf0]  ;;  %v4490_v25 = vor.u32 %v5084_v5, %v4487_v19  ;;  %v5077_v34 = vld [vmem:[%s7406_s3 + $0x43c] sm:$0xf]  ;;  %v5116_v5 = vld [vmem:[%s7406_s3 + $0x570] sm:$0xf0] }
 0x399   :  { %v4374_v24 = vor.u32 %v5059_v13, %v4373_v14  ;;  %v5088_v14 = vld [vmem:[%s7406_s3 + $0x490] sm:$0xf0]  ;;  %v4605_v13 = vld [vmem:[%s7406_s3 + $0x558] sm:$0xf] }
 0x39a   :  { %v4606_v26 = vor.u32 %v5116_v5, %v4605_v13  ;;  %v5120_v9 = vld [vmem:[%s7407_s4 + $0x18] sm:$0xff]  ;;  %v5131_v10 = vld [vmem:[%s7407_s4 + $0x70] sm:$0xff] }
 0x39b   :  { %2716 = vmatpush.bf16.msrb.mxu3 %v4070_v35  ;;  %2691 = vmatpush.bf16.msra.mxu2 %v4486_v39  ;;  %v4459_v35 = vld [vmem:[%s7406_s3 + $0x454] sm:$0xf0]  ;;  %v5053_v39 = vld [vmem:[%s7406_s3 + $0x378] sm:$0xf0] }
 0x39c   :  { %2729 = vmatpush.bf16.msrb.mxu0 %v4294_v32  ;;  %2682 = vmatpush.bf16.msra.mxu1 %v4150_v47  ;;  %v4151_v32 = vld [vmem:[%s7406_s3 + $0x1ec] sm:$0xf0]  ;;  %v4462_v44 = vor.u32 %v5077_v34, %v4459_v35  ;;  %v5070_v47 = vld [vmem:[%s7406_s3 + $0x404] sm:$0xf] }
 0x39d   :  { %v4154_v43 = vor.u32 %v5000_v27, %v4151_v32  ;;  %v4465_v27 = vld [vmem:[%s7406_s3 + $0x440] sm:$0xf]  ;;  %v5081_v32 = vld [vmem:[%s7406_s3 + $0x458] sm:$0xf0] }
 0x39e   :  { %4611 = vmatmul.msk.bf16.vlgmr.msra.gmra.mxu3 %vm814_vm1, %v6463_v56  ;;  %v4466_v37 = vor.u32 %v5081_v32, %v4465_v27  ;;  %v5136_v27 = vld [vmem:[%s7407_s4 + $0x98] sm:$0xff] }
 0x39f   :  { %2717 = vmatpush.bf16.msrb.mxu3 %v4042_v48  ;;  %2692 = vmatpush.bf16.msra.mxu2 %v4458_v51  ;;  %v4431_v48 = vld [vmem:[%s7406_s3 + $0x41c] sm:$0xf0]  ;;  %v4990_v51 = vld [vmem:[%s7406_s3 + $0x180] sm:$0xf0] }
 0x3a0   :  { %2730 = vmatpush.bf16.msrb.mxu0 %v4266_v46  ;;  %2740 = vmatpush.bf16.msrb.mxu1 %v4574_v52  ;;  %v4354_v46 = vor.u32 %v5053_v39, %v4353_v38  ;;  %v4325_v52 = vld [vmem:[%s7406_s3 + $0x328] sm:$0xf]  ;;  %v4434_v31 = vor.u32 %v5070_v47, %v4431_v48  ;;  %v4102_v53 = vor.u32 %v4990_v51, %v4101_v49  ;;  %v4962_v38 = vld [vmem:[%s7406_s3 + $0xa0] sm:$0xf0]  ;;  %v4955_v48 = vld [vmem:[%s7406_s3 + $0x68] sm:$0xf0] }
 0x3a1   :  { %2683 = vmatmul.bf16.vlgmr.msra.gmra.mxu1 %v6459_v54  ;;  %v4326_v58 = vor.u32 %v5046_v28, %v4325_v52  ;;  %v4213_v39 = vld [vmem:[%s7406_s3 + $0x248] sm:$0xf]  ;;  %v4438_v47 = vor.u32 %v5074_v42, %v4437_v41  ;;  %v4185_v49 = vld [vmem:[%s7406_s3 + $0x210] sm:$0xf]  ;;  %v5067_v52 = vld [vmem:[%s7406_s3 + $0x3e8] sm:$0xf0] }
 0x3a2   :  { %v4409_v51 = vld [vmem:[%s7406_s3 + $0x3d0] sm:$0xf]  ;;  %v5122_v28 = vld [vmem:[%s7407_s4 + $0x28] sm:$0xff] }
 0x3a3   :  { %2718 = vmatpush.bf16.msrb.mxu3 %v4014_v59  ;;  %2693 = vmatpush.bf16.msra.mxu2 %v4430_v63  ;;  %v5063_v59 = vld [vmem:[%s7406_s3 + $0x3cc] sm:$0xf] }
 0x3a4   :  { %2731 = vmatpush.bf16.msrb.mxu0 %v4238_v60  ;;  %2741 = vmatpush.bf16.msrb.mxu1 %v4546_v15  ;;  %v4403_v60 = vld [vmem:[%s7406_s3 + $0x3e4] sm:$0xf0]  ;;  %v4983_v63 = vld [vmem:[%s7406_s3 + $0x148] sm:$0xf0]  ;;  %v4297_v15 = vld [vmem:[%s7406_s3 + $0x2f0] sm:$0xf] }
 0x3a5   :  { %v4406_v2 = vor.u32 %v5063_v59, %v4403_v60  ;;  %v4074_v6 = vor.u32 %v4983_v63, %v4073_v61  ;;  %v5004_v59 = vld [vmem:[%s7406_s3 + $0x1f0] sm:$0xf0]  ;;  %v4410_v60 = vor.u32 %v5067_v52, %v4409_v51  ;;  %v4381_v63 = vld [vmem:[%s7406_s3 + $0x398] sm:$0xf]  ;;  %v5134_v42 = vld [vmem:[%s7407_s4 + $0x88] sm:$0xff] }
 0x3a6   :  { %v3905_v61 = vld [vmem:[%s7408_s5 + $0x7] ss:$8 sm:$0xf] }
 0x3a7   :  { %2719 = vmatpush.bf16.msrb.mxu3 %v3986_v7  ;;  %2694 = vmatpush.bf16.msra.mxu2 %v4402_v11  ;;  %v4298_v7 = vor.u32 %v5039_v18, %v4297_v15  ;;  %v4522_v11 = vor.u32 %v5095_v1, %v4521_v0  ;;  %v5060_v15 = vld [vmem:[%s7406_s3 + $0x3b0] sm:$0xf0]  ;;  %v5121_v18 = vld [vmem:[%s7407_s4 + $0x20] sm:$0xff]  ;;  %v5146_v51 = vld [vmem:[%s7407_s4 + $0xe8] sm:$0xff] }
 0x3a8   :  { %2732 = vmatpush.bf16.msrb.mxu0 %v4210_v8  ;;  %2742 = vmatpush.bf16.msrb.mxu1 %v4518_v12  ;;  %v4375_v8 = vld [vmem:[%s7406_s3 + $0x3ac] sm:$0xf0]  ;;  %v4269_v12 = vld [vmem:[%s7406_s3 + $0x2b8] sm:$0xf] }
 0x3a9   :  { %v4378_v19 = vor.u32 %v5056_v3, %v4375_v8  ;;  %v4270_v21 = vor.u32 %v5032_v16, %v4269_v12  ;;  %v4382_v3 = vor.u32 %v5060_v15, %v4381_v63  ;;  %v5139_v16 = vld [vmem:[%s7407_s4 + $0xb0] sm:$0xff] }
 0x3aa   :  { %v5143_v15 = vld [vmem:[%s7407_s4 + $0xd0] sm:$0xff] }
 0x3ab   :  { %2720 = vmatpush.bf16.msrb.mxu3 %v3958_v4  ;;  %2695 = vmatpush.bf16.msra.mxu2 %v4374_v24  ;;  %v4017_v4 = vld [vmem:[%s7406_s3 + $0xc0] sm:$0xf] }
 0x3ac   :  { %2733 = vmatpush.bf16.msrb.mxu0 %v4182_v22  ;;  %2743 = vmatpush.bf16.msrb.mxu1 %v4490_v25  ;;  %v4494_v22 = vor.u32 %v5088_v14, %v4493_v17  ;;  %v4241_v24 = vld [vmem:[%s7406_s3 + $0x280] sm:$0xf]  ;;  %v5025_v25 = vld [vmem:[%s7406_s3 + $0x298] sm:$0xf0]  ;;  %v4018_v34 = vor.u32 %v4969_v23, %v4017_v4  ;;  %v5119_v14 = vld [vmem:[%s7407_s4 + $0x10] sm:$0xff] }
 0x3ad   :  { %v4242_v35 = vor.u32 %v5025_v25, %v4241_v24  ;;  %v5117_v24 = vld [vmem:[%s7407_s4] sm:$0xff]  ;;  %v5128_v25 = vld [vmem:[%s7407_s4 + $0x58] sm:$0xff] }
 0x3ae   :  { %2696 = vmatmul.bf16.vlgmr.msra.gmra.mxu2 %v6461_v55 }
 0x3af   :  { %2760 = vmatpush.bf16.msrb.mxu2 %v4602_v33  ;;  %2721 = vmatpush.bf16.msrb.mxu3 %v3930_v40  ;;  %v5124_v33 = vld [vmem:[%s7407_s4 + $0x38] sm:$0xff]  ;;  %v5018_v40 = vld [vmem:[%s7406_s3 + $0x260] sm:$0xf0] }
 0x3b0   :  { %2734 = vmatpush.bf16.msrb.mxu0 %v4154_v43  ;;  %2744 = vmatpush.bf16.msrb.mxu1 %v4462_v44  ;;  %v5123_v43 = vld [vmem:[%s7407_s4 + $0x30] sm:$0xff]  ;;  %v3990_v44 = vor.u32 %v4962_v38, %v3989_v36 }
 0x3b1   :  { %v5135_v38 = vld [vmem:[%s7407_s4 + $0x90] sm:$0xff] }
 0x3b2   :  { %2722 = vmatmul.bf16.vlgmr.msrb.gmra.mxu3 %v6457_v57 }
 0x3b3   :  { %2766 = vmatpush.bf16.msra.mxu2 %v4130_v45  ;;  %2779 = vmatpush.bf16.msra.mxu3 %v4354_v46  ;;  %v4214_v45 = vor.u32 %v5018_v40, %v4213_v39  ;;  %v3961_v46 = vld [vmem:[%s7406_s3 + $0x50] sm:$0xf]  ;;  %v5148_v39 = vld [vmem:[%s7407_s4 + $0xf8] sm:$0xff]  ;;  %v5126_v40 = vld [vmem:[%s7407_s4 + $0x48] sm:$0xff] }
 0x3b4   :  { %2792 = vmatpush.bf16.msra.mxu0 %v4578_v50  ;;  %2745 = vmatpush.bf16.msrb.mxu1 %v4434_v31  ;;  %v5011_v50 = vld [vmem:[%s7406_s3 + $0x228] sm:$0xf0]  ;;  %v3962_v30 = vor.u32 %v4955_v48, %v3961_v46  ;;  %v5125_v46 = vld [vmem:[%s7407_s4 + $0x40] sm:$0xff] }
 0x3b5   :  { %2735 = vmatmul.bf16.vlgmr.msrb.gmra.mxu0 %v6459_v54  ;;  %v4186_v31 = vor.u32 %v5011_v50, %v4185_v49  ;;  %v5133_v50 = vld [vmem:[%s7407_s4 + $0x80] sm:$0xff] }
 0x3b7   :  { %2767 = vmatpush.bf16.msra.mxu2 %v4102_v53  ;;  %2780 = vmatpush.bf16.msra.mxu3 %v4326_v58  ;;  %v4948_v53 = vld [vmem:[%s7406_s3 + $0x30] sm:$0xf0]  ;;  %v4157_v58 = vld [vmem:[%s7406_s3 + $0x1d8] sm:$0xf] }
 0x3b8   :  { %2793 = vmatpush.bf16.msra.mxu0 %v4550_v62  ;;  %2746 = vmatpush.bf16.msrb.mxu1 %v4406_v2  ;;  %v3906_v62 = vld [vmem:[%s7408_s5 + $0x7] ss:$8 sm:$0x70]  ;;  %v3934_v0 = vor.u32 %v4948_v53, %v3933_v29  ;;  %v4158_v1 = vor.u32 %v5004_v59, %v4157_v58  ;;  %v5144_v59 = vld [vmem:[%s7407_s4 + $0xd8] sm:$0xff] }
 0x3b9   :  { %v7239_v2 = vor.u32 %v3906_v62, %v3905_v61  ;;  %v5145_v29 = vld [vmem:[%s7407_s4 + $0xe0] sm:$0xff] }
 0x3bb   :  { %2768 = vmatpush.bf16.msra.mxu2 %v4074_v6  ;;  %2781 = vmatpush.bf16.msra.mxu3 %v4298_v7  ;;  %v5132_v6 = vld [vmem:[%s7407_s4 + $0x78] sm:$0xff]  ;;  %v1537_v8 = vperm.slane %v7239_v2, 0  ;;  %v1538_v41 = vperm.slane %v7239_v2, 1  ;;  %v1539_v63 = vperm.slane %v7239_v2, 2 }
 0x3bc   :  { %2794 = vmatpush.bf16.msra.mxu0 %v4522_v11  ;;  %2747 = vmatpush.bf16.msrb.mxu1 %v4378_v19  ;;  %v5140_v7 = vld [vmem:[%s7407_s4 + $0xb8] sm:$0xff]  ;;  %v5129_v19 = vld [vmem:[%s7407_s4 + $0x60] sm:$0xff] }
 0x3be   :  { %4612 = vmatmul.msk.bf16.vlgmr.msrb.gmra.mxu2 %vm814_vm1, %v6463_v56 }
 0x3bf   :  { %2769 = vmatpush.bf16.msra.mxu2 %v4046_v20  ;;  %2782 = vmatpush.bf16.msra.mxu3 %v4270_v21 }
 0x3c0   :  { %2795 = vmatpush.bf16.msra.mxu0 %v4494_v22  ;;  %2812 = vmatpush.bf16.msra.mxu1 %v4606_v26  ;;  %v5137_v22 = vld [vmem:[%s7407_s4 + $0xa0] sm:$0xff] }
 0x3c1   :  { %2748 = vmatmul.bf16.vlgmr.msrb.gmra.mxu1 %v6461_v55 }
 0x3c3   :  { %2770 = vmatpush.bf16.msra.mxu2 %v4018_v34  ;;  %2783 = vmatpush.bf16.msra.mxu3 %v4242_v35  ;;  %v5127_v35 = vld [vmem:[%s7407_s4 + $0x50] sm:$0xff] }
 0x3c4   :  { %3237 = vmatpush.bf16.msrb.mxu1 %v5124_v33  ;;  %2796 = vmatpush.bf16.msra.mxu0 %v4466_v37 }
 0x3c7   :  { %2771 = vmatpush.bf16.msra.mxu2 %v3990_v44  ;;  %2784 = vmatpush.bf16.msra.mxu3 %v4214_v45 }
 0x3c8   :  { %3238 = vmatpush.bf16.msrb.mxu1 %v5123_v43  ;;  %2797 = vmatpush.bf16.msra.mxu0 %v4438_v47  ;;  %v5147_v43 = vld [vmem:[%s7407_s4 + $0xf0] sm:$0xff] }
 0x3ca   :  { %v2463_v11 = vpop.f32.mrf.mxu0  ;;  %v2476_v12 = vpop.f32.mrf.mxu1 }
 0x3cb   :  { %2772 = vmatpush.bf16.msra.mxu2 %v3962_v30  ;;  %2785 = vmatpush.bf16.msra.mxu3 %v4186_v31  ;;  %v2464_v17 = vadd.f32 %v2463_v11, %v1537_v8 }
 0x3cc   :  { %3239 = vmatpush.bf16.msrb.mxu1 %v5122_v28  ;;  %2798 = vmatpush.bf16.msra.mxu0 %v4410_v60 }
 0x3cd   :  { %v2477_v13 = vadd.f32 %v2476_v12, %v2464_v17  ;;  %v5141_v12 = vld [vmem:[%s7407_s4 + $0xc0] sm:$0xff] }
 0x3cf   :  { %2773 = vmatpush.bf16.msra.mxu2 %v3934_v0  ;;  %2786 = vmatpush.bf16.msra.mxu3 %v4158_v1 }
 0x3d0   :  { %3240 = vmatpush.bf16.msrb.mxu1 %v5121_v18  ;;  %2799 = vmatpush.bf16.msra.mxu0 %v4382_v3 }
 0x3d1   :  { %4613 = vmatmul.msk.bf16.vlgmr.msra.gmra.mxu1 %vm814_vm1, %v6463_v56  ;;  %v5130_v56 = vld [vmem:[%s7407_s4 + $0x68] sm:$0xff]  ;;  %v2502_v5 = vpop.f32.mrf.mxu3 }
 0x3d2   :  { %2774 = vmatmul.bf16.vlgmr.msra.gmra.mxu2 %v6457_v57  ;;  %2787 = vmatmul.bf16.vlgmr.msra.gmra.mxu3 %v6459_v54  ;;  %v5138_v57 = vld [vmem:[%s7407_s4 + $0xa8] sm:$0xff]  ;;  %v2465_v21 = vpop.f32.mrf.mxu0  ;;  %v2478_v4 = vpop.f32.mrf.mxu1 }
 0x3d3   :  { %3250 = vmatpush.bf16.msrb.mxu2 %v5132_v6  ;;  %3263 = vmatpush.bf16.msrb.mxu3 %v5140_v7  ;;  %v5118_v54 = vld [vmem:[%s7407_s4 + $0x8] sm:$0xff]  ;;  %v5152_v4 = vld [vmem:[%s7407_s4 + $0x118] sm:$0xff] }
 0x3d4   :  { %2800 = vmatmul.bf16.vlgmr.msra.gmra.mxu0 %v6461_v55  ;;  %3241 = vmatpush.bf16.msrb.mxu1 %v5120_v9  ;;  %v2489_v55 = vpop.f32.mrf.mxu2  ;;  %v5142_v7 = vld [vmem:[%s7407_s4 + $0xc8] sm:$0xff] }
 0x3d5   :  { %v2490_v20 = vadd.f32 %v2489_v55, %v2477_v13  ;;  %3276 = vmatpush.bf16.msrb.mxu0 %v5148_v39  ;;  %v5154_v55 = vld [vmem:[%s7407_s4 + $0x128] sm:$0xff] }
 0x3d7   :  { %3251 = vmatpush.bf16.msrb.mxu2 %v5131_v10  ;;  %3264 = vmatpush.bf16.msrb.mxu3 %v5139_v16  ;;  %v2503_v23 = vadd.f32 %v2502_v5, %v2490_v20  ;;  %v5156_v10 = vld [vmem:[%s7407_s4 + $0x138] sm:$0xff]  ;;  %v5153_v5 = vld [vmem:[%s7407_s4 + $0x120] sm:$0xff] }
 0x3d8   :  { %3242 = vmatpush.bf16.msrb.mxu1 %v5119_v14 }
 0x3d9   :  { %v2818_v26 = vmax.f32 %v2503_v23, 0.0  ;;  %v2504_v34 = vpop.f32.mrf.mxu3  ;;  %3277 = vmatpush.bf16.msrb.mxu0 %v5147_v43  ;;  %v1540_v23 = vperm.slane %v7239_v2, 3 }
 0x3da   :  { %v2528_v36 = vpop.f32.mrf.mxu0  ;;  %v2541_v37 = vpop.f32.mrf.mxu1 }
 0x3db   :  { %3252 = vmatpush.bf16.msrb.mxu2 %v5130_v56  ;;  %3265 = vmatpush.bf16.msrb.mxu3 %v5138_v57  ;;  %v2825_v32 = vpack.c.bf16 %v2818_v26, %v2818_v26  ;;  %v5155_v56 = vld [vmem:[%s7407_s4 + $0x130] sm:$0xff]  ;;  %v5162_v26 = vld [vmem:[%s7407_s4 + $0x168] sm:$0xff] }
 0x3dc   :  { %3243 = vmatpush.bf16.msrb.mxu1 %v5118_v54  ;;  %v2491_v33 = vpop.f32.mrf.mxu2 }
 0x3dd   :  { %3278 = vmatpush.bf16.msrb.mxu0 %v5146_v51  ;;  %v5150_v33 = vld [vmem:[%s7407_s4 + $0x108] sm:$0xff] }
 0x3df   :  { %3253 = vmatpush.bf16.msrb.mxu2 %v5129_v19  ;;  %3266 = vmatpush.bf16.msrb.mxu3 %v5137_v22  ;;  %v5164_v19 = vld [vmem:[%s7407_s4 + $0x178] sm:$0xff]  ;;  %v5163_v22 = vld [vmem:[%s7407_s4 + $0x170] sm:$0xff] }
 0x3e0   :  { %3244 = vmatpush.bf16.msrb.mxu1 %v5117_v24  ;;  %v5151_v24 = vld [vmem:[%s7407_s4 + $0x110] sm:$0xff] }
 0x3e1   :  { %v2515_v44 = vpop.f32.mrf.mxu3  ;;  %3279 = vmatpush.bf16.msrb.mxu0 %v5145_v29 }
 0x3e2   :  { %v2516_v47 = vadd.f32 %v2515_v44, %v1538_v41  ;;  %v2530_v48 = vpop.f32.mrf.mxu0  ;;  %v2543_v49 = vpop.f32.mrf.mxu1  ;;  %v5160_v41 = vld [vmem:[%s7407_s4 + $0x158] sm:$0xff] }
 0x3e3   :  { %3254 = vmatpush.bf16.msrb.mxu2 %v5128_v25  ;;  %3267 = vmatpush.bf16.msrb.mxu3 %v5136_v27  ;;  %v5158_v48 = vld [vmem:[%s7407_s4 + $0x148] sm:$0xff] }
 0x3e4   :  { %3245 = vmatmul.bf16.vlgmr.msrb.gmra.mxu1 %v2825_v32  ;;  %v2554_v45 = vpop.f32.mrf.mxu2  ;;  %v2529_v52 = vadd.f32 %v2528_v36, %v2516_v47  ;;  %v5161_v36 = vld [vmem:[%s7407_s4 + $0x160] sm:$0xff] }
 0x3e5   :  { %3280 = vmatpush.bf16.msrb.mxu0 %v5144_v59  ;;  %3289 = vmatpush.bf16.msra.mxu1 %v5156_v10 }
 0x3e6   :  { %v2542_v28 = vadd.f32 %v2541_v37, %v2529_v52  ;;  %v1541_v52 = vperm.slane %v7239_v2, 4 }
 0x3e7   :  { %3255 = vmatpush.bf16.msrb.mxu2 %v5127_v35  ;;  %3268 = vmatpush.bf16.msrb.mxu3 %v5135_v38  ;;  %v5149_v38 = vld [vmem:[%s7407_s4 + $0x100] sm:$0xff] }
 0x3e8   :  { %v2555_v30 = vadd.f32 %v2554_v45, %v2542_v28 }
 0x3e9   :  { %v2517_v31 = vpop.f32.mrf.mxu3  ;;  %3281 = vmatpush.bf16.msrb.mxu0 %v5143_v15  ;;  %3290 = vmatpush.bf16.msra.mxu1 %v5155_v56  ;;  %v5166_v15 = vld [vmem:[%s7407_s4 + $0x188] sm:$0xff] }
 0x3ea   :  { %v2819_v58 = vmax.f32 %v2555_v30, 0.0  ;;  %v2606_v62 = vpop.f32.mrf.mxu1 }
 0x3eb   :  { %3256 = vmatpush.bf16.msrb.mxu2 %v5126_v40  ;;  %3269 = vmatpush.bf16.msrb.mxu3 %v5134_v42 }
 0x3ec   :  { %v2556_v53 = vpop.f32.mrf.mxu2  ;;  %v2826_v60 = vpack.c.bf16 %v2819_v58, %v2819_v58 }
 0x3ed   :  { %3282 = vmatpush.bf16.msrb.mxu0 %v5142_v7  ;;  %3291 = vmatpush.bf16.msra.mxu1 %v5154_v55 }
 0x3ee   :  { %v2593_v61 = vpop.f32.mrf.mxu0 }
 0x3ef   :  { %3257 = vmatpush.bf16.msrb.mxu2 %v5125_v46  ;;  %3270 = vmatpush.bf16.msrb.mxu3 %v5133_v50  ;;  %v5159_v46 = vld [vmem:[%s7407_s4 + $0x150] sm:$0xff]  ;;  %v5157_v50 = vld [vmem:[%s7407_s4 + $0x140] sm:$0xff] }
 0x3f1   :  { %v2580_v1 = vpop.f32.mrf.mxu3  ;;  %3283 = vmatpush.bf16.msrb.mxu0 %v5141_v12  ;;  %3292 = vmatpush.bf16.msra.mxu1 %v5153_v5 }
 0x3f2   :  { %3258 = vmatmul.bf16.vlgmr.msrb.gmra.mxu2 %v2826_v60  ;;  %v2608_v8 = vpop.f32.mrf.mxu1 }
 0x3f3   :  { %3302 = vmatpush.bf16.msra.mxu2 %v5164_v19  ;;  %3321 = vmatpush.bf16.msra.mxu3 %v5166_v15 }
 0x3f4   :  { %v2567_v18 = vpop.f32.mrf.mxu2 }
 0x3f5   :  { %v2568_v0 = vadd.f32 %v2567_v18, %v1539_v63  ;;  %3293 = vmatpush.bf16.msra.mxu1 %v5152_v4 }
 0x3f6   :  { %v2595_v6 = vpop.f32.mrf.mxu0 }
 0x3f7   :  { %v2581_v3 = vadd.f32 %v2580_v1, %v2568_v0  ;;  %3303 = vmatpush.bf16.msra.mxu2 %v5163_v22  ;;  %v5165_v6 = vld [vmem:[%s7407_s4 + $0x180] sm:$0xff] }
 0x3f8   :  { %3322 = vmatpush.bf16.msra.mxu3 %v5165_v6 }
 0x3f9   :  { %v2594_v9 = vadd.f32 %v2593_v61, %v2581_v3  ;;  %v2582_v14 = vpop.f32.mrf.mxu3  ;;  %3294 = vmatpush.bf16.msra.mxu1 %v5151_v24 }
 0x3fb   :  { %v2607_v11 = vadd.f32 %v2606_v62, %v2594_v9  ;;  %3304 = vmatpush.bf16.msra.mxu2 %v5162_v26  ;;  %v1542_v62 = vperm.slane %v7239_v2, 5 }
 0x3fc   :  { %v2569_v16 = vpop.f32.mrf.mxu2 }
 0x3fd   :  { %v2820_v17 = vmax.f32 %v2607_v11, 0.0  ;;  %3295 = vmatpush.bf16.msra.mxu1 %v5150_v33 }
 0x3fe   :  { %v2658_v13 = vpop.f32.mrf.mxu0  ;;  %v2619_v54 = vpop.f32.mrf.mxu1 }
 0x3ff   :  { %v2827_v57 = vpack.c.bf16 %v2820_v17, %v2820_v17  ;;  %v2620_v27 = vadd.f32 %v2619_v54, %v1540_v23  ;;  %3305 = vmatpush.bf16.msra.mxu2 %v5161_v36 }
 0x401   :  { %3271 = vmatmul.bf16.vlgmr.msrb.gmra.mxu3 %v2827_v57  ;;  %3296 = vmatpush.bf16.msra.mxu1 %v5149_v38 }
 0x403   :  { %3306 = vmatpush.bf16.msra.mxu2 %v5160_v41 }
 0x406   :  { %v2660_v20 = vpop.f32.mrf.mxu0  ;;  %v2621_v21 = vpop.f32.mrf.mxu1 }
 0x407   :  { %3307 = vmatpush.bf16.msra.mxu2 %v5159_v46  ;;  %v5221_v46 = vmov 1  }
 0x408   :  { %5174 = vset.pattern.permute.xlu2 %v5221_v46  ;;  %5175 = vset.pattern.permute.xlu0 %v5221_v46 }
 0x40b   :  { %3308 = vmatpush.bf16.msra.mxu2 %v5158_v48 }
 0x40f   :  { %3309 = vmatpush.bf16.msra.mxu2 %v5157_v50 }
 0x411   :  { %v2632_v32 = vpop.f32.mrf.mxu2  ;;  %v2645_v35 = vpop.f32.mrf.mxu3 }
 0x412   :  { %v2671_v25 = vpop.f32.mrf.mxu0  ;;  %v2633_v34 = vadd.f32 %v2632_v32, %v2620_v27 }
 0x413   :  { %v2672_v29 = vadd.f32 %v2671_v25, %v1541_v52 }
 0x414   :  { %v2646_v37 = vadd.f32 %v2645_v35, %v2633_v34 }
 0x416   :  { %v2659_v39 = vadd.f32 %v2658_v13, %v2646_v37  ;;  %v1543_v13 = vperm.slane %v7239_v2, 6  ;;  %v2932_v2 = vld [vmem:[%s7408_s5 + $0x38] ss:$0 sm:$0xff] }
 0x418   :  { %v2821_v42 = vmax.f32 %v2659_v39, 0.0 }
 0x419   :  { %v2634_v43 = vpop.f32.mrf.mxu2  ;;  %v2647_v45 = vpop.f32.mrf.mxu3 }
 0x41a   :  { %v2673_v40 = vpop.f32.mrf.mxu0  ;;  %v2828_v44 = vpack.c.bf16 %v2821_v42, %v2821_v42 }
 0x41c   :  { %3284 = vmatmul.bf16.vlgmr.msrb.gmra.mxu0 %v2828_v44 }
 0x41e   :  { %v2684_v47 = vpop.f32.mrf.mxu1 }
 0x41f   :  { %v2685_v31 = vadd.f32 %v2684_v47, %v2672_v29  ;;  %v5192_v47 = vld [vmem:[%s7408_s5 + $0x3a] ss:$0 sm:$0xff]  ;;  %v3329_v29 = vld [vmem:[%s7408_s5 + $0x39] ss:$0 sm:$0xff] }
 0x420   :  { %3332 = vperm.xlu2 %5174, %v5192_v47  }
 0x421   :  { %v2710_v49 = vpop.f32.mrf.mxu3 }
 0x426   :  { %v2686_v51 = vpop.f32.mrf.mxu1 }
 0x429   :  { %v2712_v28 = vpop.f32.mrf.mxu3 }
 0x431   :  { %v2697_v53 = vpop.f32.mrf.mxu2 }
 0x432   :  { %v2736_v30 = vpop.f32.mrf.mxu0  ;;  %v2698_v58 = vadd.f32 %v2697_v53, %v2685_v31 }
 0x434   :  { %v2711_v59 = vadd.f32 %v2710_v49, %v2698_v58 }
 0x435   :  { %v2723_v60 = vpop.f32.mrf.mxu3 }
 0x436   :  { %v2822_v61 = vmax.f32 %v2711_v59, 0.0  ;;  %v2724_v1 = vadd.f32 %v2723_v60, %v1542_v62 }
 0x438   :  { %v2829_v18 = vpack.c.bf16 %v2822_v61, %v2822_v61  ;;  %v2737_v8 = vadd.f32 %v2736_v30, %v2724_v1 }
 0x439   :  { %v2699_v0 = vpop.f32.mrf.mxu2 }
 0x43a   :  { %v2738_v63 = vpop.f32.mrf.mxu0  ;;  %3297 = vmatmul.bf16.vlgmr.msra.gmra.mxu1 %v2829_v18 }
 0x43d   :  { %v2725_v7 = vpop.f32.mrf.mxu3 }
 0x43e   :  { %v2749_v3 = vpop.f32.mrf.mxu1 }
 0x43f   :  { %v2750_v9 = vadd.f32 %v2749_v3, %v2737_v8 }
 0x441   :  { %v2762_v10 = vpop.f32.mrf.mxu2 }
 0x442   :  { %v2763_v11 = vadd.f32 %v2762_v10, %v2750_v9 }
 0x444   :  { %v2823_v16 = vmax.f32 %v2763_v11, 0.0 }
 0x446   :  { %v2751_v12 = vpop.f32.mrf.mxu1  ;;  %v2830_v17 = vpack.c.bf16 %v2823_v16, %v2823_v16 }
 0x448   :  { %3310 = vmatmul.bf16.vlgmr.msra.gmra.mxu2 %v2830_v17 }
 0x449   :  { %v2764_v14 = vpop.f32.mrf.mxu2 }
 0x44e   :  { %v2814_v56 = vpop.f32.mrf.mxu1 }
 0x451   :  { %v2801_v57 = vpop.f32.mrf.mxu0 }
 0x455   :  { %v2775_v54 = vpop.f32.mrf.mxu2  ;;  %v2788_v55 = vpop.f32.mrf.mxu3 }
 0x456   :  { %v2776_v5 = vadd.f32 %v2775_v54, %v1543_v13  ;;  %v2816_v19 = vpop.f32.mrf.mxu1 }
 0x458   :  { %v2789_v20 = vadd.f32 %v2788_v55, %v2776_v5 }
 0x459   :  { %v2803_v21 = vpop.f32.mrf.mxu0 }
 0x45a   :  { %v2802_v4 = vadd.f32 %v2801_v57, %v2789_v20 }
 0x45c   :  { %v2815_v22 = vadd.f32 %v2814_v56, %v2802_v4 }
 0x45d   :  { %v2777_v23 = vpop.f32.mrf.mxu2  ;;  %v2790_v24 = vpop.f32.mrf.mxu3 }
 0x45e   :  { %v2824_v25 = vmax.f32 %v2815_v22, 0.0 }
 0x460   :  { %v2831_v27 = vpack.c.bf16 %v2824_v25, %v2824_v25 }
 0x461   :  { %v3246_v26 = vpop.f32.mrf.mxu1 }
 0x462   :  { %4814 = vmatmul.msk.bf16.vlgmr.msra.gmra.mxu3 %vm3233_vm14, %v2831_v27  ;;  %v3247_v33 = vadd.f32 %v3246_v26, %v2932_v2 }
 0x469   :  { %v3248_v32 = vpop.f32.mrf.mxu1 }
 0x475   :  { %v3259_v34 = vpop.f32.mrf.mxu2 }
 0x476   :  { %v3260_v35 = vadd.f32 %v3259_v34, %v3247_v33 }
 0x47a   :  { %v3333_v31 = vpop.permute.xlu2 %3332 }
 0x47d   :  { %v3261_v36 = vpop.f32.mrf.mxu2 }
 0x484   :  { %v3272_v37 = vpop.f32.mrf.mxu3 }
 0x485   :  { %v3273_v38 = vadd.f32 %v3272_v37, %v3260_v35 }
 0x48c   :  { %v3274_v39 = vpop.f32.mrf.mxu3 }
 0x499   :  { %v3285_v40 = vpop.f32.mrf.mxu0 }
 0x49a   :  { %v3286_v41 = vadd.f32 %v3285_v40, %v3273_v38 }
 0x4a1   :  { %v3287_v42 = vpop.f32.mrf.mxu0 }
 0x4b7   :  { %v3298_v43 = vpop.f32.mrf.mxu1 }
 0x4b8   :  { %v3299_v49 = vadd.f32 %v3298_v43, %v3286_v41 }
 0x4bf   :  { %v3300_v44 = vpop.f32.mrf.mxu1 }
 0x4cb   :  { %v3311_v45 = vpop.f32.mrf.mxu2 }
 0x4cc   :  { %v3312_v50 = vadd.f32 %v3311_v45, %v3299_v49 }
 0x4d3   :  { %v3313_v48 = vpop.f32.mrf.mxu2 }
 0x4e5   :  { %v3324_v51 = vpop.f32.mrf.mxu3 }
 0x4e6   :  { %v3325_v52 = vadd.f32 %v3324_v51, %v3312_v50 }
 0x4e8   :  { %v3328_v28 = vmax.f32 %v3325_v52, 0.0 }
 0x4ea   :  { %4815 = vmatpush.xpose.msk.msra.mxu0 %vm3335_vm15, %v3328_v28 }
 0x4ed   :  { %v3326_v30 = vpop.f32.mrf.mxu3  ;;  %4816 = vmatmul.msk.f32.vlgmr.msra.gmra.mxu0 %vm3335_vm15, %v3329_v29 }
 0x56a   :  { %v3359_v53 = vpop.f32.mrf.mxu0 }
 0x56b   :  { %v3360_v58 = vadd.f32 %v3359_v53, %v3333_v31 }
 0x56d   :  { %v4817_v59 = vmul.f32 -1.442695, %v3360_v58 }
 0x56f   :  { %5188 = vpow2.f32 %v4817_v59 }
 0x575   :  { %v5189_v60 = vpop.eup %5188 }
 0x576   :  { %v3365_v61 = vadd.f32 1.0, %v5189_v60 }
 0x578   :  { %5190 = vrcp.f32 %v3365_v61  ;;  %v3377_v18 = vand.u32 2147483648, %v3365_v61  ;;  %v3375_v1 = vand.u32 2147483647, %v3365_v61  ;;  %vm3371_vm1 = vweird.f32 %v3365_v61 }
 0x57a   :  { %v3378_v6 = vor.u32 1.1754944e-38, %v3377_v18  ;;  %vm3376_vm4 = vcmp.eq.f32.partialorder %v3375_v1, 8.507059e+37 }
 0x57e   :  { %v5191_v62 = vpop.eup %5190 }
 0x57f   :  { %v3367_v63 = vmul.f32 %v5191_v62, %v3365_v61  ;;  %vm3372_vm0 = vweird.f32 %v5191_v62 }
 0x580   :  { %vm3373_vm2 = vmor %vm3371_vm1, %vm3372_vm0 }
 0x581   :  { %v3368_v15 = vsub.f32 1.0, %v3367_v63 }
 0x583   :  { %v3369_v0 = vmul.f32 %v5191_v62, %v3368_v15 }
 0x585   :  { %v3370_v3 = vadd.f32 %v5191_v62, %v3369_v0 }
 0x587   :  { %v3374_v7 = vsel %vm3373_vm2, %v5191_v62, %v3370_v3 }
 0x588   :  { %v3379_v8 = vsel %vm3376_vm4, %v3378_v6, %v3374_v7 }
 0x589   :  { %3382 = vst.msk [vmem:[#allocation2] sm:$0x1] %vm3381_vm3, %v3379_v8 }
 0x58a   :  { %3393 = dma.vmem_to_hbm [thread:$0]  %s3389_s15, 16, %s3391_s17, [#allocation3]  }
 0x58b   :  { %5217 = dma.done.wait [#allocation3], 16  }
 0x58c   :  { %5218 = vsyncadd [#allocation3], 4294967280 }
 0x58d   :  { %3398 = vsyncpa [#allocation3], 1 }

</bundles_post_ra>
